<compile_context>
chip_gen: v7x
topology: tpu7x:2x2x1
jax: 0.10.0
libtpu: 0.0.40
codegen_flags: <defaults>
</compile_context>

<pallas_src>
import functools

import numpy as np
import jax
import jax.numpy as jnp
from jax.experimental import pallas as pl
from jax.experimental.pallas import tpu as pltpu

BN_EPS = 1e-5


# ----------------------------- Pallas kernels ------------------------------

def _make_conv_stack_kernel(plan, flat_rows):
    """Fused conv1..conv4 + maxpools + flatten for one image.

    plan: tuple of ("conv", (KH, OH, OW*Cout)) / ("pool", (OH, OW, C)).
    Weight refs arrive in plan order: conv -> (T, sb), pool -> (P, S).
    """

    def kernel(x_ref, *refs):
        out_ref = refs[-1]
        it = iter(refs[:-1])
        a = x_ref[...]                                     # (H, W*Cin) f32
        for kind, meta in plan:
            if kind == "conv":
                kh_total, oh, ncols = meta
                t_ref = next(it)                           # (KH, Win*Cin, OW*Cout) bf16
                sb_ref = next(it)                          # (2, OW*Cout) f32
                acc = jnp.zeros((oh, ncols), jnp.float32)
                for kh in range(kh_total):
                    lhs = a[kh:kh + oh, :].astype(jnp.bfloat16)
                    acc = acc + jnp.dot(lhs, t_ref[kh],
                                        preferred_element_type=jnp.float32)
                # fused (conv-bias + eval-mode BN) scale/shift + ReLU
                a = jnp.maximum(acc * sb_ref[0:1, :] + sb_ref[1:2, :], 0.0)
            else:                                          # 2x2 max-pool, stride 2
                oh, ow, c = meta
                p_ref = next(it)                           # (OH//2, OH-1)       bf16
                s_ref = next(it)                           # ((OW-1)*C, OW//2*C) bf16
                rm = jnp.maximum(a[0:oh - 1, :], a[1:oh, :])
                cm = jnp.maximum(rm[:, 0:(ow - 1) * c], rm[:, c:ow * c])
                a = jnp.dot(p_ref[...], cm.astype(jnp.bfloat16),
                            preferred_element_type=jnp.float32)
                a = jnp.dot(a.astype(jnp.bfloat16), s_ref[...],
                            preferred_element_type=jnp.float32)
        # flatten (rows, WW*C) -> (1, rows*WW*C) in NHWC order (mlp1 rows are
        # permuted at init to absorb the NCHW-vs-NHWC flatten difference).
        out_ref[...] = jnp.concatenate(
            [a[i:i + 1, :] for i in range(flat_rows)], axis=1)

    return kernel


def _mlp_heads_kernel(*refs, has_cond):
    """MLP([flat,256,128]) + packed calc_mean/calc_logvar heads (fully fused)."""
    if has_cond:
        (flat_ref, y_ref, w5_ref, sb5_ref, w6_ref, sb6_ref,
         wh1_ref, wy1_ref, sbh1_ref, wh2_ref, bh2_ref, out_ref) = refs
    else:
        (flat_ref, w5_ref, sb5_ref, w6_ref, sb6_ref,
         wh1_ref, sbh1_ref, wh2_ref, bh2_ref, out_ref) = refs
        y_ref = wy1_ref = None

    def dot16(a, w_ref):
        return jnp.dot(a.astype(jnp.bfloat16), w_ref[...],
                       preferred_element_type=jnp.float32)

    def bn_relu(z, sb_ref):
        return jnp.maximum(z * sb_ref[0:1, :] + sb_ref[1:2, :], 0.0)

    h = bn_relu(dot16(flat_ref[...], w5_ref), sb5_ref)     # (B, 256)
    h = bn_relu(dot16(h, w6_ref), sb6_ref)                 # (B, 128)
    z = dot16(h, wh1_ref)                                  # packed [mean|logvar] hidden
    if has_cond:
        z = z + dot16(y_ref[...], wy1_ref)                 # torch.cat((x, y), 1) path
    h = bn_relu(z, sbh1_ref)                               # (B, 128)
    out_ref[...] = dot16(h, wh2_ref) + bh2_ref[...]        # (B, 2*nhid) = [mean|logvar]


# ------------------------------- wrappers -----------------------------------

def _full_spec(arr):
    nd = arr.ndim
    return pl.BlockSpec(arr.shape, lambda *_args, _nd=nd: (0,) * _nd)


def conv_stack(prep, x):
    """x: (B, H, W*C) f32 slab per image.  Returns (B, flat_dim) f32."""
    B, H, WC = x.shape
    flat_dim = prep["flat_dim"]
    args = list(prep["conv_stack_args"])
    in_specs = [pl.BlockSpec((None, H, WC), lambda b: (b, 0, 0))]
    in_specs += [_full_spec(a) for a in args]
    kernel = _make_conv_stack_kernel(prep["plan"], prep["flat_rows"])
    out = pl.pallas_call(
        kernel,
        out_shape=jax.ShapeDtypeStruct((B, 1, flat_dim), jnp.float32),
        grid=(B,),
        in_specs=in_specs,
        out_specs=pl.BlockSpec((None, 1, flat_dim), lambda b: (b, 0, 0)),
        compiler_params=pltpu.CompilerParams(
            dimension_semantics=("parallel",)),   # v7x: split batch over 2 TCs
    )(x, *args)
    return out.reshape(B, flat_dim)


def mlp_heads(prep, flat, y=None):
    B = flat.shape[0]
    nhid = prep["nhid"]
    if y is None:
        kernel = functools.partial(_mlp_heads_kernel, has_cond=False)
        args = (flat, prep["w5"], prep["sb5"], prep["w6"], prep["sb6"],
                prep["wh1"], prep["sbh1"], prep["wh2"], prep["bh2"])
    else:
        kernel = functools.partial(_mlp_heads_kernel, has_cond=True)
        args = (flat, y.astype(jnp.float32), prep["w5"], prep["sb5"],
                prep["w6"], prep["sb6"], prep["wh1"], prep["wy1"],
                prep["sbh1"], prep["wh2"], prep["bh2"])
    return pl.pallas_call(
        kernel,
        out_shape=jax.ShapeDtypeStruct((B, 2 * nhid), jnp.float32),
    )(*args)


def encoder_forward(prep, x_nchw, y=None):
    c, h, w = prep["shape"]
    b = x_nchw.shape[0]
    # NCHW -> (B, H, W*C) slab, lane layout (width, channel).
    x = jnp.transpose(x_nchw, (0, 2, 3, 1)).reshape(b, h, w * c).astype(jnp.float32)
    flat = conv_stack(prep, x)           # Pallas call 1: convs + pools + flatten
    out = mlp_heads(prep, flat, y)       # Pallas call 2: MLP + mean/logvar heads
    nhid = prep["nhid"]
    return out[:, :nhid], out[:, nhid:]


# ----------------------------- parameter prep --------------------------------

def _bn_default(n):
    # PyTorch-default eval stats: gamma=1, beta=0, running_mean=0, running_var=1.
    return (np.ones(n, np.float32), np.zeros(n, np.float32),
            np.zeros(n, np.float32), np.ones(n, np.float32))


def _fold_bn(bias, gamma, beta, mean, var):
    scale = gamma / np.sqrt(var + BN_EPS)
    shift = (bias - mean) * scale + beta
    return scale.astype(np.float32), shift.astype(np.float32)


def _toeplitz(w, w_in):
    """w: (KH, KW, Cin, Cout) -> (KH, W_in*Cin, OW*Cout) row-Toeplitz matrices
    such that conv(x)[oh, ow, co] = sum_kh x_row(oh+kh) @ T[kh]."""
    kh_n, kw_n, cin, cout = w.shape
    ow_n = w_in - kw_n + 1
    t = np.zeros((kh_n, w_in * cin, ow_n * cout), np.float32)
    for kh in range(kh_n):
        for ow in range(ow_n):
            for kw in range(kw_n):
                p = ow + kw
                t[kh, p * cin:(p + 1) * cin, ow * cout:(ow + 1) * cout] = w[kh, kw]
    return t


def _pool_selectors(oh, ow, c):
    """0/1 matrices that compact even rows / even pixel-column blocks."""
    p = np.zeros((oh // 2, oh - 1), np.float32)
    p[np.arange(oh // 2), 2 * np.arange(oh // 2)] = 1.0
    s = np.zeros(((ow - 1) * c, (ow // 2) * c), np.float32)
    for j in range(ow // 2):
        for cc in range(c):
            s[2 * j * c + cc, j * c + cc] = 1.0
    return p, s


def build_params(key, shape, nhid=16, ncond=0):
    c, h, w = shape
    hh = ((h - 8) // 2 - 4) // 2
    ww = ((w - 8) // 2 - 4) // 2
    flat_dim = hh * ww * 64
    ks = iter(jax.random.split(key, 24))

    def rand(*s):
        return np.asarray(jax.random.normal(next(ks), s, jnp.float32)) * 0.05

    # Raw parameters (conv weight stored as (KH,KW,Cin,Cout)=HWIO; linear as (in,out)).
    conv_defs = [(c, 16, 5), (16, 32, 5), (32, 64, 3), (64, 64, 3)]
    conv_raw = [(rand(k, k, cin, cout), rand(cout)) for cin, cout, k in conv_defs]
    w_mlp1, b_mlp1 = rand(flat_dim, 256), rand(256)
    w_mlp2, b_mlp2 = rand(256, 128), rand(128)
    w_m1, b_m1 = rand(128 + ncond, 64), rand(64)
    w_m2, b_m2 = rand(64, nhid), rand(nhid)
    w_v1, b_v1 = rand(128 + ncond, 64), rand(64)
    w_v2, b_v2 = rand(64, nhid), rand(nhid)

    # ---- conv stack plan + kernel-ready weights ---------------------------
    plan, stack_args = [], []
    cur_h, cur_w, cur_c = h, w, c
    pool_after = {1, 3}                       # after conv2 and conv4
    for idx, ((wgt, bias), (cin, cout, k)) in enumerate(zip(conv_raw, conv_defs)):
        oh, ow = cur_h - k + 1, cur_w - k + 1
        t = _toeplitz(wgt, cur_w)
        scale, shift = _fold_bn(bias, *_bn_default(cout))
        sb = np.stack([np.tile(scale, ow), np.tile(shift, ow)])
        plan.append(("conv", (k, oh, ow * cout)))
        stack_args += [jnp.asarray(t, jnp.bfloat16), jnp.asarray(sb, jnp.float32)]
        cur_h, cur_w, cur_c = oh, ow, cout
        if idx in pool_after:
            # PyTorch MaxPool2d(2,2) floors odd dims; only even dims supported here.
            assert cur_h % 2 == 0 and cur_w % 2 == 0, "odd spatial dims unsupported"
            p_sel, s_sel = _pool_selectors(cur_h, cur_w, cur_c)
            plan.append(("pool", (cur_h, cur_w, cur_c)))
            stack_args += [jnp.asarray(p_sel, jnp.bfloat16),
                           jnp.asarray(s_sel, jnp.bfloat16)]
            cur_h, cur_w = cur_h // 2, cur_w // 2
    assert (cur_h, cur_w, cur_c) == (hh, ww, 64)

    # ---- MLP + heads ------------------------------------------------------
    # Permute mlp1 rows so it consumes the NHWC flatten (p = i*ww*C + j*C + c)
    # while matching PyTorch's NCHW flatten (q = c*hh*ww + i*ww + j).
    perm = np.zeros(flat_dim, np.int64)
    for i in range(hh):
        for j in range(ww):
            for cc in range(64):
                perm[i * ww * 64 + j * 64 + cc] = cc * hh * ww + i * ww + j
    w5 = w_mlp1[perm, :]

    def lin_sb(bias, n):
        scale, shift = _fold_bn(bias, *_bn_default(n))
        return np.stack([scale, shift])

    sb5, sb6 = lin_sb(b_mlp1, 256), lin_sb(b_mlp2, 128)

    # Packed heads: layer-1 lanes = [mean_hidden(64) | logvar_hidden(64)],
    # layer-2 is block-diagonal producing [mean(nhid) | logvar(nhid)].
    wh1_full = np.concatenate([w_m1, w_v1], axis=1)          # (128+ncond, 128)
    sbh1 = np.concatenate([lin_sb(b_m1, 64), lin_sb(b_v1, 64)], axis=1)
    wh2 = np.zeros((128, 2 * nhid), np.float32)
    wh2[:64, :nhid] = w_m2
    wh2[64:, nhid:] = w_v2
    bh2 = np.concatenate([b_m2, b_v2])[None, :]

    prep = {
        "shape": shape, "nhid": nhid, "ncond": ncond,
        "flat_dim": flat_dim, "flat_rows": hh,
        "plan": tuple(plan),
        "conv_stack_args": tuple(stack_args),
        "w5": jnp.asarray(w5, jnp.bfloat16), "sb5": jnp.asarray(sb5, jnp.float32),
        "w6": jnp.asarray(w_mlp2, jnp.bfloat16), "sb6": jnp.asarray(sb6, jnp.float32),
        "wh1": jnp.asarray(wh1_full[:128], jnp.bfloat16),
        "sbh1": jnp.asarray(sbh1, jnp.float32),
        "wh2": jnp.asarray(wh2, jnp.bfloat16),
        "bh2": jnp.asarray(bh2, jnp.float32),
        # Raw params kept for the pure-JAX correctness reference.
        "raw": {
            "convs": conv_raw,
            "w_mlp1": w_mlp1, "b_mlp1": b_mlp1,
            "w_mlp2": w_mlp2, "b_mlp2": b_mlp2,
            "w_m1": w_m1, "b_m1": b_m1, "w_m2": w_m2, "b_m2": b_m2,
            "w_v1": w_v1, "b_v1": b_v1, "w_v2": w_v2, "b_v2": b_v2,
        },
    }
    if ncond > 0:
        prep["wy1"] = jnp.asarray(wh1_full[128:], jnp.bfloat16)
    return prep


# --------------------------- pure-JAX reference -------------------------------

def encoder_reference(prep, x_nchw, y=None):
    """Plain XLA reference (eval-mode BN) mirroring the PyTorch forward pass."""
    raw = prep["raw"]
    x = jnp.transpose(x_nchw, (0, 2, 3, 1)).astype(jnp.float32)   # NHWC

    def bn_relu(z, bias):
        scale, shift = _fold_bn(bias, *_bn_default(z.shape[-1]))
        return jnp.maximum(z * scale + shift, 0.0)

    for idx, (wgt, bias) in enumerate(raw["convs"]):
        x = jax.lax.conv_general_dilated(
            x, jnp.asarray(wgt), window_strides=(1, 1), padding="VALID",
            dimension_numbers=("NHWC", "HWIO", "NHWC"))
        x = bn_relu(x, bias)
        if idx in (1, 3):                                   # MaxPool2d(2, 2)
            x = jax.lax.reduce_window(x, -jnp.inf, jax.lax.max,
                                      (1, 2, 2, 1), (1, 2, 2, 1), "VALID")
    b = x.shape[0]
    flat = jnp.transpose(x, (0, 3, 1, 2)).reshape(b, -1)    # NCHW flatten order

    h = bn_relu(flat @ raw["w_mlp1"], raw["b_mlp1"])
    h = bn_relu(h @ raw["w_mlp2"], raw["b_mlp2"])
    if y is not None:
        h = jnp.concatenate([h, y.astype(jnp.float32)], axis=1)
    mean = bn_relu(h @ raw["w_m1"], raw["b_m1"]) @ raw["w_m2"] + raw["b_m2"]
    logvar = bn_relu(h @ raw["w_v1"], raw["b_v1"]) @ raw["w_v2"] + raw["b_v2"]
    return mean, logvar


# ---------------------------------- main -------------------------------------

if __name__ == "__main__":
    key = jax.random.PRNGKey(0)
    kx, kp, kp2, ky = jax.random.split(key, 4)

    shape = (3, 24, 24)          # (c, h, w): hh = ww = 2, flatten dim = 256
    batch, nhid = 2, 16

    x = jax.random.normal(kx, (batch,) + shape, jnp.float32)   # NCHW, like PyTorch

    # --- unconditional path (y=None) ---
    prep = build_params(kp, shape, nhid=nhid, ncond=0)
    fwd = jax.jit(functools.partial(encoder_forward, prep))
    mean, logvar = jax.block_until_ready(fwd(x))
    assert mean.shape == (batch, nhid) and logvar.shape == (batch, nhid)
    ref_mean, ref_logvar = encoder_reference(prep, x)
    np.testing.assert_allclose(np.asarray(mean), np.asarray(ref_mean),
                               rtol=5e-2, atol=5e-2)
    np.testing.assert_allclose(np.asarray(logvar), np.asarray(ref_logvar),
                               rtol=5e-2, atol=5e-2)

    # --- conditional path (torch.cat((x, y), dim=1) into both heads) ---
    ncond = 4
    prep_c = build_params(kp2, shape, nhid=nhid, ncond=ncond)
    y = jax.nn.one_hot(jax.random.randint(ky, (batch,), 0, ncond), ncond,
                       dtype=jnp.float32)
    fwd_c = jax.jit(functools.partial(encoder_forward, prep_c))
    mean_c, logvar_c = jax.block_until_ready(fwd_c(x, y))
    assert mean_c.shape == (batch, nhid) and logvar_c.shape == (batch, nhid)
    ref_mean_c, ref_logvar_c = encoder_reference(prep_c, x, y)
    np.testing.assert_allclose(np.asarray(mean_c), np.asarray(ref_mean_c),
                               rtol=5e-2, atol=5e-2)
    np.testing.assert_allclose(np.asarray(logvar_c), np.asarray(ref_logvar_c),
                               rtol=5e-2, atol=5e-2)

    print("KERNEL_OK")
</pallas_src>

<mosaic_0001>
module attributes {stable_mosaic.version = 11 : i64} {
  func.func @kernel(%arg0: i32, %arg1: memref<1x24x72xf32, #tpu.memory_space<vmem>>, %arg2: memref<5x72x320xbf16, #tpu.memory_space<vmem>>, %arg3: memref<2x320xf32, #tpu.memory_space<vmem>>, %arg4: memref<5x320x512xbf16, #tpu.memory_space<vmem>>, %arg5: memref<2x512xf32, #tpu.memory_space<vmem>>, %arg6: memref<8x15xbf16, #tpu.memory_space<vmem>>, %arg7: memref<480x256xbf16, #tpu.memory_space<vmem>>, %arg8: memref<3x256x384xbf16, #tpu.memory_space<vmem>>, %arg9: memref<2x384xf32, #tpu.memory_space<vmem>>, %arg10: memref<3x384x256xbf16, #tpu.memory_space<vmem>>, %arg11: memref<2x256xf32, #tpu.memory_space<vmem>>, %arg12: memref<2x3xbf16, #tpu.memory_space<vmem>>, %arg13: memref<192x128xbf16, #tpu.memory_space<vmem>>, %arg14: memref<1x1x256xf32, #tpu.memory_space<vmem>>) attributes {dimension_semantics = [#tpu.dimension_semantics<parallel>], iteration_bounds = array<i64: 2>, scalar_prefetch = 0 : i64, scratch_operands = 0 : i64, tpu.core_type = #tpu.core_type<tc>, window_params = [{transform_indices = @transform_0, window_bounds = array<i64: 1, 24, 72>}, {pipeline_mode = #tpu.pipeline_mode<synchronous>, transform_indices = @transform_1, window_bounds = array<i64: 5, 72, 320>}, {pipeline_mode = #tpu.pipeline_mode<synchronous>, transform_indices = @transform_2, window_bounds = array<i64: 2, 320>}, {pipeline_mode = #tpu.pipeline_mode<synchronous>, transform_indices = @transform_3, window_bounds = array<i64: 5, 320, 512>}, {pipeline_mode = #tpu.pipeline_mode<synchronous>, transform_indices = @transform_4, window_bounds = array<i64: 2, 512>}, {pipeline_mode = #tpu.pipeline_mode<synchronous>, transform_indices = @transform_5, window_bounds = array<i64: 8, 15>}, {pipeline_mode = #tpu.pipeline_mode<synchronous>, transform_indices = @transform_6, window_bounds = array<i64: 480, 256>}, {pipeline_mode = #tpu.pipeline_mode<synchronous>, transform_indices = @transform_7, window_bounds = array<i64: 3, 256, 384>}, {pipeline_mode = #tpu.pipeline_mode<synchronous>, transform_indices = @transform_8, window_bounds = array<i64: 2, 384>}, {pipeline_mode = #tpu.pipeline_mode<synchronous>, transform_indices = @transform_9, window_bounds = array<i64: 3, 384, 256>}, {pipeline_mode = #tpu.pipeline_mode<synchronous>, transform_indices = @transform_10, window_bounds = array<i64: 2, 256>}, {pipeline_mode = #tpu.pipeline_mode<synchronous>, transform_indices = @transform_11, window_bounds = array<i64: 2, 3>}, {pipeline_mode = #tpu.pipeline_mode<synchronous>, transform_indices = @transform_12, window_bounds = array<i64: 192, 128>}, {transform_indices = @transform_13, window_bounds = array<i64: 1, 1, 256>}]} {
    %c0 = arith.constant 0 : index
    %c0_0 = arith.constant 0 : index
    %c0_1 = arith.constant 0 : index
    %0 = vector.load %arg1[%c0, %c0_0, %c0_1] : memref<1x24x72xf32, #tpu.memory_space<vmem>>, vector<1x24x72xf32>
    %1 = vector.shape_cast %0 : vector<1x24x72xf32> to vector<24x72xf32>
    %cst = arith.constant 0.000000e+00 : f32
    %2 = vector.broadcast %cst : f32 to vector<20x320xf32>
    %3 = vector.extract_strided_slice %1 {offsets = [0, 0], sizes = [20, 72], strides = [1, 1]} : vector<24x72xf32> to vector<20x72xf32>
    %4 = arith.truncf %3 : vector<20x72xf32> to vector<20x72xbf16>
    %c0_2 = arith.constant 0 : index
    %c0_3 = arith.constant 0 : index
    %c0_4 = arith.constant 0 : index
    %5 = vector.load %arg2[%c0_2, %c0_3, %c0_4] : memref<5x72x320xbf16, #tpu.memory_space<vmem>>, vector<1x72x320xbf16>
    %6 = vector.shape_cast %5 : vector<1x72x320xbf16> to vector<72x320xbf16>
    %cst_5 = arith.constant dense<0.000000e+00> : vector<20x320xf32>
    %7 = tpu.matmul %4, %6, %cst_5 {dimension_numbers = #tpu.dot_dimension_numbers<[1], [0], [0], [1], [0, 0, 1, 1], [], []>} : vector<20x72xbf16>, vector<72x320xbf16>, vector<20x320xf32> -> vector<20x320xf32>
    %8 = arith.addf %2, %7 : vector<20x320xf32>
    %9 = vector.extract_strided_slice %1 {offsets = [1, 0], sizes = [20, 72], strides = [1, 1]} : vector<24x72xf32> to vector<20x72xf32>
    %10 = arith.truncf %9 : vector<20x72xf32> to vector<20x72xbf16>
    %c1 = arith.constant 1 : index
    %c0_6 = arith.constant 0 : index
    %c0_7 = arith.constant 0 : index
    %11 = vector.load %arg2[%c1, %c0_6, %c0_7] : memref<5x72x320xbf16, #tpu.memory_space<vmem>>, vector<1x72x320xbf16>
    %12 = vector.shape_cast %11 : vector<1x72x320xbf16> to vector<72x320xbf16>
    %cst_8 = arith.constant dense<0.000000e+00> : vector<20x320xf32>
    %13 = tpu.matmul %10, %12, %cst_8 {dimension_numbers = #tpu.dot_dimension_numbers<[1], [0], [0], [1], [0, 0, 1, 1], [], []>} : vector<20x72xbf16>, vector<72x320xbf16>, vector<20x320xf32> -> vector<20x320xf32>
    %14 = arith.addf %8, %13 : vector<20x320xf32>
    %15 = vector.extract_strided_slice %1 {offsets = [2, 0], sizes = [20, 72], strides = [1, 1]} : vector<24x72xf32> to vector<20x72xf32>
    %16 = arith.truncf %15 : vector<20x72xf32> to vector<20x72xbf16>
    %c2 = arith.constant 2 : index
    %c0_9 = arith.constant 0 : index
    %c0_10 = arith.constant 0 : index
    %17 = vector.load %arg2[%c2, %c0_9, %c0_10] : memref<5x72x320xbf16, #tpu.memory_space<vmem>>, vector<1x72x320xbf16>
    %18 = vector.shape_cast %17 : vector<1x72x320xbf16> to vector<72x320xbf16>
    %cst_11 = arith.constant dense<0.000000e+00> : vector<20x320xf32>
    %19 = tpu.matmul %16, %18, %cst_11 {dimension_numbers = #tpu.dot_dimension_numbers<[1], [0], [0], [1], [0, 0, 1, 1], [], []>} : vector<20x72xbf16>, vector<72x320xbf16>, vector<20x320xf32> -> vector<20x320xf32>
    %20 = arith.addf %14, %19 : vector<20x320xf32>
    %21 = vector.extract_strided_slice %1 {offsets = [3, 0], sizes = [20, 72], strides = [1, 1]} : vector<24x72xf32> to vector<20x72xf32>
    %22 = arith.truncf %21 : vector<20x72xf32> to vector<20x72xbf16>
    %c3 = arith.constant 3 : index
    %c0_12 = arith.constant 0 : index
    %c0_13 = arith.constant 0 : index
    %23 = vector.load %arg2[%c3, %c0_12, %c0_13] : memref<5x72x320xbf16, #tpu.memory_space<vmem>>, vector<1x72x320xbf16>
    %24 = vector.shape_cast %23 : vector<1x72x320xbf16> to vector<72x320xbf16>
    %cst_14 = arith.constant dense<0.000000e+00> : vector<20x320xf32>
    %25 = tpu.matmul %22, %24, %cst_14 {dimension_numbers = #tpu.dot_dimension_numbers<[1], [0], [0], [1], [0, 0, 1, 1], [], []>} : vector<20x72xbf16>, vector<72x320xbf16>, vector<20x320xf32> -> vector<20x320xf32>
    %26 = arith.addf %20, %25 : vector<20x320xf32>
    %27 = vector.extract_strided_slice %1 {offsets = [4, 0], sizes = [20, 72], strides = [1, 1]} : vector<24x72xf32> to vector<20x72xf32>
    %28 = arith.truncf %27 : vector<20x72xf32> to vector<20x72xbf16>
    %c4 = arith.constant 4 : index
    %c0_15 = arith.constant 0 : index
    %c0_16 = arith.constant 0 : index
    %29 = vector.load %arg2[%c4, %c0_15, %c0_16] : memref<5x72x320xbf16, #tpu.memory_space<vmem>>, vector<1x72x320xbf16>
    %30 = vector.shape_cast %29 : vector<1x72x320xbf16> to vector<72x320xbf16>
    %cst_17 = arith.constant dense<0.000000e+00> : vector<20x320xf32>
    %31 = tpu.matmul %28, %30, %cst_17 {dimension_numbers = #tpu.dot_dimension_numbers<[1], [0], [0], [1], [0, 0, 1, 1], [], []>} : vector<20x72xbf16>, vector<72x320xbf16>, vector<20x320xf32> -> vector<20x320xf32>
    %32 = arith.addf %26, %31 : vector<20x320xf32>
    %c0_18 = arith.constant 0 : index
    %c0_19 = arith.constant 0 : index
    %33 = vector.load %arg3[%c0_18, %c0_19] : memref<2x320xf32, #tpu.memory_space<vmem>>, vector<1x320xf32>
    %34 = vector.broadcast %33 : vector<1x320xf32> to vector<20x320xf32>
    %35 = arith.mulf %32, %34 : vector<20x320xf32>
    %c1_20 = arith.constant 1 : index
    %c0_21 = arith.constant 0 : index
    %36 = vector.load %arg3[%c1_20, %c0_21] : memref<2x320xf32, #tpu.memory_space<vmem>>, vector<1x320xf32>
    %37 = vector.broadcast %36 : vector<1x320xf32> to vector<20x320xf32>
    %38 = arith.addf %35, %37 : vector<20x320xf32>
    %cst_22 = arith.constant 0.000000e+00 : f32
    %39 = vector.broadcast %cst_22 : f32 to vector<20x320xf32>
    %40 = arith.maximumf %38, %39 : vector<20x320xf32>
    %cst_23 = arith.constant 0.000000e+00 : f32
    %41 = vector.broadcast %cst_23 : f32 to vector<16x512xf32>
    %42 = vector.extract_strided_slice %40 {offsets = [0, 0], sizes = [16, 320], strides = [1, 1]} : vector<20x320xf32> to vector<16x320xf32>
    %43 = arith.truncf %42 : vector<16x320xf32> to vector<16x320xbf16>
    %c0_24 = arith.constant 0 : index
    %c0_25 = arith.constant 0 : index
    %c0_26 = arith.constant 0 : index
    %44 = vector.load %arg4[%c0_24, %c0_25, %c0_26] : memref<5x320x512xbf16, #tpu.memory_space<vmem>>, vector<1x320x512xbf16>
    %45 = vector.shape_cast %44 : vector<1x320x512xbf16> to vector<320x512xbf16>
    %cst_27 = arith.constant dense<0.000000e+00> : vector<16x512xf32>
    %46 = tpu.matmul %43, %45, %cst_27 {dimension_numbers = #tpu.dot_dimension_numbers<[1], [0], [0], [1], [0, 0, 1, 1], [], []>} : vector<16x320xbf16>, vector<320x512xbf16>, vector<16x512xf32> -> vector<16x512xf32>
    %47 = arith.addf %41, %46 : vector<16x512xf32>
    %48 = vector.extract_strided_slice %40 {offsets = [1, 0], sizes = [16, 320], strides = [1, 1]} : vector<20x320xf32> to vector<16x320xf32>
    %49 = arith.truncf %48 : vector<16x320xf32> to vector<16x320xbf16>
    %c1_28 = arith.constant 1 : index
    %c0_29 = arith.constant 0 : index
    %c0_30 = arith.constant 0 : index
    %50 = vector.load %arg4[%c1_28, %c0_29, %c0_30] : memref<5x320x512xbf16, #tpu.memory_space<vmem>>, vector<1x320x512xbf16>
    %51 = vector.shape_cast %50 : vector<1x320x512xbf16> to vector<320x512xbf16>
    %cst_31 = arith.constant dense<0.000000e+00> : vector<16x512xf32>
    %52 = tpu.matmul %49, %51, %cst_31 {dimension_numbers = #tpu.dot_dimension_numbers<[1], [0], [0], [1], [0, 0, 1, 1], [], []>} : vector<16x320xbf16>, vector<320x512xbf16>, vector<16x512xf32> -> vector<16x512xf32>
    %53 = arith.addf %47, %52 : vector<16x512xf32>
    %54 = vector.extract_strided_slice %40 {offsets = [2, 0], sizes = [16, 320], strides = [1, 1]} : vector<20x320xf32> to vector<16x320xf32>
    %55 = arith.truncf %54 : vector<16x320xf32> to vector<16x320xbf16>
    %c2_32 = arith.constant 2 : index
    %c0_33 = arith.constant 0 : index
    %c0_34 = arith.constant 0 : index
    %56 = vector.load %arg4[%c2_32, %c0_33, %c0_34] : memref<5x320x512xbf16, #tpu.memory_space<vmem>>, vector<1x320x512xbf16>
    %57 = vector.shape_cast %56 : vector<1x320x512xbf16> to vector<320x512xbf16>
    %cst_35 = arith.constant dense<0.000000e+00> : vector<16x512xf32>
    %58 = tpu.matmul %55, %57, %cst_35 {dimension_numbers = #tpu.dot_dimension_numbers<[1], [0], [0], [1], [0, 0, 1, 1], [], []>} : vector<16x320xbf16>, vector<320x512xbf16>, vector<16x512xf32> -> vector<16x512xf32>
    %59 = arith.addf %53, %58 : vector<16x512xf32>
    %60 = vector.extract_strided_slice %40 {offsets = [3, 0], sizes = [16, 320], strides = [1, 1]} : vector<20x320xf32> to vector<16x320xf32>
    %61 = arith.truncf %60 : vector<16x320xf32> to vector<16x320xbf16>
    %c3_36 = arith.constant 3 : index
    %c0_37 = arith.constant 0 : index
    %c0_38 = arith.constant 0 : index
    %62 = vector.load %arg4[%c3_36, %c0_37, %c0_38] : memref<5x320x512xbf16, #tpu.memory_space<vmem>>, vector<1x320x512xbf16>
    %63 = vector.shape_cast %62 : vector<1x320x512xbf16> to vector<320x512xbf16>
    %cst_39 = arith.constant dense<0.000000e+00> : vector<16x512xf32>
    %64 = tpu.matmul %61, %63, %cst_39 {dimension_numbers = #tpu.dot_dimension_numbers<[1], [0], [0], [1], [0, 0, 1, 1], [], []>} : vector<16x320xbf16>, vector<320x512xbf16>, vector<16x512xf32> -> vector<16x512xf32>
    %65 = arith.addf %59, %64 : vector<16x512xf32>
    %66 = vector.extract_strided_slice %40 {offsets = [4, 0], sizes = [16, 320], strides = [1, 1]} : vector<20x320xf32> to vector<16x320xf32>
    %67 = arith.truncf %66 : vector<16x320xf32> to vector<16x320xbf16>
    %c4_40 = arith.constant 4 : index
    %c0_41 = arith.constant 0 : index
    %c0_42 = arith.constant 0 : index
    %68 = vector.load %arg4[%c4_40, %c0_41, %c0_42] : memref<5x320x512xbf16, #tpu.memory_space<vmem>>, vector<1x320x512xbf16>
    %69 = vector.shape_cast %68 : vector<1x320x512xbf16> to vector<320x512xbf16>
    %cst_43 = arith.constant dense<0.000000e+00> : vector<16x512xf32>
    %70 = tpu.matmul %67, %69, %cst_43 {dimension_numbers = #tpu.dot_dimension_numbers<[1], [0], [0], [1], [0, 0, 1, 1], [], []>} : vector<16x320xbf16>, vector<320x512xbf16>, vector<16x512xf32> -> vector<16x512xf32>
    %71 = arith.addf %65, %70 : vector<16x512xf32>
    %c0_44 = arith.constant 0 : index
    %c0_45 = arith.constant 0 : index
    %72 = vector.load %arg5[%c0_44, %c0_45] : memref<2x512xf32, #tpu.memory_space<vmem>>, vector<1x512xf32>
    %73 = vector.broadcast %72 : vector<1x512xf32> to vector<16x512xf32>
    %74 = arith.mulf %71, %73 : vector<16x512xf32>
    %c1_46 = arith.constant 1 : index
    %c0_47 = arith.constant 0 : index
    %75 = vector.load %arg5[%c1_46, %c0_47] : memref<2x512xf32, #tpu.memory_space<vmem>>, vector<1x512xf32>
    %76 = vector.broadcast %75 : vector<1x512xf32> to vector<16x512xf32>
    %77 = arith.addf %74, %76 : vector<16x512xf32>
    %cst_48 = arith.constant 0.000000e+00 : f32
    %78 = vector.broadcast %cst_48 : f32 to vector<16x512xf32>
    %79 = arith.maximumf %77, %78 : vector<16x512xf32>
    %80 = vector.extract_strided_slice %79 {offsets = [0, 0], sizes = [15, 512], strides = [1, 1]} : vector<16x512xf32> to vector<15x512xf32>
    %81 = vector.extract_strided_slice %79 {offsets = [1, 0], sizes = [15, 512], strides = [1, 1]} : vector<16x512xf32> to vector<15x512xf32>
    %82 = arith.maximumf %80, %81 : vector<15x512xf32>
    %83 = vector.extract_strided_slice %82 {offsets = [0, 0], sizes = [15, 480], strides = [1, 1]} : vector<15x512xf32> to vector<15x480xf32>
    %84 = vector.extract_strided_slice %82 {offsets = [0, 32], sizes = [15, 480], strides = [1, 1]} : vector<15x512xf32> to vector<15x480xf32>
    %85 = arith.maximumf %83, %84 : vector<15x480xf32>
    %c0_49 = arith.constant 0 : index
    %c0_50 = arith.constant 0 : index
    %86 = vector.load %arg6[%c0_49, %c0_50] : memref<8x15xbf16, #tpu.memory_space<vmem>>, vector<8x15xbf16>
    %87 = arith.truncf %85 : vector<15x480xf32> to vector<15x480xbf16>
    %cst_51 = arith.constant dense<0.000000e+00> : vector<8x480xf32>
    %88 = tpu.matmul %86, %87, %cst_51 {dimension_numbers = #tpu.dot_dimension_numbers<[1], [0], [0], [1], [0, 0, 1, 1], [], []>} : vector<8x15xbf16>, vector<15x480xbf16>, vector<8x480xf32> -> vector<8x480xf32>
    %89 = arith.truncf %88 : vector<8x480xf32> to vector<8x480xbf16>
    %c0_52 = arith.constant 0 : index
    %c0_53 = arith.constant 0 : index
    %90 = vector.load %arg7[%c0_52, %c0_53] : memref<480x256xbf16, #tpu.memory_space<vmem>>, vector<480x256xbf16>
    %cst_54 = arith.constant dense<0.000000e+00> : vector<8x256xf32>
    %91 = tpu.matmul %89, %90, %cst_54 {dimension_numbers = #tpu.dot_dimension_numbers<[1], [0], [0], [1], [0, 0, 1, 1], [], []>} : vector<8x480xbf16>, vector<480x256xbf16>, vector<8x256xf32> -> vector<8x256xf32>
    %cst_55 = arith.constant 0.000000e+00 : f32
    %92 = vector.broadcast %cst_55 : f32 to vector<6x384xf32>
    %93 = vector.extract_strided_slice %91 {offsets = [0, 0], sizes = [6, 256], strides = [1, 1]} : vector<8x256xf32> to vector<6x256xf32>
    %94 = arith.truncf %93 : vector<6x256xf32> to vector<6x256xbf16>
    %c0_56 = arith.constant 0 : index
    %c0_57 = arith.constant 0 : index
    %c0_58 = arith.constant 0 : index
    %95 = vector.load %arg8[%c0_56, %c0_57, %c0_58] : memref<3x256x384xbf16, #tpu.memory_space<vmem>>, vector<1x256x384xbf16>
    %96 = vector.shape_cast %95 : vector<1x256x384xbf16> to vector<256x384xbf16>
    %cst_59 = arith.constant dense<0.000000e+00> : vector<6x384xf32>
    %97 = tpu.matmul %94, %96, %cst_59 {dimension_numbers = #tpu.dot_dimension_numbers<[1], [0], [0], [1], [0, 0, 1, 1], [], []>} : vector<6x256xbf16>, vector<256x384xbf16>, vector<6x384xf32> -> vector<6x384xf32>
    %98 = arith.addf %92, %97 : vector<6x384xf32>
    %99 = vector.extract_strided_slice %91 {offsets = [1, 0], sizes = [6, 256], strides = [1, 1]} : vector<8x256xf32> to vector<6x256xf32>
    %100 = arith.truncf %99 : vector<6x256xf32> to vector<6x256xbf16>
    %c1_60 = arith.constant 1 : index
    %c0_61 = arith.constant 0 : index
    %c0_62 = arith.constant 0 : index
    %101 = vector.load %arg8[%c1_60, %c0_61, %c0_62] : memref<3x256x384xbf16, #tpu.memory_space<vmem>>, vector<1x256x384xbf16>
    %102 = vector.shape_cast %101 : vector<1x256x384xbf16> to vector<256x384xbf16>
    %cst_63 = arith.constant dense<0.000000e+00> : vector<6x384xf32>
    %103 = tpu.matmul %100, %102, %cst_63 {dimension_numbers = #tpu.dot_dimension_numbers<[1], [0], [0], [1], [0, 0, 1, 1], [], []>} : vector<6x256xbf16>, vector<256x384xbf16>, vector<6x384xf32> -> vector<6x384xf32>
    %104 = arith.addf %98, %103 : vector<6x384xf32>
    %105 = vector.extract_strided_slice %91 {offsets = [2, 0], sizes = [6, 256], strides = [1, 1]} : vector<8x256xf32> to vector<6x256xf32>
    %106 = arith.truncf %105 : vector<6x256xf32> to vector<6x256xbf16>
    %c2_64 = arith.constant 2 : index
    %c0_65 = arith.constant 0 : index
    %c0_66 = arith.constant 0 : index
    %107 = vector.load %arg8[%c2_64, %c0_65, %c0_66] : memref<3x256x384xbf16, #tpu.memory_space<vmem>>, vector<1x256x384xbf16>
    %108 = vector.shape_cast %107 : vector<1x256x384xbf16> to vector<256x384xbf16>
    %cst_67 = arith.constant dense<0.000000e+00> : vector<6x384xf32>
    %109 = tpu.matmul %106, %108, %cst_67 {dimension_numbers = #tpu.dot_dimension_numbers<[1], [0], [0], [1], [0, 0, 1, 1], [], []>} : vector<6x256xbf16>, vector<256x384xbf16>, vector<6x384xf32> -> vector<6x384xf32>
    %110 = arith.addf %104, %109 : vector<6x384xf32>
    %c0_68 = arith.constant 0 : index
    %c0_69 = arith.constant 0 : index
    %111 = vector.load %arg9[%c0_68, %c0_69] : memref<2x384xf32, #tpu.memory_space<vmem>>, vector<1x384xf32>
    %112 = vector.broadcast %111 : vector<1x384xf32> to vector<6x384xf32>
    %113 = arith.mulf %110, %112 : vector<6x384xf32>
    %c1_70 = arith.constant 1 : index
    %c0_71 = arith.constant 0 : index
    %114 = vector.load %arg9[%c1_70, %c0_71] : memref<2x384xf32, #tpu.memory_space<vmem>>, vector<1x384xf32>
    %115 = vector.broadcast %114 : vector<1x384xf32> to vector<6x384xf32>
    %116 = arith.addf %113, %115 : vector<6x384xf32>
    %cst_72 = arith.constant 0.000000e+00 : f32
    %117 = vector.broadcast %cst_72 : f32 to vector<6x384xf32>
    %118 = arith.maximumf %116, %117 : vector<6x384xf32>
    %cst_73 = arith.constant 0.000000e+00 : f32
    %119 = vector.broadcast %cst_73 : f32 to vector<4x256xf32>
    %120 = vector.extract_strided_slice %118 {offsets = [0, 0], sizes = [4, 384], strides = [1, 1]} : vector<6x384xf32> to vector<4x384xf32>
    %121 = arith.truncf %120 : vector<4x384xf32> to vector<4x384xbf16>
    %c0_74 = arith.constant 0 : index
    %c0_75 = arith.constant 0 : index
    %c0_76 = arith.constant 0 : index
    %122 = vector.load %arg10[%c0_74, %c0_75, %c0_76] : memref<3x384x256xbf16, #tpu.memory_space<vmem>>, vector<1x384x256xbf16>
    %123 = vector.shape_cast %122 : vector<1x384x256xbf16> to vector<384x256xbf16>
    %cst_77 = arith.constant dense<0.000000e+00> : vector<4x256xf32>
    %124 = tpu.matmul %121, %123, %cst_77 {dimension_numbers = #tpu.dot_dimension_numbers<[1], [0], [0], [1], [0, 0, 1, 1], [], []>} : vector<4x384xbf16>, vector<384x256xbf16>, vector<4x256xf32> -> vector<4x256xf32>
    %125 = arith.addf %119, %124 : vector<4x256xf32>
    %126 = vector.extract_strided_slice %118 {offsets = [1, 0], sizes = [4, 384], strides = [1, 1]} : vector<6x384xf32> to vector<4x384xf32>
    %127 = arith.truncf %126 : vector<4x384xf32> to vector<4x384xbf16>
    %c1_78 = arith.constant 1 : index
    %c0_79 = arith.constant 0 : index
    %c0_80 = arith.constant 0 : index
    %128 = vector.load %arg10[%c1_78, %c0_79, %c0_80] : memref<3x384x256xbf16, #tpu.memory_space<vmem>>, vector<1x384x256xbf16>
    %129 = vector.shape_cast %128 : vector<1x384x256xbf16> to vector<384x256xbf16>
    %cst_81 = arith.constant dense<0.000000e+00> : vector<4x256xf32>
    %130 = tpu.matmul %127, %129, %cst_81 {dimension_numbers = #tpu.dot_dimension_numbers<[1], [0], [0], [1], [0, 0, 1, 1], [], []>} : vector<4x384xbf16>, vector<384x256xbf16>, vector<4x256xf32> -> vector<4x256xf32>
    %131 = arith.addf %125, %130 : vector<4x256xf32>
    %132 = vector.extract_strided_slice %118 {offsets = [2, 0], sizes = [4, 384], strides = [1, 1]} : vector<6x384xf32> to vector<4x384xf32>
    %133 = arith.truncf %132 : vector<4x384xf32> to vector<4x384xbf16>
    %c2_82 = arith.constant 2 : index
    %c0_83 = arith.constant 0 : index
    %c0_84 = arith.constant 0 : index
    %134 = vector.load %arg10[%c2_82, %c0_83, %c0_84] : memref<3x384x256xbf16, #tpu.memory_space<vmem>>, vector<1x384x256xbf16>
    %135 = vector.shape_cast %134 : vector<1x384x256xbf16> to vector<384x256xbf16>
    %cst_85 = arith.constant dense<0.000000e+00> : vector<4x256xf32>
    %136 = tpu.matmul %133, %135, %cst_85 {dimension_numbers = #tpu.dot_dimension_numbers<[1], [0], [0], [1], [0, 0, 1, 1], [], []>} : vector<4x384xbf16>, vector<384x256xbf16>, vector<4x256xf32> -> vector<4x256xf32>
    %137 = arith.addf %131, %136 : vector<4x256xf32>
    %c0_86 = arith.constant 0 : index
    %c0_87 = arith.constant 0 : index
    %138 = vector.load %arg11[%c0_86, %c0_87] : memref<2x256xf32, #tpu.memory_space<vmem>>, vector<1x256xf32>
    %139 = vector.broadcast %138 : vector<1x256xf32> to vector<4x256xf32>
    %140 = arith.mulf %137, %139 : vector<4x256xf32>
    %c1_88 = arith.constant 1 : index
    %c0_89 = arith.constant 0 : index
    %141 = vector.load %arg11[%c1_88, %c0_89] : memref<2x256xf32, #tpu.memory_space<vmem>>, vector<1x256xf32>
    %142 = vector.broadcast %141 : vector<1x256xf32> to vector<4x256xf32>
    %143 = arith.addf %140, %142 : vector<4x256xf32>
    %cst_90 = arith.constant 0.000000e+00 : f32
    %144 = vector.broadcast %cst_90 : f32 to vector<4x256xf32>
    %145 = arith.maximumf %143, %144 : vector<4x256xf32>
    %146 = vector.extract_strided_slice %145 {offsets = [0, 0], sizes = [3, 256], strides = [1, 1]} : vector<4x256xf32> to vector<3x256xf32>
    %147 = vector.extract_strided_slice %145 {offsets = [1, 0], sizes = [3, 256], strides = [1, 1]} : vector<4x256xf32> to vector<3x256xf32>
    %148 = arith.maximumf %146, %147 : vector<3x256xf32>
    %149 = vector.extract_strided_slice %148 {offsets = [0, 0], sizes = [3, 192], strides = [1, 1]} : vector<3x256xf32> to vector<3x192xf32>
    %150 = vector.extract_strided_slice %148 {offsets = [0, 64], sizes = [3, 192], strides = [1, 1]} : vector<3x256xf32> to vector<3x192xf32>
    %151 = arith.maximumf %149, %150 : vector<3x192xf32>
    %c0_91 = arith.constant 0 : index
    %c0_92 = arith.constant 0 : index
    %152 = vector.load %arg12[%c0_91, %c0_92] : memref<2x3xbf16, #tpu.memory_space<vmem>>, vector<2x3xbf16>
    %153 = arith.truncf %151 : vector<3x192xf32> to vector<3x192xbf16>
    %cst_93 = arith.constant dense<0.000000e+00> : vector<2x192xf32>
    %154 = tpu.matmul %152, %153, %cst_93 {dimension_numbers = #tpu.dot_dimension_numbers<[1], [0], [0], [1], [0, 0, 1, 1], [], []>} : vector<2x3xbf16>, vector<3x192xbf16>, vector<2x192xf32> -> vector<2x192xf32>
    %155 = arith.truncf %154 : vector<2x192xf32> to vector<2x192xbf16>
    %c0_94 = arith.constant 0 : index
    %c0_95 = arith.constant 0 : index
    %156 = vector.load %arg13[%c0_94, %c0_95] : memref<192x128xbf16, #tpu.memory_space<vmem>>, vector<192x128xbf16>
    %cst_96 = arith.constant dense<0.000000e+00> : vector<2x128xf32>
    %157 = tpu.matmul %155, %156, %cst_96 {dimension_numbers = #tpu.dot_dimension_numbers<[1], [0], [0], [1], [0, 0, 1, 1], [], []>} : vector<2x192xbf16>, vector<192x128xbf16>, vector<2x128xf32> -> vector<2x128xf32>
    %158 = vector.extract_strided_slice %157 {offsets = [0, 0], sizes = [1, 128], strides = [1, 1]} : vector<2x128xf32> to vector<1x128xf32>
    %159 = vector.extract_strided_slice %157 {offsets = [1, 0], sizes = [1, 128], strides = [1, 1]} : vector<2x128xf32> to vector<1x128xf32>
    %160 = tpu.concatenate %158, %159 in 1 : vector<1x128xf32>, vector<1x128xf32> -> vector<1x256xf32>
    %c0_97 = arith.constant 0 : index
    %c0_98 = arith.constant 0 : index
    %c0_99 = arith.constant 0 : index
    %161 = vector.load %arg14[%c0_97, %c0_98, %c0_99] : memref<1x1x256xf32, #tpu.memory_space<vmem>>, vector<1x1x256xf32>
    %162 = vector.shape_cast %161 : vector<1x1x256xf32> to vector<1x256xf32>
    %163 = vector.shape_cast %160 : vector<1x256xf32> to vector<1x1x256xf32>
    tpu.vector_store %arg14[%c0_97, %c0_98, %c0_99], %163 {strides = array<i32>} : memref<1x1x256xf32, #tpu.memory_space<vmem>>, vector<1x1x256xf32>,
    return
  }
  func.func @transform_0(%arg0: i32) -> (i32, i32, i32) {
    %c0_i32 = arith.constant 0 : i32
    %c0_i32_0 = arith.constant 0 : i32
    %c0_i32_1 = arith.constant 0 : i32
    return %arg0, %c0_i32, %c0_i32_0 : i32, i32, i32
  }
  func.func @transform_1(%arg0: i32) -> (i32, i32, i32) {
    %c0_i32 = arith.constant 0 : i32
    %c0_i32_0 = arith.constant 0 : i32
    %c0_i32_1 = arith.constant 0 : i32
    %c0_i32_2 = arith.constant 0 : i32
    return %c0_i32, %c0_i32_0, %c0_i32_1 : i32, i32, i32
  }
  func.func @transform_2(%arg0: i32) -> (i32, i32) {
    %c0_i32 = arith.constant 0 : i32
    %c0_i32_0 = arith.constant 0 : i32
    %c0_i32_1 = arith.constant 0 : i32
    return %c0_i32, %c0_i32_0 : i32, i32
  }
  func.func @transform_3(%arg0: i32) -> (i32, i32, i32) {
    %c0_i32 = arith.constant 0 : i32
    %c0_i32_0 = arith.constant 0 : i32
    %c0_i32_1 = arith.constant 0 : i32
    %c0_i32_2 = arith.constant 0 : i32
    return %c0_i32, %c0_i32_0, %c0_i32_1 : i32, i32, i32
  }
  func.func @transform_4(%arg0: i32) -> (i32, i32) {
    %c0_i32 = arith.constant 0 : i32
    %c0_i32_0 = arith.constant 0 : i32
    %c0_i32_1 = arith.constant 0 : i32
    return %c0_i32, %c0_i32_0 : i32, i32
  }
  func.func @transform_5(%arg0: i32) -> (i32, i32) {
    %c0_i32 = arith.constant 0 : i32
    %c0_i32_0 = arith.constant 0 : i32
    %c0_i32_1 = arith.constant 0 : i32
    return %c0_i32, %c0_i32_0 : i32, i32
  }
  func.func @transform_6(%arg0: i32) -> (i32, i32) {
    %c0_i32 = arith.constant 0 : i32
    %c0_i32_0 = arith.constant 0 : i32
    %c0_i32_1 = arith.constant 0 : i32
    return %c0_i32, %c0_i32_0 : i32, i32
  }
  func.func @transform_7(%arg0: i32) -> (i32, i32, i32) {
    %c0_i32 = arith.constant 0 : i32
    %c0_i32_0 = arith.constant 0 : i32
    %c0_i32_1 = arith.constant 0 : i32
    %c0_i32_2 = arith.constant 0 : i32
    return %c0_i32, %c0_i32_0, %c0_i32_1 : i32, i32, i32
  }
  func.func @transform_8(%arg0: i32) -> (i32, i32) {
    %c0_i32 = arith.constant 0 : i32
    %c0_i32_0 = arith.constant 0 : i32
    %c0_i32_1 = arith.constant 0 : i32
    return %c0_i32, %c0_i32_0 : i32, i32
  }
  func.func @transform_9(%arg0: i32) -> (i32, i32, i32) {
    %c0_i32 = arith.constant 0 : i32
    %c0_i32_0 = arith.constant 0 : i32
    %c0_i32_1 = arith.constant 0 : i32
    %c0_i32_2 = arith.constant 0 : i32
    return %c0_i32, %c0_i32_0, %c0_i32_1 : i32, i32, i32
  }
  func.func @transform_10(%arg0: i32) -> (i32, i32) {
    %c0_i32 = arith.constant 0 : i32
    %c0_i32_0 = arith.constant 0 : i32
    %c0_i32_1 = arith.constant 0 : i32
    return %c0_i32, %c0_i32_0 : i32, i32
  }
  func.func @transform_11(%arg0: i32) -> (i32, i32) {
    %c0_i32 = arith.constant 0 : i32
    %c0_i32_0 = arith.constant 0 : i32
    %c0_i32_1 = arith.constant 0 : i32
    return %c0_i32, %c0_i32_0 : i32, i32
  }
  func.func @transform_12(%arg0: i32) -> (i32, i32) {
    %c0_i32 = arith.constant 0 : i32
    %c0_i32_0 = arith.constant 0 : i32
    %c0_i32_1 = arith.constant 0 : i32
    return %c0_i32, %c0_i32_0 : i32, i32
  }
  func.func @transform_13(%arg0: i32) -> (i32, i32, i32) {
    %c0_i32 = arith.constant 0 : i32
    %c0_i32_0 = arith.constant 0 : i32
    %c0_i32_1 = arith.constant 0 : i32
    return %arg0, %c0_i32, %c0_i32_0 : i32, i32, i32
  }
}

module attributes {stable_mosaic.version = 11 : i64} {
  func.func @_mlp_heads_kernel(%arg0: memref<2x256xf32, #tpu.memory_space<vmem>>, %arg1: memref<256x256xbf16, #tpu.memory_space<vmem>>, %arg2: memref<2x256xf32, #tpu.memory_space<vmem>>, %arg3: memref<256x128xbf16, #tpu.memory_space<vmem>>, %arg4: memref<2x128xf32, #tpu.memory_space<vmem>>, %arg5: memref<128x128xbf16, #tpu.memory_space<vmem>>, %arg6: memref<2x128xf32, #tpu.memory_space<vmem>>, %arg7: memref<128x32xbf16, #tpu.memory_space<vmem>>, %arg8: memref<1x32xf32, #tpu.memory_space<vmem>>, %arg9: memref<2x32xf32, #tpu.memory_space<vmem>>) attributes {dimension_semantics = [], scalar_prefetch = 0 : i64, scratch_operands = 0 : i64, tpu.core_type = #tpu.core_type<tc>} {
    %c0 = arith.constant 0 : index
    %c0_0 = arith.constant 0 : index
    %0 = vector.load %arg0[%c0, %c0_0] : memref<2x256xf32, #tpu.memory_space<vmem>>, vector<2x256xf32>
    %1 = arith.truncf %0 : vector<2x256xf32> to vector<2x256xbf16>
    %c0_1 = arith.constant 0 : index
    %c0_2 = arith.constant 0 : index
    %2 = vector.load %arg1[%c0_1, %c0_2] : memref<256x256xbf16, #tpu.memory_space<vmem>>, vector<256x256xbf16>
    %cst = arith.constant dense<0.000000e+00> : vector<2x256xf32>
    %3 = tpu.matmul %1, %2, %cst {dimension_numbers = #tpu.dot_dimension_numbers<[1], [0], [0], [1], [0, 0, 1, 1], [], []>} : vector<2x256xbf16>, vector<256x256xbf16>, vector<2x256xf32> -> vector<2x256xf32>
    %c0_3 = arith.constant 0 : index
    %c0_4 = arith.constant 0 : index
    %4 = vector.load %arg2[%c0_3, %c0_4] : memref<2x256xf32, #tpu.memory_space<vmem>>, vector<1x256xf32>
    %5 = vector.broadcast %4 : vector<1x256xf32> to vector<2x256xf32>
    %6 = arith.mulf %3, %5 : vector<2x256xf32>
    %c1 = arith.constant 1 : index
    %c0_5 = arith.constant 0 : index
    %7 = vector.load %arg2[%c1, %c0_5] : memref<2x256xf32, #tpu.memory_space<vmem>>, vector<1x256xf32>
    %8 = vector.broadcast %7 : vector<1x256xf32> to vector<2x256xf32>
    %9 = arith.addf %6, %8 : vector<2x256xf32>
    %cst_6 = arith.constant 0.000000e+00 : f32
    %10 = vector.broadcast %cst_6 : f32 to vector<2x256xf32>
    %11 = arith.maximumf %9, %10 : vector<2x256xf32>
    %12 = arith.truncf %11 : vector<2x256xf32> to vector<2x256xbf16>
    %c0_7 = arith.constant 0 : index
    %c0_8 = arith.constant 0 : index
    %13 = vector.load %arg3[%c0_7, %c0_8] : memref<256x128xbf16, #tpu.memory_space<vmem>>, vector<256x128xbf16>
    %cst_9 = arith.constant dense<0.000000e+00> : vector<2x128xf32>
    %14 = tpu.matmul %12, %13, %cst_9 {dimension_numbers = #tpu.dot_dimension_numbers<[1], [0], [0], [1], [0, 0, 1, 1], [], []>} : vector<2x256xbf16>, vector<256x128xbf16>, vector<2x128xf32> -> vector<2x128xf32>
    %c0_10 = arith.constant 0 : index
    %c0_11 = arith.constant 0 : index
    %15 = vector.load %arg4[%c0_10, %c0_11] : memref<2x128xf32, #tpu.memory_space<vmem>>, vector<1x128xf32>
    %16 = vector.broadcast %15 : vector<1x128xf32> to vector<2x128xf32>
    %17 = arith.mulf %14, %16 : vector<2x128xf32>
    %c1_12 = arith.constant 1 : index
    %c0_13 = arith.constant 0 : index
    %18 = vector.load %arg4[%c1_12, %c0_13] : memref<2x128xf32, #tpu.memory_space<vmem>>, vector<1x128xf32>
    %19 = vector.broadcast %18 : vector<1x128xf32> to vector<2x128xf32>
    %20 = arith.addf %17, %19 : vector<2x128xf32>
    %cst_14 = arith.constant 0.000000e+00 : f32
    %21 = vector.broadcast %cst_14 : f32 to vector<2x128xf32>
    %22 = arith.maximumf %20, %21 : vector<2x128xf32>
    %23 = arith.truncf %22 : vector<2x128xf32> to vector<2x128xbf16>
    %c0_15 = arith.constant 0 : index
    %c0_16 = arith.constant 0 : index
    %24 = vector.load %arg5[%c0_15, %c0_16] : memref<128x128xbf16, #tpu.memory_space<vmem>>, vector<128x128xbf16>
    %cst_17 = arith.constant dense<0.000000e+00> : vector<2x128xf32>
    %25 = tpu.matmul %23, %24, %cst_17 {dimension_numbers = #tpu.dot_dimension_numbers<[1], [0], [0], [1], [0, 0, 1, 1], [], []>} : vector<2x128xbf16>, vector<128x128xbf16>, vector<2x128xf32> -> vector<2x128xf32>
    %c0_18 = arith.constant 0 : index
    %c0_19 = arith.constant 0 : index
    %26 = vector.load %arg6[%c0_18, %c0_19] : memref<2x128xf32, #tpu.memory_space<vmem>>, vector<1x128xf32>
    %27 = vector.broadcast %26 : vector<1x128xf32> to vector<2x128xf32>
    %28 = arith.mulf %25, %27 : vector<2x128xf32>
    %c1_20 = arith.constant 1 : index
    %c0_21 = arith.constant 0 : index
    %29 = vector.load %arg6[%c1_20, %c0_21] : memref<2x128xf32, #tpu.memory_space<vmem>>, vector<1x128xf32>
    %30 = vector.broadcast %29 : vector<1x128xf32> to vector<2x128xf32>
    %31 = arith.addf %28, %30 : vector<2x128xf32>
    %cst_22 = arith.constant 0.000000e+00 : f32
    %32 = vector.broadcast %cst_22 : f32 to vector<2x128xf32>
    %33 = arith.maximumf %31, %32 : vector<2x128xf32>
    %34 = arith.truncf %33 : vector<2x128xf32> to vector<2x128xbf16>
    %c0_23 = arith.constant 0 : index
    %c0_24 = arith.constant 0 : index
    %35 = vector.load %arg7[%c0_23, %c0_24] : memref<128x32xbf16, #tpu.memory_space<vmem>>, vector<128x32xbf16>
    %cst_25 = arith.constant dense<0.000000e+00> : vector<2x32xf32>
    %36 = tpu.matmul %34, %35, %cst_25 {dimension_numbers = #tpu.dot_dimension_numbers<[1], [0], [0], [1], [0, 0, 1, 1], [], []>} : vector<2x128xbf16>, vector<128x32xbf16>, vector<2x32xf32> -> vector<2x32xf32>
    %c0_26 = arith.constant 0 : index
    %c0_27 = arith.constant 0 : index
    %37 = vector.load %arg8[%c0_26, %c0_27] : memref<1x32xf32, #tpu.memory_space<vmem>>, vector<1x32xf32>
    %38 = vector.broadcast %37 : vector<1x32xf32> to vector<2x32xf32>
    %39 = arith.addf %36, %38 : vector<2x32xf32>
    %c0_28 = arith.constant 0 : index
    %c0_29 = arith.constant 0 : index
    %40 = vector.load %arg9[%c0_28, %c0_29] : memref<2x32xf32, #tpu.memory_space<vmem>>, vector<2x32xf32>
    tpu.vector_store %arg9[%c0_28, %c0_29], %39 {strides = array<i32>} : memref<2x32xf32, #tpu.memory_space<vmem>>, vector<2x32xf32>,
    return
  }
}

</mosaic_0001>

<bundles_post_ra>
// kernel: encoder_forward.3
= control target key start
LH: loop header
LB: loop body
LE: loop exit
PB: predicated region body
PF: predicated region fallthrough
CT: control target
= control target key end

     0   :  { %v963_v52 = vmov 0.0   ;;  %v282_v53 = vlaneseq  ;;  %vm964_vm0 = vmmov 0   ;;  %vm724_vm1 = vcmask 254976   ;;  %s1258_s1 = inlined_call_operand.vmem [shape: bf16[256,256], index: 1, kind: input, shape index: {}]   ;;  %s1259_s0 = inlined_call_operand.vmem [shape: f32[2,256], index: 0, kind: input, shape index: {}]   ;;  %s1260_s3 = inlined_call_operand.vmem [shape: bf16[256,128], index: 3, kind: input, shape index: {}]   ;;  %s1261_s5 = inlined_call_operand.vmem [shape: bf16[128,128], index: 5, kind: input, shape index: {}]   ;;  %s1262_s2 = inlined_call_operand.vmem [shape: f32[2,256], index: 2, kind: input, shape index: {}]   ;;  %s1263_s7 = inlined_call_operand.vmem [shape: bf16[128,32], index: 7, kind: input, shape index: {}]   ;;  %s1264_s4 = inlined_call_operand.vmem [shape: f32[2,128], index: 4, kind: input, shape index: {}]   ;;  %s1265_s6 = inlined_call_operand.vmem [shape: f32[2,128], index: 6, kind: input, shape index: {}]   ;;  %s1266_s8 = inlined_call_operand.vmem [shape: f32[1,32], index: 8, kind: input, shape index: {}]   ;;  %s1267_s9 = inlined_call_operand.vmem [shape: f32[2,32], index: 9, kind: output, shape index: {}]  }
   0x1   :  { %v883_v0 = vld [vmem:[%s1258_s1 + $0x4] ss:$8 sps:$4 sm:$0xff]   ;;  %v885_v1 = vld [vmem:[%s1258_s1] ss:$8 sps:$4 sm:$0xff]   ;;  %v886_v2 = vld [vmem:[%s1258_s1 + $0x14] ss:$8 sps:$4 sm:$0xff]  }
   0x2   :  { %239 = vmatprep.subr.bf16.mxu0 %v883_v0  ;;  %v888_v3 = vld [vmem:[%s1258_s1 + $0x10] ss:$8 sps:$4 sm:$0xff]   ;;  %v889_v4 = vld [vmem:[%s1258_s1 + $0x24] ss:$8 sps:$4 sm:$0xff]   ;;  %v891_v5 = vld [vmem:[%s1258_s1 + $0x20] ss:$8 sps:$4 sm:$0xff]  }
   0x3   :  { %240 = vmatpush1.bf16.msra.mxu0 %v885_v1  ;;  %v892_v6 = vld [vmem:[%s1258_s1 + $0x34] ss:$8 sps:$4 sm:$0xff]   ;;  %v894_v7 = vld [vmem:[%s1258_s1 + $0x30] ss:$8 sps:$4 sm:$0xff]   ;;  %v895_v8 = vld [vmem:[%s1258_s1 + $0x44] ss:$8 sps:$4 sm:$0xff]  }
   0x4   :  { %241 = vmatprep.subr.bf16.mxu0 %v886_v2  ;;  %v897_v9 = vld [vmem:[%s1258_s1 + $0x40] ss:$8 sps:$4 sm:$0xff]   ;;  %v898_v10 = vld [vmem:[%s1258_s1 + $0x54] ss:$8 sps:$4 sm:$0xff]   ;;  %v900_v11 = vld [vmem:[%s1258_s1 + $0x50] ss:$8 sps:$4 sm:$0xff]  }
   0x5   :  { %v901_v12 = vld [vmem:[%s1258_s1 + $0x64] ss:$8 sps:$4 sm:$0xff]   ;;  %v903_v13 = vld [vmem:[%s1258_s1 + $0x60] ss:$8 sps:$4 sm:$0xff]   ;;  %v904_v15 = vld [vmem:[%s1258_s1 + $0x74] ss:$8 sps:$4 sm:$0xff]  }
   0x6   :  { %v1060_v14 = vld.sshfl [vmem:[%s1259_s0] sm:$0x33 pattern:$0x76325410]  ;;  %v933_v20 = vld [vmem:[%s1260_s3 + $0x48] sm:$0xff]   ;;  %v935_v22 = vld [vmem:[%s1260_s3 + $0x50] sm:$0xff]  }
   0x7   :  { %242 = vmatpush1.bf16.msra.mxu0 %v888_v3  ;;  %v42_v16 = vcombine.high %v1060_v14, %v1060_v14  ;;  %v931_v17 = vld [vmem:[%s1260_s3 + $0x40] sm:$0xff]   ;;  %v934_v21 = vld [vmem:[%s1260_s3 + $0x8] sm:$0xff]   ;;  %v906_v23 = vld [vmem:[%s1258_s1 + $0x70] ss:$8 sps:$4 sm:$0xff]   ;;  %v45_v46 = vpack.c.bf16 %v1060_v14, %v1060_v14  ;;  %v283_v54 = vshrl.u32 %v282_v53, 7 }
   0x8   :  { %243 = vmatprep.subr.bf16.mxu0 %v889_v4  ;;  %v932_v18 = vld [vmem:[%s1260_s3] sm:$0xff]   ;;  %801 = vmatprep.subr.bf16.mxu1 %v931_v17  ;;  %v936_v26 = vld [vmem:[%s1260_s3 + $0x10] sm:$0xff]   ;;  %v937_v28 = vld [vmem:[%s1260_s3 + $0x58] sm:$0xff]  }
   0x9   :  { %v46_v19 = vpack.c.bf16 %v42_v16, %v42_v16  ;;  %802 = vmatpush3.bf16.msra.mxu1 %v932_v18  ;;  %v907_v24 = vld [vmem:[%s1258_s1 + $0x84] ss:$8 sps:$4 sm:$0xff]   ;;  %v909_v25 = vld [vmem:[%s1258_s1 + $0x80] ss:$8 sps:$4 sm:$0xff]   ;;  %v910_v27 = vld [vmem:[%s1258_s1 + $0x94] ss:$8 sps:$4 sm:$0xff]  }
   0xa   :  { %803 = vmatprep.subr.bf16.mxu1 %v933_v20  ;;  %v938_v29 = vld [vmem:[%s1260_s3 + $0x18] sm:$0xff]   ;;  %v939_v30 = vld [vmem:[%s1260_s3 + $0x60] sm:$0xff]   ;;  %v941_v34 = vld [vmem:[%s1260_s3 + $0x68] sm:$0xff]   ;;  %v284_v55 = vsub.s32 0, %v283_v54  ;;  %v288_v57 = vsub.s32 1, %v283_v54 }
   0xb   :  { %244 = vmatpush1.bf16.msra.mxu0 %v891_v5  ;;  %271 = vmatprep.mubr.bf16.mxu0 %v46_v19  ;;  %v912_v31 = vld [vmem:[%s1258_s1 + $0x90] ss:$8 sps:$4 sm:$0xff]   ;;  %v913_v32 = vld [vmem:[%s1258_s1 + $0xa4] ss:$8 sps:$4 sm:$0xff]   ;;  %v915_v35 = vld [vmem:[%s1258_s1 + $0xa0] ss:$8 sps:$4 sm:$0xff]  }
   0xc   :  { %245 = vmatprep.subr.bf16.mxu0 %v892_v6  ;;  %v940_v33 = vld [vmem:[%s1260_s3 + $0x20] sm:$0xff]   ;;  %v916_v36 = vld [vmem:[%s1258_s1 + $0xb4] ss:$8 sps:$4 sm:$0xff]   ;;  %v918_v37 = vld [vmem:[%s1258_s1 + $0xb0] ss:$8 sps:$4 sm:$0xff]  }
   0xd   :  { %804 = vmatpush3.bf16.msra.mxu1 %v934_v21  ;;  %v919_v38 = vld [vmem:[%s1258_s1 + $0xc4] ss:$8 sps:$4 sm:$0xff]   ;;  %v921_v39 = vld [vmem:[%s1258_s1 + $0xc0] ss:$8 sps:$4 sm:$0xff]   ;;  %v922_v40 = vld [vmem:[%s1258_s1 + $0xd4] ss:$8 sps:$4 sm:$0xff]  }
   0xe   :  { %805 = vmatprep.subr.bf16.mxu1 %v935_v22  ;;  %v924_v41 = vld [vmem:[%s1258_s1 + $0xd0] ss:$8 sps:$4 sm:$0xff]   ;;  %v925_v42 = vld [vmem:[%s1258_s1 + $0xe4] ss:$8 sps:$4 sm:$0xff]   ;;  %v927_v43 = vld [vmem:[%s1258_s1 + $0xe0] ss:$8 sps:$4 sm:$0xff]  }
   0xf   :  { %246 = vmatpush1.bf16.msra.mxu0 %v894_v7  ;;  %v928_v44 = vld [vmem:[%s1258_s1 + $0xf4] ss:$8 sps:$4 sm:$0xff]   ;;  %v930_v45 = vld [vmem:[%s1258_s1 + $0xf0] ss:$8 sps:$4 sm:$0xff]   ;;  %v942_v47 = vld [vmem:[%s1260_s3 + $0x28] sm:$0xff]  }
  0x10   :  { %247 = vmatprep.subr.bf16.mxu0 %v895_v8  ;;  %v943_v48 = vld [vmem:[%s1260_s3 + $0x70] sm:$0xff]   ;;  %v945_v50 = vld [vmem:[%s1260_s3 + $0x78] sm:$0xff]   ;;  %v280_v56 = vld [vmem:[%s1262_s2] ss:$2 sm:$0x3] }
  0x11   :  { %806 = vmatpush3.bf16.msra.mxu1 %v936_v26  ;;  %v944_v49 = vld [vmem:[%s1260_s3 + $0x30] sm:$0xff]   ;;  %v946_v51 = vld [vmem:[%s1260_s3 + $0x38] sm:$0xff]   ;;  %v763_v58 = vld [vmem:[%s1262_s2 + $0x1] ss:$2 sm:$0x3]  ;;  %v285_v59 = vrot.slane %v280_v56, %v284_v55  ;;  %v289_v60 = vrot.slane %v280_v56, %v288_v57 }
  0x12   :  { %807 = vmatprep.subr.bf16.mxu1 %v937_v28  ;;  %v300_v61 = vrot.slane %v763_v58, %v284_v55  ;;  %v304_v63 = vrot.slane %v763_v58, %v288_v57  ;;  %v950_v14 = vld [vmem:[%s1261_s5 + $0x18] sm:$0xff]   ;;  %v952_v16 = vld [vmem:[%s1261_s5 + $0x28] sm:$0xff]   ;;  %v953_v17 = vld [vmem:[%s1261_s5 + $0x30] sm:$0xff]  }
  0x13   :  { %248 = vmatpush1.bf16.msra.mxu0 %v897_v9  ;;  %v954_v18 = vld [vmem:[%s1261_s5 + $0x38] sm:$0xff]   ;;  %v955_v19 = vld [vmem:[%s1263_s7] sm:$0xff]   ;;  %v956_v20 = vld [vmem:[%s1263_s7 + $0x8] sm:$0xff]  }
  0x14   :  { %249 = vmatprep.subr.bf16.mxu0 %v898_v10  ;;  %v947_v10 = vld [vmem:[%s1261_s5] sm:$0xff]   ;;  %v957_v21 = vld [vmem:[%s1263_s7 + $0x10] sm:$0xff]   ;;  %v958_v22 = vld [vmem:[%s1263_s7 + $0x18] sm:$0xff]  }
  0x15   :  { %808 = vmatpush3.bf16.msra.mxu1 %v938_v29 }
  0x16   :  { %809 = vmatprep.subr.bf16.mxu1 %v939_v30  ;;  %v781_v30 = vld [vmem:[%s1264_s4 + $0x1] ss:$0 sm:$0xff] }
  0x17   :  { %250 = vmatpush1.bf16.msra.mxu0 %v900_v11 }
  0x18   :  { %251 = vmatprep.subr.bf16.mxu0 %v901_v12  ;;  %v948_v12 = vld [vmem:[%s1261_s5 + $0x8] sm:$0xff]  }
  0x19   :  { %810 = vmatpush3.bf16.msra.mxu1 %v940_v33 }
  0x1a   :  { %811 = vmatprep.subr.bf16.mxu1 %v941_v34 }
  0x1b   :  { %252 = vmatpush1.bf16.msra.mxu0 %v903_v13  ;;  %v949_v13 = vld [vmem:[%s1261_s5 + $0x10] sm:$0xff]  }
  0x1c   :  { %253 = vmatprep.subr.bf16.mxu0 %v904_v15  ;;  %v951_v15 = vld [vmem:[%s1261_s5 + $0x20] sm:$0xff]  }
  0x1d   :  { %812 = vmatpush3.bf16.msra.mxu1 %v942_v47 }
  0x1e   :  { %813 = vmatprep.subr.bf16.mxu1 %v943_v48  ;;  %v792_v48 = vld [vmem:[%s1266_s8] ss:$0 sm:$0xff] }
  0x1f   :  { %254 = vmatpush1.bf16.msra.mxu0 %v906_v23  ;;  %v959_v23 = vld [vmem:[%s1263_s7 + $0x20] sm:$0xff]  }
  0x20   :  { %255 = vmatprep.subr.bf16.mxu0 %v907_v24  ;;  %v960_v24 = vld [vmem:[%s1263_s7 + $0x28] sm:$0xff]  }
  0x21   :  { %814 = vmatpush3.bf16.msra.mxu1 %v944_v49 }
  0x22   :  { %815 = vmatprep.subr.bf16.mxu1 %v945_v50 }
  0x23   :  { %256 = vmatpush1.bf16.msra.mxu0 %v909_v25 }
  0x24   :  { %257 = vmatprep.subr.bf16.mxu0 %v910_v27  ;;  %v780_v27 = vld [vmem:[%s1264_s4] ss:$0 sm:$0xff] }
  0x25   :  { %816 = vmatpush3.bf16.msra.mxu1 %v946_v51 }
  0x26   :  { %841 = vmatprep.subr.bf16.mxu1 %v963_v52 }
  0x27   :  { %258 = vmatpush1.bf16.msra.mxu0 %v912_v31 }
  0x28   :  { %259 = vmatprep.subr.bf16.mxu0 %v913_v32 }
  0x2b   :  { %260 = vmatpush1.bf16.msra.mxu0 %v915_v35 }
  0x2c   :  { %261 = vmatprep.subr.bf16.mxu0 %v916_v36  ;;  %v961_v36 = vld [vmem:[%s1263_s7 + $0x30] sm:$0xff]  }
  0x2f   :  { %262 = vmatpush1.bf16.msra.mxu0 %v918_v37  ;;  %v962_v37 = vld [vmem:[%s1263_s7 + $0x38] sm:$0xff]  }
  0x30   :  { %263 = vmatprep.subr.bf16.mxu0 %v919_v38  ;;  %v790_v38 = vld [vmem:[%s1265_s6] ss:$0 sm:$0xff] }
  0x33   :  { %264 = vmatpush1.bf16.msra.mxu0 %v921_v39 }
  0x34   :  { %265 = vmatprep.subr.bf16.mxu0 %v922_v40  ;;  %v791_v40 = vld [vmem:[%s1265_s6 + $0x1] ss:$0 sm:$0xff] }
  0x37   :  { %266 = vmatpush1.bf16.msra.mxu0 %v924_v41 }
  0x38   :  { %267 = vmatprep.subr.bf16.mxu0 %v925_v42 }
  0x3b   :  { %268 = vmatpush1.bf16.msra.mxu0 %v927_v43 }
  0x3c   :  { %269 = vmatprep.subr.bf16.mxu0 %v928_v44 }
  0x3f   :  { %270 = vmatpush1.bf16.msra.mxu0 %v930_v45 }
  0x40   :  { %861 = vmatprep.subr.bf16.mxu0 %v963_v52 }
  0x42   :  { %272 = vmatmul.mubr.bf16.vlgmr.msra.gmra.mrb[0].mxu0 %v45_v46 }
  0x43   :  { %877 = vmatprep.mubr.msk.bf16.mxu0 %vm964_vm0, %v963_v52  ;;  %862 = vmatpush3.bf16.msra.mxu0 %v955_v19 }
  0x44   :  { %863 = vmatprep.subr.bf16.mxu0 %v963_v52 }
  0x47   :  { %864 = vmatpush3.bf16.msra.mxu0 %v956_v20 }
  0x48   :  { %865 = vmatprep.subr.bf16.mxu0 %v963_v52 }
  0x4b   :  { %866 = vmatpush3.bf16.msra.mxu0 %v957_v21 }
  0x4c   :  { %867 = vmatprep.subr.bf16.mxu0 %v963_v52 }
  0x4f   :  { %868 = vmatpush3.bf16.msra.mxu0 %v958_v22 }
  0x50   :  { %869 = vmatprep.subr.bf16.mxu0 %v963_v52 }
  0x53   :  { %870 = vmatpush3.bf16.msra.mxu0 %v959_v23 }
  0x54   :  { %871 = vmatprep.subr.bf16.mxu0 %v963_v52 }
  0x57   :  { %872 = vmatpush3.bf16.msra.mxu0 %v960_v24 }
  0x58   :  { %873 = vmatprep.subr.bf16.mxu0 %v963_v52 }
  0x5b   :  { %874 = vmatpush3.bf16.msra.mxu0 %v961_v36 }
  0x5c   :  { %875 = vmatprep.subr.bf16.mxu0 %v963_v52 }
  0x5f   :  { %876 = vmatpush3.bf16.msra.mxu0 %v962_v37 }
 0x115   :  { %v273_v62 = vpop.f32.mrb[0].mxu0 }
 0x116   :  { %v292_v0 = vmul.f32 %v285_v59, %v273_v62  ;;  %v275_v1 = vpop.f32.mrb[1].mxu0 }
 0x117   :  { %v293_v2 = vmul.f32 %v289_v60, %v275_v1  ;;  %v277_v3 = vpop.f32.mrb[2].mxu0 }
 0x118   :  { %v307_v4 = vadd.f32 %v300_v61, %v292_v0  ;;  %v278_v5 = vpop.f32.mrb[3].mxu0 }
 0x119   :  { %v308_v6 = vadd.f32 %v304_v63, %v293_v2 }
 0x11a   :  { %v309_v7 = vmax.f32 %v307_v4, 0.0 }
 0x11b   :  { %v310_v8 = vmax.f32 %v308_v6, 0.0 }
 0x11c   :  { %v311_v11 = vpack.c.bf16 %v309_v7, %v309_v7 }
 0x11d   :  { %v312_v9 = vpack.c.bf16 %v310_v8, %v310_v8 }
 0x11f   :  { %473 = vmatprep.mubr.bf16.mxu1 %v312_v9 }
 0x120   :  { %474 = vmatmul.mubr.bf16.vlgmr.msra.gmra.mrb[0].mxu1 %v311_v11 }
 0x121   :  { %842 = vmatpush3.bf16.msra.mxu1 %v947_v10  ;;  %857 = vmatprep.mubr.msk.bf16.mxu1 %vm964_vm0, %v963_v52 }
 0x122   :  { %843 = vmatprep.subr.bf16.mxu1 %v963_v52 }
 0x125   :  { %844 = vmatpush3.bf16.msra.mxu1 %v948_v12 }
 0x126   :  { %845 = vmatprep.subr.bf16.mxu1 %v963_v52 }
 0x129   :  { %846 = vmatpush3.bf16.msra.mxu1 %v949_v13 }
 0x12a   :  { %847 = vmatprep.subr.bf16.mxu1 %v963_v52 }
 0x12d   :  { %848 = vmatpush3.bf16.msra.mxu1 %v950_v14 }
 0x12e   :  { %849 = vmatprep.subr.bf16.mxu1 %v963_v52 }
 0x131   :  { %850 = vmatpush3.bf16.msra.mxu1 %v951_v15 }
 0x132   :  { %851 = vmatprep.subr.bf16.mxu1 %v963_v52 }
 0x135   :  { %852 = vmatpush3.bf16.msra.mxu1 %v952_v16 }
 0x136   :  { %853 = vmatprep.subr.bf16.mxu1 %v963_v52 }
 0x139   :  { %854 = vmatpush3.bf16.msra.mxu1 %v953_v17 }
 0x13a   :  { %855 = vmatprep.subr.bf16.mxu1 %v963_v52 }
 0x13d   :  { %856 = vmatpush3.bf16.msra.mxu1 %v954_v18 }
 0x1f3   :  { %v817_v25 = vpop.f32.mrb[0].mxu1 }
 0x1f4   :  { %v818_v26 = vpop.f32.mrb[1].mxu1 }
 0x1f5   :  { %v819_v28 = vadd.f32 %v818_v26, %v817_v25  ;;  %v820_v29 = vpop.f32.mrb[2].mxu1 }
 0x1f6   :  { %v821_v31 = vpop.f32.mrb[3].mxu1 }
 0x1f7   :  { %v486_v32 = vmul.f32 %v819_v28, %v780_v27 }
 0x1f9   :  { %v492_v33 = vadd.f32 %v781_v30, %v486_v32 }
 0x1fb   :  { %v493_v34 = vmax.f32 %v492_v33, 0.0 }
 0x1fd   :  { %v494_v35 = vpack.c.bf16 %v493_v34, %v493_v34 }
 0x1ff   :  { %858 = vmatmul.mubr.bf16.vlgmr.msra.gmra.mrb[4].mxu1 %v494_v35 }
 0x2d2   :  { %v593_v39 = vpop.f32.mrb[4].mxu1 }
 0x2d3   :  { %v604_v41 = vmul.f32 %v790_v38, %v593_v39  ;;  %v859_v42 = vpop.f32.mrb[5].mxu1 }
 0x2d4   :  { %v596_v43 = vpop.f32.mrb[6].mxu1 }
 0x2d5   :  { %v610_v44 = vadd.f32 %v791_v40, %v604_v41  ;;  %v860_v45 = vpop.f32.mrb[7].mxu1 }
 0x2d7   :  { %v611_v46 = vmax.f32 %v610_v44, 0.0 }
 0x2d9   :  { %v612_v47 = vpack.c.bf16 %v611_v46, %v611_v46 }
 0x2db   :  { %878 = vmatmul.mubr.bf16.vlgmr.msra.gmra.mrb[4].mxu0 %v612_v47 }
 0x3ae   :  { %v718_v49 = vpop.f32.mrb[4].mxu0 }
 0x3af   :  { %v719_v50 = vadd.f32 %v792_v48, %v718_v49  ;;  %v879_v51 = vpop.f32.mrb[5].mxu0 }
 0x3b0   :  { %v721_v52 = vpop.f32.mrb[6].mxu0 }
 0x3b1   :  { %725 = vst.msk [vmem:[%s1267_s9] sm:$0x3] %vm724_vm1, %v719_v50  ;;  %v880_v53 = vpop.f32.mrb[7].mxu0 }

// kernel: encoder_forward.2
= control target key start
LH: loop header
LB: loop body
LE: loop exit
PB: predicated region body
PF: predicated region fallthrough
CT: control target
= control target key end

     0   :  { %s11614_s25 = smov 0   ;;  %s14524_s0 = inlined_call_operand.vmem [shape: f32[2,24,72], index: 0, kind: input, shape index: {}]   ;;  %s14525_s1 = inlined_call_operand.vmem [shape: bf16[5,72,320], index: 1, kind: input, shape index: {}]   ;;  %s14526_s2 = inlined_call_operand.vmem [shape: f32[2,320], index: 2, kind: input, shape index: {}]   ;;  %s14527_s3 = inlined_call_operand.vmem [shape: bf16[5,320,512], index: 3, kind: input, shape index: {}]   ;;  %s14528_s4 = inlined_call_operand.vmem [shape: f32[2,512], index: 4, kind: input, shape index: {}]   ;;  %s14529_s5 = inlined_call_operand.vmem [shape: bf16[8,15], index: 5, kind: input, shape index: {}]   ;;  %s14530_s6 = inlined_call_operand.vmem [shape: bf16[480,256], index: 6, kind: input, shape index: {}]   ;;  %s14531_s7 = inlined_call_operand.vmem [shape: bf16[3,256,384], index: 7, kind: input, shape index: {}]   ;;  %s14532_s8 = inlined_call_operand.vmem [shape: f32[2,384], index: 8, kind: input, shape index: {}]   ;;  %s14533_s9 = inlined_call_operand.vmem [shape: bf16[3,384,256], index: 9, kind: input, shape index: {}]   ;;  %s14534_s10 = inlined_call_operand.vmem [shape: f32[2,256], index: 10, kind: input, shape index: {}]   ;;  %s14535_s11 = inlined_call_operand.vmem [shape: bf16[2,3], index: 11, kind: input, shape index: {}]   ;;  %s14536_s12 = inlined_call_operand.vmem [shape: bf16[192,128], index: 12, kind: input, shape index: {}]   ;;  %s14537_s13 = inlined_call_operand.vmem [shape: f32[2,1,256], index: 13, kind: output, shape index: {}]  }
   0x1 LB: > { %s8455_s26 = sadd.s32 4294967295, %s11537_s25   ;;  %p8459_p0 = scmp.ge.s32.totalorder %s11537_s25, 1  ;;  %s11537_s25 = sphi %s11614_s25, %s23_s25  }
   0x2   : > { %p387_p1 = scmp.lt.s32.totalorder %s11537_s25, 3 }
   0x4   : > { %p388_p2 = pnand %p8459_p0, %p387_p1 }
   0x5   : > { %v10326_v0 = vld [vmem:[%s14525_s1 + $0x70] ss:$12 sps:$4 sm:$0xff] (!%p388_p2)   ;;  %v10328_v1 = vld [vmem:[%s14525_s1 + $0x74] ss:$12 sps:$4 sm:$0xff] (!%p388_p2)   ;;  %v11539_v2 = vmov (!%p388_p2), 0   ;;  %p430_p3 = scmp.lt.s32.totalorder (!%p388_p2), %s8455_s26, 1 }
   0x6   : > { %391 = sbr.rel (%p388_p2) target bundleno = 3029 (0xbd5), region = 72  ;;  %619 = vmatprep.mubr.bf16.mxu0 (!%p388_p2), %v11539_v2  ;;  %587 = vmatprep.subr.bf16.mxu0 (!%p388_p2), %v10326_v0  ;;  %v10329_v3 = vld [vmem:[%s14525_s1 + $0x6c] ss:$12 sps:$4 sm:$0xff] (!%p388_p2)   ;;  %v10330_v4 = vld [vmem:[%s14525_s1 + $0x88] ss:$12 sps:$4 sm:$0xff] (!%p388_p2)   ;;  %vm577_vm0 = vcmask (!%p388_p2), 1043456  }
   0x7   : > { %10060 = vmatprep.subr.bf16.mxu1 (!%p388_p2), %v10328_v1  ;;  %588 = vmatpush1.bf16.msra.mxu0 (!%p388_p2), %v10329_v3  ;;  %v10332_v5 = vld [vmem:[%s14525_s1 + $0x8c] ss:$12 sps:$4 sm:$0xff] (!%p388_p2)   ;;  %v10333_v6 = vld [vmem:[%s14525_s1 + $0x84] ss:$12 sps:$4 sm:$0xff] (!%p388_p2)   ;;  %v10337_v9 = vld [vmem:[%s14525_s1 + $0x9c] ss:$12 sps:$4 sm:$0xff] (!%p388_p2)  }
   0x8   : > { %10061 = vmatpush3.bf16.msra.mxu1 (!%p388_p2), %v10328_v1  ;;  %589 = vmatprep.subr.bf16.mxu0 (!%p388_p2), %v10330_v4  ;;  %v10334_v7 = vld [vmem:[%s14525_s1 + $0xa0] ss:$12 sps:$4 sm:$0xff] (!%p388_p2)   ;;  %v10336_v8 = vld [vmem:[%s14525_s1 + $0xa4] ss:$12 sps:$4 sm:$0xff] (!%p388_p2)   ;;  %v10340_v11 = vld [vmem:[%s14525_s1 + $0xbc] ss:$12 sps:$4 sm:$0xff] (!%p388_p2)  }
   0x9   : > { %10062 = vmatprep.subr.bf16.mxu1 (!%p388_p2), %v10332_v5  ;;  %v10338_v10 = vld [vmem:[%s14525_s1 + $0xb8] ss:$12 sps:$4 sm:$0xff] (!%p388_p2)   ;;  %v8478_v12 = vld [vmem:[%s14525_s1 + $0xcc] sm:$0xff] (!%p388_p2)  ;;  %v10341_v17 = vld [vmem:[%s14525_s1 + $0xb4] ss:$12 sps:$4 sm:$0xff] (!%p388_p2)   ;;  %vm570_vm2 = vcmask (!%p388_p2), 588800  }
   0xa   : > { %v10343_v18 = vld [vmem:[%s14525_s1 + $0xd4] ss:$0 sps:$4 sm:$0xff] (!%p388_p2)   ;;  %v8493_v20 = vcombine.high (!%p388_p2), %v8478_v12, %v8478_v12  ;;  %v8492_v21 = vcombine.low (!%p388_p2), %v8478_v12, %v8478_v12  ;;  %vm482_vm1 = vsmask.f32 (!%p388_p2), 7424  ;;  %v10347_v31 = vld [vmem:[%s14525_s1 + $0x4] ss:$12 sps:$4 sm:$0xff] (!%p388_p2)  }
   0xb   : > { %590 = vmatpush1.bf16.msra.mxu0 (!%p388_p2), %v10333_v6  ;;  %v585_v29 = vsel (!%p388_p2), %vm577_vm0, %v10343_v18, 0  ;;  %v10348_v32 = vld [vmem:[%s14525_s1 + $0x8] ss:$12 sps:$4 sm:$0xff] (!%p388_p2)   ;;  %v10345_v35 = vld [vmem:[%s14525_s1] ss:$12 sps:$4 sm:$0xff] (!%p388_p2)   ;;  %vm1331_vm3 = vcmask (!%p388_p2), 1045504  }
   0xc   : > { %10063 = vmatpush3.bf16.msra.mxu1 (!%p388_p2), %v10332_v5  ;;  %591 = vmatprep.subr.bf16.mxu0 (!%p388_p2), %v10334_v7  ;;  %v579_v28 = vsel (!%p388_p2), %vm577_vm0, %v8492_v21, 0  ;;  %v10351_v36 = vld [vmem:[%s14525_s1 + $0x1c] ss:$12 sps:$4 sm:$0xff] (!%p388_p2)   ;;  %v10352_v37 = vld [vmem:[%s14525_s1 + $0x20] ss:$12 sps:$4 sm:$0xff] (!%p388_p2)   ;;  %vm891_vm4 = vcmask (!%p388_p2), 1046528  }
   0xd   : > { %s14539_s26 = smov (!%p430_p3, %s8455_s26), 1  ;;  %10064 = vmatprep.subr.bf16.mxu1 %v10336_v8  ;;  %v10349_v39 = vld [vmem:[%s14525_s1 + $0x18] ss:$12 sps:$4 sm:$0xff]   ;;  %v10355_v41 = vld [vmem:[%s14525_s1 + $0x34] ss:$12 sps:$4 sm:$0xff]   ;;  %vm2197_vm6 = vcmask 523264  }
   0xe   : > { %s10287_s28 = smul.u32 24, %s14539_s26  ;;  %v10356_v42 = vld [vmem:[%s14525_s1 + $0x38] ss:$12 sps:$4 sm:$0xff]   ;;  %v10353_v44 = vld [vmem:[%s14525_s1 + $0x30] ss:$12 sps:$4 sm:$0xff]   ;;  %s11540_s17 = smov 96  }
   0xf   : > { %592 = vmatpush1.bf16.msra.mxu0 %v10337_v9  ;;  %v10359_v45 = vld [vmem:[%s14525_s1 + $0x4c] ss:$12 sps:$4 sm:$0xff]   ;;  %v10360_v46 = vld [vmem:[%s14525_s1 + $0x50] ss:$12 sps:$4 sm:$0xff]   ;;  %v461_v47 = vld [vmem:[%s14525_s1 + $0x60] sm:$0xff]  ;;  %vm5126_vm7 = vcmask 785408  }
  0x10   : > { %s434_s20 = scalar_lea.vmem %s14524_s0, %s10287_s28  ;;  %10065 = vmatpush3.bf16.msra.mxu1 %v10336_v8  ;;  %593 = vmatprep.subr.bf16.mxu0 %v10338_v10  ;;  %v10357_v48 = vld [vmem:[%s14525_s1 + $0x48] ss:$12 sps:$4 sm:$0xff]   ;;  %v8512_v50 = vcombine.low %v461_v47, %v461_v47  ;;  %v8513_v51 = vcombine.high %v461_v47, %v461_v47  ;;  %v10367_v55 = vld [vmem:[%s14525_s1 + $0xe0] ss:$12 sps:$4 sm:$0xff]   ;;  %v10364_v58 = vld [vmem:[%s14525_s1 + $0xd8] ss:$12 sps:$4 sm:$0xff]  }
  0x11   : > { %v440_v13 = vld [vmem:[%s434_s20] sm:$0xff]  ;;  %v441_v14 = vld [vmem:[%s434_s20 + $0x8] sm:$0xff]  ;;  %v442_v15 = vld [vmem:[%s434_s20 + $0x10] sm:$0xff]  ;;  %10066 = vmatprep.subr.bf16.mxu1 %v10340_v11  ;;  %vm1109_vm5 = vsmask.f32 6400  ;;  %vm5158_vm8 = vcmask 1047552  }
  0x12   : > { %v11665_v16 = vpack.c.bf16 %v441_v14, %v440_v13  ;;  %v11673_v19 = vpack.c.bf16 %v442_v15, %v442_v15  ;;  %v10362_v49 = vld [vmem:[%s14525_s1 + $0x68] ss:$0 sps:$4 sm:$0xff]   ;;  %v763_v52 = vsel %vm577_vm0, %v8512_v50, 0  ;;  %v10370_v59 = vld [vmem:[%s14525_s1 + $0xf4] ss:$12 sps:$4 sm:$0xff]   ;;  %v8536_v5 = vld [vmem:[%s14525_s1 + $0x138] sm:$0xff] }
  0x13   : > { %594 = vmatpush1.bf16.msra.mxu0 %v10341_v17  ;;  %v769_v53 = vsel %vm577_vm0, %v10362_v49, 0  ;;  %v10366_v54 = vld [vmem:[%s14525_s1 + $0xdc] ss:$12 sps:$4 sm:$0xff]   ;;  %v10371_v60 = vld [vmem:[%s14525_s1 + $0xf8] ss:$12 sps:$4 sm:$0xff]   ;;  %v8551_v7 = vcombine.high %v8536_v5, %v8536_v5  ;;  %v8550_v9 = vcombine.low %v8536_v5, %v8536_v5  ;;  %v8612_v50 = vld [vmem:[%s14525_s1 + $0x210] sm:$0xff] }
  0x14   : > { %v484_v22 = vshrl.u32 %v11665_v16, 16  ;;  %v486_v23 = vshll.u32 %v11665_v16, 16  ;;  %v491_v24 = vshll.u32 %v11673_v19, 16  ;;  %v495_v26 = vshrl.u32 %v11673_v19, 16  ;;  %10067 = vmatpush3.bf16.msra.mxu1 %v10340_v11  ;;  %8495 = vmatprep.subr.msk.bf16.mxu0 %vm577_vm0, %v8493_v20  ;;  %v10368_v61 = vld [vmem:[%s14525_s1 + $0xf0] ss:$12 sps:$4 sm:$0xff]  }
  0x15   : > { %10282 = vmatprep.subr.msk.bf16.mxu1 %vm577_vm0, %v10343_v18  ;;  %v1332_v38 = vrot.slane %v11665_v16, 2  ;;  %v11715_v40 = vrot.slane %v11673_v19, 2  ;;  %v892_v56 = vrot.slane %v11665_v16, 1  ;;  %v11762_v57 = vrot.slane %v11673_v19, 1  ;;  %v10374_v63 = vld [vmem:[%s14525_s1 + $0x10c] ss:$12 sps:$4 sm:$0xff]  }
  0x16   : > { %v488_v25 = vrot.slane %v486_v23, 1  ;;  %v493_v27 = vrot.slane %v491_v24, 1  ;;  %v10375_v0 = vld [vmem:[%s14525_s1 + $0x110] ss:$12 sps:$4 sm:$0xff]   ;;  %v10372_v1 = vld [vmem:[%s14525_s1 + $0x108] ss:$12 sps:$4 sm:$0xff]  }
  0x17   : > { %596 = vmatpush1.bf16.msra.mxu0 %v579_v28  ;;  %v11725_v43 = vsel %vm1331_vm3, %v1332_v38, %v11715_v40  ;;  %v894_v62 = vsel %vm891_vm4, %v892_v56, %v11762_v57  ;;  %v10378_v3 = vld [vmem:[%s14525_s1 + $0x124] ss:$12 sps:$4 sm:$0xff]   ;;  %v10379_v4 = vld [vmem:[%s14525_s1 + $0x128] ss:$12 sps:$4 sm:$0xff]   ;;  %v10376_v6 = vld [vmem:[%s14525_s1 + $0x120] ss:$12 sps:$4 sm:$0xff]  }
  0x18   : > { %v489_v30 = vor.u32 %v488_v25, %v484_v22  ;;  %v497_v34 = vor.u32 %v495_v26, %v493_v27  ;;  %10069 = vmatpush3.bf16.msra.mxu1 %v585_v29  ;;  %771 = vmatprep.subr.bf16.mxu0 %v10347_v31  ;;  %v10381_v8 = vld [vmem:[%s14525_s1 + $0x140] ss:$0 sps:$4 sm:$0xff]   ;;  %v1110_v10 = vrot.slane %v484_v22, 1  ;;  %v1114_v11 = vrot.slane %v491_v24, 2  ;;  %v10385_v14 = vld [vmem:[%s14525_s1 + $0x148] ss:$12 sps:$4 sm:$0xff]  }
  0x19   : > { %10074 = vmatprep.subr.bf16.mxu1 %v10348_v32  ;;  %v1111_v12 = vrot.slane %v486_v23, 2  ;;  %v1113_v13 = vrot.slane %v495_v26, 1  ;;  %v974_v15 = vsel %vm577_vm0, %v8550_v9, 0  ;;  %v980_v17 = vsel %vm577_vm0, %v10381_v8, 0  ;;  %v10383_v20 = vld [vmem:[%s14525_s1 + $0x144] ss:$12 sps:$4 sm:$0xff]  }
  0x1a   : > { %v494_v33 = vsel %vm482_vm1, %v489_v30, %v493_v27  ;;  %v10389_v21 = vld [vmem:[%s14525_s1 + $0x160] ss:$12 sps:$4 sm:$0xff]   ;;  %v10390_v22 = vld [vmem:[%s14525_s1 + $0x164] ss:$12 sps:$4 sm:$0xff]   ;;  %v10387_v24 = vld [vmem:[%s14525_s1 + $0x15c] ss:$12 sps:$4 sm:$0xff]  }
  0x1b   : > { %10070 = vmatprep.mubr.msk.bf16.mxu1 %vm570_vm2, %v494_v33  ;;  %8496 = vmatmul.mubr.msk.bf16.vlgmr.msra.gmra.mrb[0].mxu0 %vm570_vm2, %v494_v33  ;;  %v1112_v18 = vor.u32 %v1111_v12, %v1110_v10  ;;  %v10393_v25 = vld [vmem:[%s14525_s1 + $0x178] ss:$12 sps:$4 sm:$0xff]   ;;  %v10394_v26 = vld [vmem:[%s14525_s1 + $0x17c] ss:$12 sps:$4 sm:$0xff]   ;;  %v10391_v27 = vld [vmem:[%s14525_s1 + $0x174] ss:$12 sps:$4 sm:$0xff]  }
  0x1c   : > { %10071 = vmatmul.mubr.msk.bf16.vlgmr.msra.gmra.mrb[0].mxu1 %vm570_vm2, %v497_v34  ;;  %772 = vmatpush1.bf16.msra.mxu0 %v10345_v35  ;;  %v10397_v28 = vld [vmem:[%s14525_s1 + $0x190] ss:$12 sps:$4 sm:$0xff]   ;;  %v10398_v29 = vld [vmem:[%s14525_s1 + $0x194] ss:$12 sps:$4 sm:$0xff]   ;;  %v8574_v30 = vld [vmem:[%s14525_s1 + $0x1a4] sm:$0xff]  ;;  %vm5154_vm9 = vcmask 121856  }
  0x1d   : > { %10075 = vmatpush3.bf16.msra.mxu1 %v10348_v32  ;;  %773 = vmatprep.subr.bf16.mxu0 %v10351_v36  ;;  %v10395_v31 = vld [vmem:[%s14525_s1 + $0x18c] ss:$12 sps:$4 sm:$0xff]   ;;  %v8589_v33 = vcombine.high %v8574_v30, %v8574_v30  ;;  %v10404_v35 = vld [vmem:[%s14525_s1 + $0x1b4] ss:$12 sps:$4 sm:$0xff]   ;;  %s11542_s19 = smov 64   ;;  %vm8187_vm10 = vcmask 1040384  }
  0x1e   : > { %10076 = vmatprep.subr.bf16.mxu1 %v10352_v37  ;;  %629 = vmatprep.mubr.bf16.mxu0 %v11539_v2  ;;  %v10400_v32 = vld [vmem:[%s14525_s1 + $0x1ac] ss:$0 sps:$4 sm:$0xff]   ;;  %v10405_v36 = vld [vmem:[%s14525_s1 + $0x1b8] ss:$12 sps:$4 sm:$0xff]   ;;  %v10439_v5 = vld [vmem:[%s14527_s3 + $0x340] ss:$16 sps:$4 sm:$0xff]  }
  0x1f   : > { %10084 = vmatprep.mubr.msk.bf16.mxu1 %vm570_vm2, %v11665_v16  ;;  %v1202_v38 = vsel %vm577_vm0, %v10400_v32, 0  ;;  %v10410_v47 = vld [vmem:[%s14525_s1 + $0x1e0] ss:$12 sps:$4 sm:$0xff]   ;;  %v10450_v10 = vld [vmem:[%s14527_s3 + $0x3a4] ss:$16 sps:$4 sm:$0xff]   ;;  %vm8188_vm11 = vcmask 1041408  }
  0x20   : > { %774 = vmatpush1.bf16.msra.mxu0 %v10349_v39  ;;  %v10402_v39 = vld [vmem:[%s14525_s1 + $0x1b0] ss:$12 sps:$4 sm:$0xff]   ;;  %v10453_v12 = vld [vmem:[%s14527_s3 + $0x3c4] ss:$16 sps:$4 sm:$0xff]   ;;  %vm8183_vm12 = vcmask 23552   ;;  %s8461_s16 = sshll.u32 %s14539_s26, 1 }
  0x21   : > { %10077 = vmatpush3.bf16.msra.mxu1 %v10352_v37  ;;  %775 = vmatprep.subr.bf16.mxu0 %v10355_v41  ;;  %v10408_v41 = vld [vmem:[%s14525_s1 + $0x1cc] ss:$12 sps:$4 sm:$0xff]   ;;  %v10445_v9 = vld [vmem:[%s14527_s3 + $0x380] ss:$16 sps:$4 sm:$0xff]  }
  0x22   : > { %10078 = vmatprep.subr.bf16.mxu1 %v10356_v42 }
  0x23   : > { %8497 = vmatmul.mubr.msk.bf16.gmra.mrb[4].mxu0 %vm570_vm2, %v497_v34  ;;  %v8588_v34 = vcombine.low %v8574_v30, %v8574_v30  ;;  %v10480_v30 = vld [vmem:[%s14527_s3 + $0x4] ss:$16 sps:$4 sm:$0xff]  }
  0x24   : > { %776 = vmatpush1.bf16.msra.mxu0 %v10353_v44  ;;  %803 = vmatprep.mubr.bf16.mxu0 %v11539_v2  ;;  %v10406_v44 = vld [vmem:[%s14525_s1 + $0x1c8] ss:$12 sps:$4 sm:$0xff]  }
  0x25   : > { %10079 = vmatpush3.bf16.msra.mxu1 %v10356_v42  ;;  %777 = vmatprep.subr.bf16.mxu0 %v10359_v45  ;;  %v1196_v37 = vsel %vm577_vm0, %v8588_v34, 0  ;;  %v10409_v42 = vld [vmem:[%s14525_s1 + $0x1d0] ss:$12 sps:$4 sm:$0xff]   ;;  %v1532_v34 = vlaneseq }
  0x26   : > { %10080 = vmatprep.subr.bf16.mxu1 %v10360_v46  ;;  %v10412_v45 = vld [vmem:[%s14525_s1 + $0x1e4] ss:$12 sps:$4 sm:$0xff]  }
  0x27   : > { %vm8399_vm13 = vcmp.lt.s32.totalorder %v1532_v34, 256 }
  0x28   : > { %778 = vmatpush1.bf16.msra.mxu0 %v10357_v48  ;;  %v10416_v48 = vld [vmem:[%s14525_s1 + $0x1fc] ss:$12 sps:$4 sm:$0xff]  }
  0x29   : > { %10081 = vmatpush3.bf16.msra.mxu1 %v10360_v46  ;;  %8515 = vmatprep.subr.msk.bf16.mxu0 %vm577_vm0, %v8513_v51  ;;  %v10413_v46 = vld [vmem:[%s14525_s1 + $0x1e8] ss:$12 sps:$4 sm:$0xff]   ;;  %v10414_v51 = vld [vmem:[%s14525_s1 + $0x1f8] ss:$12 sps:$4 sm:$0xff]  }
  0x2a   : > { %10283 = vmatprep.subr.msk.bf16.mxu1 %vm577_vm0, %v10362_v49  ;;  %v10417_v49 = vld [vmem:[%s14525_s1 + $0x200] ss:$12 sps:$4 sm:$0xff]  }
  0x2c   : > { %780 = vmatpush1.bf16.msra.mxu0 %v763_v52  ;;  %v10419_v52 = vld [vmem:[%s14525_s1 + $0x218] ss:$0 sps:$4 sm:$0xff]  }
  0x2d   : > { %10083 = vmatpush3.bf16.msra.mxu1 %v769_v53  ;;  %982 = vmatprep.subr.bf16.mxu0 %v10366_v54  ;;  %v8627_v53 = vcombine.high %v8612_v50, %v8612_v50  ;;  %v8626_v54 = vcombine.low %v8612_v50, %v8612_v50 }
  0x2e   : > { %10088 = vmatprep.subr.bf16.mxu1 %v10367_v55 }
  0x2f   : > { %8516 = vmatmul.mubr.msk.bf16.vlgmr.msra.gmra.mrb[0].mxu0 %vm570_vm2, %v11665_v16  ;;  %v10386_v16 = vld [vmem:[%s14525_s1 + $0x14c] ss:$12 sps:$4 sm:$0xff]   ;;  %v1414_v56 = vsel %vm577_vm0, %v8626_v54, 0 }
  0x30   : > { %10085 = vmatmul.mubr.msk.bf16.vlgmr.msra.gmra.mrb[0].mxu1 %vm570_vm2, %v11673_v19  ;;  %983 = vmatpush1.bf16.msra.mxu0 %v10364_v58  ;;  %v10421_v58 = vld [vmem:[%s14527_s3 + $0x280] ss:$16 sps:$4 sm:$0xff]  }
  0x31   : > { %10089 = vmatpush3.bf16.msra.mxu1 %v10367_v55  ;;  %984 = vmatprep.subr.bf16.mxu0 %v10370_v59  ;;  %v10423_v55 = vld [vmem:[%s14527_s3 + $0x284] ss:$16 sps:$4 sm:$0xff]  }
  0x32   : > { %10090 = vmatprep.subr.bf16.mxu1 %v10371_v60  ;;  %813 = vmatprep.mubr.bf16.mxu0 %v11539_v2  ;;  %v10426_v59 = vld [vmem:[%s14527_s3 + $0x2a4] ss:$16 sps:$4 sm:$0xff]  }
  0x33   : > { %10098 = vmatprep.mubr.msk.bf16.mxu1 %vm570_vm2, %v894_v62 }
  0x34   : > { %985 = vmatpush1.bf16.msra.mxu0 %v10368_v61  ;;  %v10429_v61 = vld [vmem:[%s14527_s3 + $0x2c4] ss:$16 sps:$4 sm:$0xff]  }
  0x35   : > { %10091 = vmatpush3.bf16.msra.mxu1 %v10371_v60  ;;  %986 = vmatprep.subr.bf16.mxu0 %v10374_v63  ;;  %v10424_v60 = vld [vmem:[%s14527_s3 + $0x2a0] ss:$16 sps:$4 sm:$0xff]   ;;  %v10432_v63 = vld [vmem:[%s14527_s3 + $0x2e4] ss:$16 sps:$4 sm:$0xff]  }
  0x36   : > { %10092 = vmatprep.subr.bf16.mxu1 %v10375_v0 }
  0x37   : > { %8517 = vmatmul.mubr.msk.bf16.gmra.mrb[4].mxu0 %vm570_vm2, %v11673_v19  ;;  %v11829_v19 = vor.u32 %v1114_v11, %v1113_v13  ;;  %v10448_v11 = vld [vmem:[%s14527_s3 + $0x3a0] ss:$16 sps:$4 sm:$0xff]  }
  0x38   : > { %987 = vmatpush1.bf16.msra.mxu0 %v10372_v1  ;;  %1014 = vmatprep.mubr.bf16.mxu0 %v11539_v2  ;;  %v10433_v1 = vld [vmem:[%s14527_s3 + $0x300] ss:$16 sps:$4 sm:$0xff]  }
  0x39   : > { %10093 = vmatpush3.bf16.msra.mxu1 %v10375_v0  ;;  %988 = vmatprep.subr.bf16.mxu0 %v10378_v3  ;;  %v1116_v23 = vsel %vm1109_vm5, %v1112_v18, %v11829_v19  ;;  %v10435_v0 = vld [vmem:[%s14527_s3 + $0x304] ss:$16 sps:$4 sm:$0xff]   ;;  %v10451_v13 = vld [vmem:[%s14527_s3 + $0x3c0] ss:$16 sps:$4 sm:$0xff]  }
  0x3a   : > { %10094 = vmatprep.subr.bf16.mxu1 %v10379_v4  ;;  %v10438_v3 = vld [vmem:[%s14527_s3 + $0x324] ss:$16 sps:$4 sm:$0xff]  }
  0x3b   : > { %v10462_v18 = vld [vmem:[%s14527_s3 + $0x4a4] ss:$16 sps:$4 sm:$0xff]  }
  0x3c   : > { %989 = vmatpush1.bf16.msra.mxu0 %v10376_v6  ;;  %v10444_v6 = vld [vmem:[%s14527_s3 + $0x364] ss:$16 sps:$4 sm:$0xff]  }
  0x3d   : > { %10095 = vmatpush3.bf16.msra.mxu1 %v10379_v4  ;;  %8553 = vmatprep.subr.msk.bf16.mxu0 %vm577_vm0, %v8551_v7  ;;  %v10441_v4 = vld [vmem:[%s14527_s3 + $0x344] ss:$16 sps:$4 sm:$0xff]   ;;  %v10442_v7 = vld [vmem:[%s14527_s3 + $0x360] ss:$16 sps:$4 sm:$0xff]  }
  0x3e   : > { %10284 = vmatprep.subr.msk.bf16.mxu1 %vm577_vm0, %v10381_v8  ;;  %v10447_v8 = vld [vmem:[%s14527_s3 + $0x384] ss:$16 sps:$4 sm:$0xff]  }
  0x40   : > { %991 = vmatpush1.bf16.msra.mxu0 %v974_v15  ;;  %v10454_v15 = vld [vmem:[%s14527_s3 + $0x480] ss:$16 sps:$4 sm:$0xff]  }
  0x41   : > { %10097 = vmatpush3.bf16.msra.mxu1 %v980_v17  ;;  %1204 = vmatprep.subr.bf16.mxu0 %v10385_v14  ;;  %v10456_v14 = vld [vmem:[%s14527_s3 + $0x484] ss:$16 sps:$4 sm:$0xff]  }
  0x42   : > { %10102 = vmatprep.subr.bf16.mxu1 %v10386_v16  ;;  %v10459_v17 = vld [vmem:[%s14527_s3 + $0x3e4] ss:$16 sps:$4 sm:$0xff]  }
  0x43   : > { %8554 = vmatmul.mubr.msk.bf16.vlgmr.msra.gmra.mrb[0].mxu0 %vm570_vm2, %v894_v62  ;;  %v10427_v62 = vld [vmem:[%s14527_s3 + $0x2c0] ss:$16 sps:$4 sm:$0xff]  }
  0x44   : > { %10099 = vmatmul.mubr.msk.bf16.vlgmr.msra.gmra.mrb[0].mxu1 %vm570_vm2, %v11762_v57  ;;  %1205 = vmatpush1.bf16.msra.mxu0 %v10383_v20  ;;  %v10465_v20 = vld [vmem:[%s14527_s3 + $0x404] ss:$16 sps:$4 sm:$0xff]  }
  0x45   : > { %10103 = vmatpush3.bf16.msra.mxu1 %v10386_v16  ;;  %1206 = vmatprep.subr.bf16.mxu0 %v10389_v21  ;;  %v10457_v16 = vld [vmem:[%s14527_s3 + $0x3e0] ss:$16 sps:$4 sm:$0xff]  }
  0x46   : > { %10104 = vmatprep.subr.bf16.mxu1 %v10390_v22  ;;  %1024 = vmatprep.mubr.bf16.mxu0 %v11539_v2  ;;  %v10463_v21 = vld [vmem:[%s14527_s3 + $0x400] ss:$16 sps:$4 sm:$0xff]  }
  0x47   : > { %10112 = vmatprep.mubr.msk.bf16.mxu1 %vm570_vm2, %v1116_v23 }
  0x48   : > { %1207 = vmatpush1.bf16.msra.mxu0 %v10387_v24  ;;  %v10471_v24 = vld [vmem:[%s14527_s3 + $0x424] ss:$16 sps:$4 sm:$0xff]  }
  0x49   : > { %10105 = vmatpush3.bf16.msra.mxu1 %v10390_v22  ;;  %1208 = vmatprep.subr.bf16.mxu0 %v10393_v25  ;;  %v10468_v22 = vld [vmem:[%s14527_s3 + $0x4c4] ss:$16 sps:$4 sm:$0xff]   ;;  %v10469_v25 = vld [vmem:[%s14527_s3 + $0x420] ss:$16 sps:$4 sm:$0xff]  }
  0x4a   : > { %10106 = vmatprep.subr.bf16.mxu1 %v10394_v26 }
  0x4b   : > { %8555 = vmatmul.mubr.msk.bf16.gmra.mrb[4].mxu0 %vm570_vm2, %v11762_v57  ;;  %v1420_v57 = vsel %vm577_vm0, %v10419_v52, 0 }
  0x4c   : > { %1209 = vmatpush1.bf16.msra.mxu0 %v10391_v27  ;;  %1236 = vmatprep.mubr.bf16.mxu0 %v11539_v2  ;;  %v10472_v27 = vld [vmem:[%s14527_s3 + $0x4e0] ss:$16 sps:$4 sm:$0xff]  }
  0x4d   : > { %10107 = vmatpush3.bf16.msra.mxu1 %v10394_v26  ;;  %1210 = vmatprep.subr.bf16.mxu0 %v10397_v28  ;;  %v10474_v26 = vld [vmem:[%s14527_s3 + $0x4e4] ss:$16 sps:$4 sm:$0xff]  }
  0x4e   : > { %10108 = vmatprep.subr.bf16.mxu1 %v10398_v29  ;;  %v10477_v28 = vld [vmem:[%s14527_s3 + $0x444] ss:$16 sps:$4 sm:$0xff]  }
  0x50   : > { %1211 = vmatpush1.bf16.msra.mxu0 %v10395_v31  ;;  %v10481_v31 = vld [vmem:[%s14527_s3 + $0x460] ss:$16 sps:$4 sm:$0xff]  }
  0x51   : > { %10109 = vmatpush3.bf16.msra.mxu1 %v10398_v29  ;;  %8591 = vmatprep.subr.msk.bf16.mxu0 %vm577_vm0, %v8589_v33  ;;  %v10475_v29 = vld [vmem:[%s14527_s3 + $0x440] ss:$16 sps:$4 sm:$0xff]   ;;  %v10489_v33 = vld [vmem:[%s14527_s3 + $0x28c] ss:$16 sps:$4 sm:$0xff]  }
  0x52   : > { %10285 = vmatprep.subr.msk.bf16.mxu1 %vm577_vm0, %v10400_v32  ;;  %v10483_v32 = vld [vmem:[%s14527_s3 + $0x464] ss:$16 sps:$4 sm:$0xff]  }
  0x54   : > { %1213 = vmatpush1.bf16.msra.mxu0 %v1196_v37 }
  0x55   : > { %10111 = vmatpush3.bf16.msra.mxu1 %v1202_v38  ;;  %1422 = vmatprep.subr.bf16.mxu0 %v10404_v35  ;;  %v12071_v35 = vshrl.u32 %v1532_v34, 7 }
  0x56   : > { %10116 = vmatprep.subr.bf16.mxu1 %v10405_v36 }
  0x57   : > { %8592 = vmatmul.mubr.msk.bf16.vlgmr.msra.gmra.mrb[0].mxu0 %vm570_vm2, %v1116_v23  ;;  %v10466_v23 = vld [vmem:[%s14527_s3 + $0x4c0] ss:$16 sps:$4 sm:$0xff]   ;;  %v12077_v37 = vsub.s32 0, %v12071_v35  ;;  %v12080_v38 = vsub.s32 2, %v12071_v35 }
  0x58   : > { %10113 = vmatmul.mubr.msk.bf16.vlgmr.msra.gmra.mrb[0].mxu1 %vm570_vm2, %v11829_v19  ;;  %1423 = vmatpush1.bf16.msra.mxu0 %v10402_v39  ;;  %v8634_v39 = vld [vmem:[%s14526_s2 + $0x1] ss:$2 sm:$0x7] }
  0x59   : > { %10117 = vmatpush3.bf16.msra.mxu1 %v10405_v36  ;;  %1424 = vmatprep.subr.bf16.mxu0 %v10408_v41  ;;  %v1530_v36 = vld [vmem:[%s14526_s2] ss:$2 sm:$0x7]  ;;  %v12086_v41 = vsub.s32 1, %v12071_v35 }
  0x5a   : > { %10118 = vmatprep.subr.bf16.mxu1 %v10409_v42  ;;  %1246 = vmatprep.mubr.bf16.mxu0 %v11539_v2 }
  0x5b   : > { %10126 = vmatprep.mubr.msk.bf16.mxu1 %vm570_vm2, %v11725_v43  ;;  %v1566_v50 = vrot.slane %v8634_v39, %v12086_v41 }
  0x5c   : > { %1425 = vmatpush1.bf16.msra.mxu0 %v10406_v44  ;;  %v1543_v44 = vrot.slane %v1530_v36, %v12080_v38 }
  0x5d   : > { %10119 = vmatpush3.bf16.msra.mxu1 %v10409_v42  ;;  %1426 = vmatprep.subr.bf16.mxu0 %v10412_v45  ;;  %v1535_v42 = vrot.slane %v1530_v36, %v12077_v37  ;;  %v1539_v45 = vrot.slane %v1530_v36, %v12086_v41 }
  0x5e   : > { %10120 = vmatprep.subr.bf16.mxu1 %v10413_v46 }
  0x5f   : > { %8593 = vmatmul.mubr.msk.bf16.gmra.mrb[4].mxu0 %vm570_vm2, %v11829_v19  ;;  %v10460_v19 = vld [vmem:[%s14527_s3 + $0x4a0] ss:$16 sps:$4 sm:$0xff]  }
  0x60   : > { %1427 = vmatpush1.bf16.msra.mxu0 %v10410_v47  ;;  %1454 = vmatprep.mubr.bf16.mxu0 %v11539_v2  ;;  %v1570_v47 = vrot.slane %v8634_v39, %v12080_v38 }
  0x61   : > { %10121 = vmatpush3.bf16.msra.mxu1 %v10413_v46  ;;  %1428 = vmatprep.subr.bf16.mxu0 %v10416_v48  ;;  %v1562_v46 = vrot.slane %v8634_v39, %v12077_v37  ;;  %v10478_v39 = vld [vmem:[%s14527_s3] ss:$16 sps:$4 sm:$0xff]  }
  0x62   : > { %10122 = vmatprep.subr.bf16.mxu1 %v10417_v49 }
  0x64   : > { %1429 = vmatpush1.bf16.msra.mxu0 %v10414_v51 }
  0x65   : > { %10123 = vmatpush3.bf16.msra.mxu1 %v10417_v49  ;;  %8629 = vmatprep.subr.msk.bf16.mxu0 %vm577_vm0, %v8627_v53 }
  0x66   : > { %10286 = vmatprep.subr.msk.bf16.mxu1 %vm577_vm0, %v10419_v52 }
  0x68   : > { %1431 = vmatpush1.bf16.msra.mxu0 %v1414_v56 }
  0x69   : > { %10125 = vmatpush3.bf16.msra.mxu1 %v1420_v57  ;;  %2244 = vmatprep.subr.bf16.mxu0 %v10456_v14 }
  0x6a   : > { %2201 = vmatprep.subr.bf16.mxu1 %v10423_v55 }
  0x6b   : > { %8630 = vmatmul.mubr.msk.bf16.vlgmr.msra.gmra.mrb[0].mxu0 %vm570_vm2, %v11725_v43  ;;  %v10430_v43 = vld [vmem:[%s14527_s3 + $0x2e0] ss:$16 sps:$4 sm:$0xff]  }
  0x6c   : > { %10127 = vmatmul.mubr.msk.bf16.vlgmr.msra.gmra.mrb[0].mxu1 %vm570_vm2, %v11715_v40  ;;  %1464 = vmatprep.mubr.bf16.mxu0 %v11539_v2 }
  0x6d   : > { %2202 = vmatpush1.bf16.msra.mxu1 %v10421_v58  ;;  %2245 = vmatpush1.bf16.msra.mxu0 %v10454_v15 }
  0x6e   : > { %2203 = vmatprep.subr.bf16.mxu1 %v10426_v59  ;;  %2246 = vmatprep.subr.bf16.mxu0 %v10462_v18 }
  0x71   : > { %2204 = vmatpush1.bf16.msra.mxu1 %v10424_v60  ;;  %2247 = vmatpush1.bf16.msra.mxu0 %v10460_v19 }
  0x72   : > { %2205 = vmatprep.subr.bf16.mxu1 %v10429_v61  ;;  %2248 = vmatprep.subr.bf16.mxu0 %v10468_v22 }
  0x73   : > { %8631 = vmatmul.mubr.msk.bf16.gmra.mrb[4].mxu0 %vm570_vm2, %v11715_v40  ;;  %v10436_v40 = vld [vmem:[%s14527_s3 + $0x320] ss:$16 sps:$4 sm:$0xff]  }
  0x74   : > { %2276 = vmatprep.mubr.bf16.mxu0 %v11539_v2 }
  0x75   : > { %2206 = vmatpush1.bf16.msra.mxu1 %v10427_v62  ;;  %2249 = vmatpush1.bf16.msra.mxu0 %v10466_v23 }
  0x76   : > { %2207 = vmatprep.subr.bf16.mxu1 %v10432_v63  ;;  %2250 = vmatprep.subr.bf16.mxu0 %v10474_v26 }
  0x79   : > { %2208 = vmatpush1.bf16.msra.mxu1 %v10430_v43  ;;  %2251 = vmatpush1.bf16.msra.mxu0 %v10472_v27 }
  0x7a   : > { %2209 = vmatprep.subr.bf16.mxu1 %v10435_v0  ;;  %2775 = vmatprep.subr.bf16.mxu0 %v10480_v30 }
  0x7d   : > { %2210 = vmatpush1.bf16.msra.mxu1 %v10433_v1 }
  0x7e   : > { %2211 = vmatprep.subr.bf16.mxu1 %v10438_v3 }
  0x81   : > { %2212 = vmatpush1.bf16.msra.mxu1 %v10436_v40 }
  0x82   : > { %2213 = vmatprep.subr.bf16.mxu1 %v10441_v4 }
  0x85   : > { %2214 = vmatpush1.bf16.msra.mxu1 %v10439_v5 }
  0x86   : > { %2215 = vmatprep.subr.bf16.mxu1 %v10444_v6 }
  0x89   : > { %2216 = vmatpush1.bf16.msra.mxu1 %v10442_v7 }
  0x8a   : > { %2217 = vmatprep.subr.bf16.mxu1 %v10447_v8 }
  0x8d   : > { %2218 = vmatpush1.bf16.msra.mxu1 %v10445_v9 }
  0x8e   : > { %2219 = vmatprep.subr.bf16.mxu1 %v10450_v10 }
  0x91   : > { %2220 = vmatpush1.bf16.msra.mxu1 %v10448_v11 }
  0x92   : > { %2221 = vmatprep.subr.bf16.mxu1 %v10453_v12 }
  0x95   : > { %2222 = vmatpush1.bf16.msra.mxu1 %v10451_v13 }
  0x96   : > { %2223 = vmatprep.subr.bf16.mxu1 %v10459_v17 }
  0x99   : > { %2224 = vmatpush1.bf16.msra.mxu1 %v10457_v16 }
  0x9a   : > { %2225 = vmatprep.subr.bf16.mxu1 %v10465_v20 }
  0x9d   : > { %2226 = vmatpush1.bf16.msra.mxu1 %v10463_v21 }
  0x9e   : > { %2227 = vmatprep.subr.bf16.mxu1 %v10471_v24 }
  0xa1   : > { %2228 = vmatpush1.bf16.msra.mxu1 %v10469_v25 }
  0xa2   : > { %2229 = vmatprep.subr.bf16.mxu1 %v10477_v28 }
  0xa5   : > { %2230 = vmatpush1.bf16.msra.mxu1 %v10475_v29 }
  0xa6   : > { %2231 = vmatprep.subr.bf16.mxu1 %v10483_v32 }
  0xa9   : > { %2232 = vmatpush1.bf16.msra.mxu1 %v10481_v31 }
  0xaa   : > { %2287 = vmatprep.subr.bf16.mxu1 %v10489_v33 }
 0x13e   : > { %v1456_v48 = vpop.f32.mrb[0].mxu0 }
 0x13f   : > { %v10128_v49 = vpop.f32.mrb[0].mxu1  ;;  %v1547_v51 = vmul.f32 %v1535_v42, %v1456_v48  ;;  %v1458_v53 = vpop.f32.mrb[1].mxu0 }
 0x140   : > { %v1555_v52 = vmul.f32 %v10128_v49, %v1543_v44  ;;  %v1507_v54 = vpop.f32.mrb[1].mxu1  ;;  %v1548_v55 = vmul.f32 %v1539_v45, %v1458_v53  ;;  %v1460_v57 = vpop.f32.mrb[2].mxu0 }
 0x141   : > { %v1549_v56 = vmul.f32 %v1543_v44, %v1507_v54  ;;  %v10129_v58 = vpop.f32.mrb[2].mxu1  ;;  %v1574_v59 = vadd.f32 %v1562_v46, %v1547_v51  ;;  %v1550_v61 = vmul.f32 %v1535_v42, %v1460_v57  ;;  %v1462_v62 = vpop.f32.mrb[3].mxu0  ;;  %v10484_v54 = vld [vmem:[%s14527_s3 + $0x20] ss:$16 sps:$4 sm:$0xff]  }
 0x142   : > { %v1582_v60 = vadd.f32 %v1570_v47, %v1555_v52  ;;  %v1510_v63 = vpop.f32.mrb[3].mxu1  ;;  %v1575_v43 = vadd.f32 %v1566_v50, %v1548_v55  ;;  %v1551_v1 = vmul.f32 %v1539_v45, %v1462_v62 }
 0x143   : > { %v1576_v0 = vadd.f32 %v1570_v47, %v1549_v56  ;;  %v1552_v3 = vmul.f32 %v1543_v44, %v1510_v63  ;;  %v1577_v4 = vadd.f32 %v1562_v46, %v1550_v61  ;;  %v1583_v8 = vmax.f32 %v1574_v59, 0.0 }
 0x144   : > { %v1591_v40 = vmax.f32 %v1582_v60, 0.0  ;;  %v1578_v6 = vadd.f32 %v1566_v50, %v1551_v1  ;;  %v1584_v10 = vmax.f32 %v1575_v43, 0.0 }
 0x145   : > { %v1585_v5 = vmax.f32 %v1576_v0, 0.0  ;;  %v1579_v7 = vadd.f32 %v1570_v47, %v1552_v3  ;;  %v1586_v11 = vmax.f32 %v1577_v4, 0.0  ;;  %v10487_v0 = vld [vmem:[%s14527_s3 + $0x288] ss:$16 sps:$4 sm:$0xff]   ;;  %v10492_v3 = vld [vmem:[%s14527_s3 + $0x44] ss:$16 sps:$4 sm:$0xff]  }
 0x146   : > { %v12094_v9 = vpack.c.bf16 %v1591_v40, %v1591_v40  ;;  %v1587_v12 = vmax.f32 %v1578_v6, 0.0  ;;  %v1466_v14 = vpop.f32.mrb[4].mxu0  ;;  %v10495_v6 = vld [vmem:[%s14527_s3 + $0x2ac] ss:$16 sps:$4 sm:$0xff]  }
 0x147   : > { %v1588_v13 = vmax.f32 %v1579_v7, 0.0  ;;  %v12096_v15 = vpack.c.bf16 %v1586_v11, %v1583_v8  ;;  %v1553_v17 = vmul.f32 %v1535_v42, %v1466_v14  ;;  %v1468_v16 = vpop.f32.mrb[5].mxu0 }
 0x148   : > { %v12098_v18 = vpack.c.bf16 %v1587_v12, %v1584_v10  ;;  %v1554_v20 = vmul.f32 %v1539_v45, %v1468_v16  ;;  %v1470_v21 = vpop.f32.mrb[6].mxu0  ;;  %v1791_v22 = vshll.u32 %v12094_v9, 16  ;;  %v3730_v49 = vshrl.u32 %v12094_v9, 16 }
 0x149   : > { %v12100_v19 = vpack.c.bf16 %v1588_v13, %v1585_v5  ;;  %v1580_v23 = vadd.f32 %v1562_v46, %v1553_v17  ;;  %v1471_v24 = vpop.f32.mrb[7].mxu0  ;;  %v1762_v30 = vshll.u32 %v12096_v15, 16  ;;  %v1760_v48 = vshrl.u32 %v12096_v15, 16  ;;  %v10490_v5 = vld [vmem:[%s14527_s3 + $0x40] ss:$16 sps:$4 sm:$0xff]  }
 0x14a   : > { %v1581_v25 = vadd.f32 %v1566_v50, %v1554_v20  ;;  %v1772_v28 = vshrl.u32 %v12098_v18, 16  ;;  %v1774_v29 = vshll.u32 %v12098_v18, 16  ;;  %v1793_v42 = vrot.slane %v1791_v22, 1  ;;  %v10486_v50 = vld [vmem:[%s14527_s3 + $0x24] ss:$16 sps:$4 sm:$0xff]  }
 0x14b   : > { %v1786_v26 = vshll.u32 %v12100_v19, 16  ;;  %v1589_v27 = vmax.f32 %v1580_v23, 0.0  ;;  %v1784_v32 = vshrl.u32 %v12100_v19, 16  ;;  %v1764_v44 = vrot.slane %v1762_v30, 1  ;;  %v10493_v21 = vld [vmem:[%s14527_s3 + $0x2a8] ss:$16 sps:$4 sm:$0xff]  }
 0x14c   : > { %v1590_v31 = vmax.f32 %v1581_v25, 0.0  ;;  %v1776_v47 = vrot.slane %v1774_v29, 1  ;;  %v3718_v52 = vrot.slane %v1772_v28, 1  ;;  %v3719_v58 = vrot.slane %v1774_v29, 2  ;;  %v10498_v23 = vld [vmem:[%s14527_s3 + $0x64] ss:$16 sps:$4 sm:$0xff]  }
 0x14d   : > { %v1788_v33 = vrot.slane %v1786_v26, 1  ;;  %v12108_v36 = vpack.c.bf16 %v1589_v27, %v1589_v27  ;;  %v1765_v56 = vor.u32 %v1764_v44, %v1760_v48  ;;  %v3709_v63 = vrot.slane %v1760_v48, 1  ;;  %v10510_v44 = vld [vmem:[%s14527_s3 + $0xa4] ss:$16 sps:$4 sm:$0xff]   ;;  %v10511_v48 = vld [vmem:[%s14527_s3 + $0x308] ss:$16 sps:$4 sm:$0xff]  }
 0x14e   : > { %v12113_v45 = vpack.c.bf16 %v1590_v31, %v1590_v31  ;;  %v1777_v60 = vor.u32 %v1776_v47, %v1772_v28  ;;  %v3732_v43 = vrot.slane %v3730_v49, 1  ;;  %v3720_v40 = vor.u32 %v3719_v58, %v3718_v52  ;;  %v10499_v31 = vld [vmem:[%s14527_s3 + $0x2c8] ss:$16 sps:$4 sm:$0xff]   ;;  %v10508_v47 = vld [vmem:[%s14527_s3 + $0xa0] ss:$16 sps:$4 sm:$0xff]  }
 0x14f   : > { %v1789_v46 = vor.u32 %v1788_v33, %v1784_v32  ;;  %v1767_v51 = vshll.u32 %v12108_v36, 16  ;;  %v3710_v8 = vrot.slane %v1762_v30, 2  ;;  %v3712_v10 = vshrl.u32 %v12108_v36, 16  ;;  %v10502_v33 = vld [vmem:[%s14527_s3 + $0x80] ss:$16 sps:$4 sm:$0xff]  }
 0x150   : > { %v1779_v55 = vshll.u32 %v12113_v45, 16  ;;  %v3721_v59 = vshrl.u32 %v12113_v45, 16  ;;  %v3727_v12 = vrot.slane %v1784_v32, 1  ;;  %v3728_v13 = vrot.slane %v1786_v26, 2  ;;  %v10501_v26 = vld [vmem:[%s14527_s3 + $0x2cc] ss:$16 sps:$4 sm:$0xff]  }
 0x151   : > { %v12122_v53 = vsel %vm482_vm1, %v1789_v46, %v1793_v42  ;;  %v1769_v57 = vrot.slane %v1767_v51, 1  ;;  %v3715_v11 = vrot.slane %v1767_v51, 2  ;;  %v3733_v14 = vrot.slane %v1791_v22, 2  ;;  %v10496_v22 = vld [vmem:[%s14527_s3 + $0x60] ss:$16 sps:$4 sm:$0xff]  }
 0x152   : > { %8795 = vmatmul.mubr.msk.bf16.vlgmr.msra.gmra.mrb[8].mxu0 %vm2197_vm6, %v12122_v53  ;;  %v1781_v61 = vrot.slane %v1779_v55, 1  ;;  %v3724_v62 = vrot.slane %v1779_v55, 2  ;;  %v3723_v7 = vrot.slane %v3721_v59, 1  ;;  %v3711_v16 = vor.u32 %v3710_v8, %v3709_v63  ;;  %v10504_v32 = vld [vmem:[%s14527_s3 + $0x84] ss:$16 sps:$4 sm:$0xff]  }
 0x153   : > { %2776 = vmatpush1.bf16.msra.mxu0 %v10478_v39  ;;  %2807 = vmatprep.mubr.bf16.mxu0 %v12098_v18  ;;  %v12136_v1 = vsel %vm482_vm1, %v1765_v56, %v1769_v57  ;;  %v3714_v20 = vrot.slane %v3712_v10, 1  ;;  %v3729_v24 = vor.u32 %v3728_v13, %v3727_v12  ;;  %v3734_v25 = vor.u32 %v3733_v14, %v3732_v43  ;;  %v10507_v39 = vld [vmem:[%s14527_s3 + $0x2ec] ss:$16 sps:$4 sm:$0xff]   ;;  %v10505_v42 = vld [vmem:[%s14527_s3 + $0x2e8] ss:$16 sps:$4 sm:$0xff]  }
 0x154   : > { %2777 = vmatprep.subr.bf16.mxu0 %v10486_v50  ;;  %v1782_v4 = vsel %vm482_vm1, %v1777_v60, %v1781_v61  ;;  %v3725_v17 = vor.u32 %v3724_v62, %v3723_v7  ;;  %v10513_v46 = vld [vmem:[%s14527_s3 + $0x30c] ss:$16 sps:$4 sm:$0xff]   ;;  %v10516_v49 = vld [vmem:[%s14527_s3 + $0xc4] ss:$16 sps:$4 sm:$0xff]   ;;  %v10514_v51 = vld [vmem:[%s14527_s3 + $0xc0] ss:$16 sps:$4 sm:$0xff]  }
 0x155   : > { %2233 = vmatprep.mubr.bf16.mxu1 %v1782_v4  ;;  %v3716_v28 = vor.u32 %v3715_v11, %v3714_v20  ;;  %v12166_v29 = vsel %vm1109_vm5, %v3729_v24, %v3734_v25  ;;  %v10519_v50 = vld [vmem:[%s14527_s3 + $0x32c] ss:$16 sps:$4 sm:$0xff]   ;;  %v10517_v52 = vld [vmem:[%s14527_s3 + $0x328] ss:$16 sps:$4 sm:$0xff]   ;;  %v10520_v55 = vld [vmem:[%s14527_s3 + $0xe0] ss:$16 sps:$4 sm:$0xff]  }
 0x156   : > { %2234 = vmatmul.mubr.bf16.vlgmr.msra.gmra.mrb[4].mxu1 %v12136_v1  ;;  %v12163_v27 = vsel %vm1109_vm5, %v3720_v40, %v3725_v17  ;;  %v10525_v56 = vld [vmem:[%s14527_s3 + $0x34c] ss:$16 sps:$4 sm:$0xff]   ;;  %v10523_v57 = vld [vmem:[%s14527_s3 + $0x348] ss:$16 sps:$4 sm:$0xff]   ;;  %v10528_v58 = vld [vmem:[%s14527_s3 + $0x104] ss:$16 sps:$4 sm:$0xff]  }
 0x157   : > { %2778 = vmatpush1.bf16.msra.mxu0 %v10484_v54  ;;  %2288 = vmatpush1.bf16.msra.mxu1 %v10487_v0  ;;  %v12169_v30 = vsel %vm1109_vm5, %v3711_v16, %v3716_v28  ;;  %v10522_v54 = vld [vmem:[%s14527_s3 + $0xe4] ss:$16 sps:$4 sm:$0xff]   ;;  %v10526_v59 = vld [vmem:[%s14527_s3 + $0x100] ss:$16 sps:$4 sm:$0xff]   ;;  %v10531_v60 = vld [vmem:[%s14527_s3 + $0x36c] ss:$16 sps:$4 sm:$0xff]  }
 0x158   : > { %2319 = vmatprep.mubr.bf16.mxu1 %v1782_v4  ;;  %2779 = vmatprep.subr.bf16.mxu0 %v10492_v3  ;;  %v10529_v61 = vld [vmem:[%s14527_s3 + $0x368] ss:$16 sps:$4 sm:$0xff]   ;;  %v10534_v62 = vld [vmem:[%s14527_s3 + $0x124] ss:$16 sps:$4 sm:$0xff]   ;;  %v10537_v63 = vld [vmem:[%s14527_s3 + $0x38c] ss:$16 sps:$4 sm:$0xff]  }
 0x159   : > { %2289 = vmatprep.subr.bf16.mxu1 %v10495_v6  ;;  %v10532_v43 = vld [vmem:[%s14527_s3 + $0x120] ss:$16 sps:$4 sm:$0xff]   ;;  %v10535_v0 = vld [vmem:[%s14527_s3 + $0x388] ss:$16 sps:$4 sm:$0xff]   ;;  %v10540_v3 = vld [vmem:[%s14527_s3 + $0x144] ss:$16 sps:$4 sm:$0xff]  }
 0x15a   : > { %v10543_v40 = vld [vmem:[%s14527_s3 + $0x3ac] ss:$16 sps:$4 sm:$0xff]   ;;  %v10538_v4 = vld [vmem:[%s14527_s3 + $0x140] ss:$16 sps:$4 sm:$0xff]   ;;  %v10546_v6 = vld [vmem:[%s14527_s3 + $0x164] ss:$16 sps:$4 sm:$0xff]  }
 0x15b   : > { %2780 = vmatpush1.bf16.msra.mxu0 %v10490_v5  ;;  %2290 = vmatpush1.bf16.msra.mxu1 %v10493_v21  ;;  %v10541_v5 = vld [vmem:[%s14527_s3 + $0x3a8] ss:$16 sps:$4 sm:$0xff]   ;;  %v10544_v7 = vld [vmem:[%s14527_s3 + $0x160] ss:$16 sps:$4 sm:$0xff]   ;;  %v10549_v8 = vld [vmem:[%s14527_s3 + $0x3cc] ss:$16 sps:$4 sm:$0xff]  }
 0x15c   : > { %2781 = vmatprep.subr.bf16.mxu0 %v10498_v23  ;;  %2291 = vmatprep.subr.bf16.mxu1 %v10501_v26  ;;  %v10547_v10 = vld [vmem:[%s14527_s3 + $0x3c8] ss:$16 sps:$4 sm:$0xff]   ;;  %v10552_v11 = vld [vmem:[%s14527_s3 + $0x184] ss:$16 sps:$4 sm:$0xff]   ;;  %v10550_v12 = vld [vmem:[%s14527_s3 + $0x180] ss:$16 sps:$4 sm:$0xff]  }
 0x15d   : > { %v10555_v13 = vld [vmem:[%s14527_s3 + $0x3ec] ss:$16 sps:$4 sm:$0xff]   ;;  %v10553_v14 = vld [vmem:[%s14527_s3 + $0x3e8] ss:$16 sps:$4 sm:$0xff]   ;;  %v10558_v17 = vld [vmem:[%s14527_s3 + $0x1a4] ss:$16 sps:$4 sm:$0xff]  }
 0x15e   : > { %v10556_v16 = vld [vmem:[%s14527_s3 + $0x1a0] ss:$16 sps:$4 sm:$0xff]   ;;  %v10561_v20 = vld [vmem:[%s14527_s3 + $0x40c] ss:$16 sps:$4 sm:$0xff]   ;;  %v10559_v21 = vld [vmem:[%s14527_s3 + $0x408] ss:$16 sps:$4 sm:$0xff]  }
 0x15f   : > { %2782 = vmatpush1.bf16.msra.mxu0 %v10496_v22  ;;  %2292 = vmatpush1.bf16.msra.mxu1 %v10499_v31  ;;  %v10564_v23 = vld [vmem:[%s14527_s3 + $0x1c4] ss:$16 sps:$4 sm:$0xff]   ;;  %v10562_v24 = vld [vmem:[%s14527_s3 + $0x1c0] ss:$16 sps:$4 sm:$0xff]   ;;  %v10567_v25 = vld [vmem:[%s14527_s3 + $0x42c] ss:$16 sps:$4 sm:$0xff]  }
 0x160   : > { %2783 = vmatprep.subr.bf16.mxu0 %v10504_v32  ;;  %2293 = vmatprep.subr.bf16.mxu1 %v10507_v39  ;;  %v10565_v22 = vld [vmem:[%s14527_s3 + $0x428] ss:$16 sps:$4 sm:$0xff]   ;;  %v10570_v26 = vld [vmem:[%s14527_s3 + $0x1e4] ss:$16 sps:$4 sm:$0xff]   ;;  %v10568_v28 = vld [vmem:[%s14527_s3 + $0x1e0] ss:$16 sps:$4 sm:$0xff]  }
 0x161   : > { %v10573_v31 = vld [vmem:[%s14527_s3 + $0x44c] ss:$16 sps:$4 sm:$0xff]   ;;  %v10571_v32 = vld [vmem:[%s14527_s3 + $0x448] ss:$16 sps:$4 sm:$0xff]   ;;  %v10574_v39 = vld [vmem:[%s14527_s3 + $0x200] ss:$16 sps:$4 sm:$0xff]  }
 0x163   : > { %2784 = vmatpush1.bf16.msra.mxu0 %v10502_v33  ;;  %2294 = vmatpush1.bf16.msra.mxu1 %v10505_v42  ;;  %v10576_v33 = vld [vmem:[%s14527_s3 + $0x204] ss:$16 sps:$4 sm:$0xff]   ;;  %v10579_v42 = vld [vmem:[%s14527_s3 + $0x46c] ss:$16 sps:$4 sm:$0xff]  }
 0x164   : > { %2785 = vmatprep.subr.bf16.mxu0 %v10510_v44  ;;  %2295 = vmatprep.subr.bf16.mxu1 %v10513_v46  ;;  %v10577_v44 = vld [vmem:[%s14527_s3 + $0x468] ss:$16 sps:$4 sm:$0xff]   ;;  %v10582_v46 = vld [vmem:[%s14527_s3 + $0x224] ss:$16 sps:$4 sm:$0xff]  }
 0x167   : > { %2786 = vmatpush1.bf16.msra.mxu0 %v10508_v47  ;;  %2296 = vmatpush1.bf16.msra.mxu1 %v10511_v48  ;;  %v10580_v47 = vld [vmem:[%s14527_s3 + $0x220] ss:$16 sps:$4 sm:$0xff]   ;;  %v10585_v48 = vld [vmem:[%s14527_s3 + $0x48c] ss:$16 sps:$4 sm:$0xff]  }
 0x168   : > { %2787 = vmatprep.subr.bf16.mxu0 %v10516_v49  ;;  %2297 = vmatprep.subr.bf16.mxu1 %v10519_v50  ;;  %v10583_v49 = vld [vmem:[%s14527_s3 + $0x488] ss:$16 sps:$4 sm:$0xff]   ;;  %v10588_v50 = vld [vmem:[%s14527_s3 + $0x244] ss:$16 sps:$4 sm:$0xff]  }
 0x16b   : > { %2788 = vmatpush1.bf16.msra.mxu0 %v10514_v51  ;;  %2298 = vmatpush1.bf16.msra.mxu1 %v10517_v52  ;;  %v10586_v51 = vld [vmem:[%s14527_s3 + $0x240] ss:$16 sps:$4 sm:$0xff]   ;;  %v10591_v52 = vld [vmem:[%s14527_s3 + $0x4ac] ss:$16 sps:$4 sm:$0xff]  }
 0x16c   : > { %2789 = vmatprep.subr.bf16.mxu0 %v10522_v54  ;;  %2299 = vmatprep.subr.bf16.mxu1 %v10525_v56  ;;  %v10589_v54 = vld [vmem:[%s14527_s3 + $0x4a8] ss:$16 sps:$4 sm:$0xff]   ;;  %v10592_v56 = vld [vmem:[%s14527_s3 + $0x260] ss:$16 sps:$4 sm:$0xff]  }
 0x16f   : > { %2790 = vmatpush1.bf16.msra.mxu0 %v10520_v55  ;;  %2300 = vmatpush1.bf16.msra.mxu1 %v10523_v57  ;;  %v10594_v55 = vld [vmem:[%s14527_s3 + $0x264] ss:$16 sps:$4 sm:$0xff]   ;;  %v10595_v57 = vld [vmem:[%s14527_s3 + $0x4c8] ss:$16 sps:$4 sm:$0xff]  }
 0x170   : > { %2791 = vmatprep.subr.bf16.mxu0 %v10528_v58  ;;  %2301 = vmatprep.subr.bf16.mxu1 %v10531_v60  ;;  %v10600_v58 = vld [vmem:[%s14527_s3 + $0x504] ss:$16 sps:$4 sm:$0xff]   ;;  %v10598_v60 = vld [vmem:[%s14527_s3 + $0x500] ss:$16 sps:$4 sm:$0xff]  }
 0x173   : > { %2792 = vmatpush1.bf16.msra.mxu0 %v10526_v59  ;;  %2302 = vmatpush1.bf16.msra.mxu1 %v10529_v61  ;;  %v10603_v59 = vld [vmem:[%s14527_s3 + $0x4ec] ss:$16 sps:$4 sm:$0xff]   ;;  %v3038_v61 = vrot.slane %v12113_v45, 1 }
 0x174   : > { %2793 = vmatprep.subr.bf16.mxu0 %v10534_v62  ;;  %2303 = vmatprep.subr.bf16.mxu1 %v10537_v63  ;;  %v10601_v62 = vld [vmem:[%s14527_s3 + $0x4e8] ss:$16 sps:$4 sm:$0xff]   ;;  %v3037_v63 = vrot.slane %v12098_v18, 1 }
 0x177   : > { %2794 = vmatpush1.bf16.msra.mxu0 %v10532_v43  ;;  %2304 = vmatpush1.bf16.msra.mxu1 %v10535_v0  ;;  %v10606_v43 = vld [vmem:[%s14527_s3 + $0x524] ss:$16 sps:$4 sm:$0xff]   ;;  %v10604_v0 = vld [vmem:[%s14527_s3 + $0x520] ss:$16 sps:$4 sm:$0xff]  }
 0x178   : > { %2795 = vmatprep.subr.bf16.mxu0 %v10540_v3  ;;  %2305 = vmatprep.subr.bf16.mxu1 %v10543_v40  ;;  %v10609_v3 = vld [vmem:[%s14527_s3 + $0xc] ss:$16 sps:$4 sm:$0xff]   ;;  %v12396_v40 = vsel %vm891_vm4, %v3037_v63, %v3038_v61  ;;  %v10673_v63 = vld [vmem:[%s14527_s3 + $0x168] ss:$16 sps:$4 sm:$0xff]  }
 0x179   : > { %v10675_v61 = vld [vmem:[%s14527_s3 + $0x16c] ss:$16 sps:$4 sm:$0xff]  }
 0x17b   : > { %2796 = vmatpush1.bf16.msra.mxu0 %v10538_v4  ;;  %2306 = vmatpush1.bf16.msra.mxu1 %v10541_v5  ;;  %v10607_v4 = vld [vmem:[%s14527_s3 + $0x8] ss:$16 sps:$4 sm:$0xff]   ;;  %v10612_v5 = vld [vmem:[%s14527_s3 + $0x544] ss:$16 sps:$4 sm:$0xff]  }
 0x17c   : > { %2797 = vmatprep.subr.bf16.mxu0 %v10546_v6  ;;  %2307 = vmatprep.subr.bf16.mxu1 %v10549_v8  ;;  %v10615_v6 = vld [vmem:[%s14527_s3 + $0x2c] ss:$16 sps:$4 sm:$0xff]   ;;  %v10613_v8 = vld [vmem:[%s14527_s3 + $0x28] ss:$16 sps:$4 sm:$0xff]  }
 0x17f   : > { %2798 = vmatpush1.bf16.msra.mxu0 %v10544_v7  ;;  %2308 = vmatpush1.bf16.msra.mxu1 %v10547_v10  ;;  %v10610_v7 = vld [vmem:[%s14527_s3 + $0x540] ss:$16 sps:$4 sm:$0xff]   ;;  %v10618_v10 = vld [vmem:[%s14527_s3 + $0x564] ss:$16 sps:$4 sm:$0xff]  }
 0x180   : > { %2799 = vmatprep.subr.bf16.mxu0 %v10552_v11  ;;  %2309 = vmatprep.subr.bf16.mxu1 %v10555_v13  ;;  %v10616_v11 = vld [vmem:[%s14527_s3 + $0x560] ss:$16 sps:$4 sm:$0xff]   ;;  %v10624_v13 = vld [vmem:[%s14527_s3 + $0x584] ss:$16 sps:$4 sm:$0xff]  }
 0x183   : > { %2800 = vmatpush1.bf16.msra.mxu0 %v10550_v12  ;;  %2310 = vmatpush1.bf16.msra.mxu1 %v10553_v14  ;;  %v10619_v12 = vld [vmem:[%s14527_s3 + $0x48] ss:$16 sps:$4 sm:$0xff]   ;;  %v10627_v14 = vld [vmem:[%s14527_s3 + $0x6c] ss:$16 sps:$4 sm:$0xff]  }
 0x184   : > { %2801 = vmatprep.subr.bf16.mxu0 %v10558_v17  ;;  %2311 = vmatprep.subr.bf16.mxu1 %v10561_v20  ;;  %v10622_v17 = vld [vmem:[%s14527_s3 + $0x580] ss:$16 sps:$4 sm:$0xff]   ;;  %v10630_v20 = vld [vmem:[%s14527_s3 + $0x5a4] ss:$16 sps:$4 sm:$0xff]  }
 0x187   : > { %2802 = vmatpush1.bf16.msra.mxu0 %v10556_v16  ;;  %2312 = vmatpush1.bf16.msra.mxu1 %v10559_v21  ;;  %v10625_v16 = vld [vmem:[%s14527_s3 + $0x68] ss:$16 sps:$4 sm:$0xff]   ;;  %v10633_v21 = vld [vmem:[%s14527_s3 + $0x8c] ss:$16 sps:$4 sm:$0xff]  }
 0x188   : > { %2803 = vmatprep.subr.bf16.mxu0 %v10564_v23  ;;  %2313 = vmatprep.subr.bf16.mxu1 %v10567_v25  ;;  %v10628_v23 = vld [vmem:[%s14527_s3 + $0x5a0] ss:$16 sps:$4 sm:$0xff]   ;;  %v10636_v25 = vld [vmem:[%s14527_s3 + $0x5c4] ss:$16 sps:$4 sm:$0xff]  }
 0x18b   : > { %2804 = vmatpush1.bf16.msra.mxu0 %v10562_v24  ;;  %2314 = vmatpush1.bf16.msra.mxu1 %v10565_v22  ;;  %v10631_v24 = vld [vmem:[%s14527_s3 + $0x88] ss:$16 sps:$4 sm:$0xff]   ;;  %v10639_v22 = vld [vmem:[%s14527_s3 + $0xac] ss:$16 sps:$4 sm:$0xff]  }
 0x18c   : > { %2805 = vmatprep.subr.bf16.mxu0 %v10570_v26  ;;  %2315 = vmatprep.subr.bf16.mxu1 %v10573_v31  ;;  %v10634_v26 = vld [vmem:[%s14527_s3 + $0x5c0] ss:$16 sps:$4 sm:$0xff]   ;;  %v10642_v31 = vld [vmem:[%s14527_s3 + $0x5e4] ss:$16 sps:$4 sm:$0xff]  }
 0x18f   : > { %2806 = vmatpush1.bf16.msra.mxu0 %v10568_v28  ;;  %2316 = vmatpush1.bf16.msra.mxu1 %v10571_v32  ;;  %v10637_v28 = vld [vmem:[%s14527_s3 + $0xa8] ss:$16 sps:$4 sm:$0xff]   ;;  %v10645_v32 = vld [vmem:[%s14527_s3 + $0xcc] ss:$16 sps:$4 sm:$0xff]  }
 0x190   : > { %2818 = vmatprep.subr.bf16.mxu0 %v10576_v33  ;;  %2317 = vmatprep.subr.bf16.mxu1 %v10579_v42  ;;  %v10640_v33 = vld [vmem:[%s14527_s3 + $0x5e0] ss:$16 sps:$4 sm:$0xff]   ;;  %v10648_v42 = vld [vmem:[%s14527_s3 + $0x604] ss:$16 sps:$4 sm:$0xff]  }
 0x192   : > { %2808 = vmatmul.mubr.bf16.vlgmr.msra.gmra.mrb[8].mxu0 %v12096_v15 }
 0x193   : > { %2819 = vmatpush1.bf16.msra.mxu0 %v10574_v39  ;;  %2850 = vmatprep.mubr.bf16.mxu0 %v11539_v2  ;;  %v10643_v39 = vld [vmem:[%s14527_s3 + $0xc8] ss:$16 sps:$4 sm:$0xff]  }
 0x194   : > { %2318 = vmatpush1.bf16.msra.mxu1 %v10577_v44  ;;  %2820 = vmatprep.subr.bf16.mxu0 %v10582_v46  ;;  %v10651_v44 = vld [vmem:[%s14527_s3 + $0xec] ss:$16 sps:$4 sm:$0xff]   ;;  %v10646_v46 = vld [vmem:[%s14527_s3 + $0x600] ss:$16 sps:$4 sm:$0xff]  }
 0x195   : > { %2330 = vmatprep.subr.bf16.mxu1 %v10585_v48  ;;  %v10654_v48 = vld [vmem:[%s14527_s3 + $0x624] ss:$16 sps:$4 sm:$0xff]  }
 0x197   : > { %2320 = vmatmul.mubr.bf16.vlgmr.msra.gmra.mrb[8].mxu1 %v12136_v1  ;;  %2821 = vmatpush1.bf16.msra.mxu0 %v10580_v47  ;;  %v10597_v1 = vld [vmem:[%s14527_s3 + $0x4cc] ss:$16 sps:$4 sm:$0xff]   ;;  %v10649_v47 = vld [vmem:[%s14527_s3 + $0xe8] ss:$16 sps:$4 sm:$0xff]  }
 0x198   : > { %2331 = vmatpush1.bf16.msra.mxu1 %v10583_v49  ;;  %2822 = vmatprep.subr.bf16.mxu0 %v10588_v50  ;;  %v10657_v49 = vld [vmem:[%s14527_s3 + $0x10c] ss:$16 sps:$4 sm:$0xff]   ;;  %v10652_v50 = vld [vmem:[%s14527_s3 + $0x620] ss:$16 sps:$4 sm:$0xff]  }
 0x199   : > { %2332 = vmatprep.subr.bf16.mxu1 %v10591_v52  ;;  %2362 = vmatprep.mubr.bf16.mxu1 %v11539_v2  ;;  %v10660_v52 = vld [vmem:[%s14527_s3 + $0x644] ss:$16 sps:$4 sm:$0xff]  }
 0x19b   : > { %2823 = vmatpush1.bf16.msra.mxu0 %v10586_v51  ;;  %v10655_v51 = vld [vmem:[%s14527_s3 + $0x108] ss:$16 sps:$4 sm:$0xff]  }
 0x19c   : > { %2333 = vmatpush1.bf16.msra.mxu1 %v10589_v54  ;;  %2824 = vmatprep.subr.bf16.mxu0 %v10594_v55  ;;  %v10663_v54 = vld [vmem:[%s14527_s3 + $0x12c] ss:$16 sps:$4 sm:$0xff]   ;;  %v10658_v55 = vld [vmem:[%s14527_s3 + $0x640] ss:$16 sps:$4 sm:$0xff]  }
 0x19d   : > { %2334 = vmatprep.subr.bf16.mxu1 %v10597_v1  ;;  %v10666_v1 = vld [vmem:[%s14527_s3 + $0x664] ss:$16 sps:$4 sm:$0xff]  }
 0x19f   : > { %2825 = vmatpush1.bf16.msra.mxu0 %v10592_v56  ;;  %v10661_v56 = vld [vmem:[%s14527_s3 + $0x128] ss:$16 sps:$4 sm:$0xff]  }
 0x1a0   : > { %2335 = vmatpush1.bf16.msra.mxu1 %v10595_v57  ;;  %3448 = vmatprep.subr.bf16.mxu0 %v10600_v58  ;;  %v10669_v57 = vld [vmem:[%s14527_s3 + $0x14c] ss:$16 sps:$4 sm:$0xff]   ;;  %v10664_v58 = vld [vmem:[%s14527_s3 + $0x660] ss:$16 sps:$4 sm:$0xff]  }
 0x1a1   : > { %2336 = vmatprep.subr.bf16.mxu1 %v10603_v59  ;;  %v10667_v59 = vld [vmem:[%s14527_s3 + $0x148] ss:$16 sps:$4 sm:$0xff]  }
 0x1a2   : > { %8877 = vmatmul.mubr.msk.bf16.vlgmr.msra.gmra.mrb[8].mxu0 %vm2197_vm6, %v12100_v19 }
 0x1a3   : > { %3449 = vmatpush1.bf16.msra.mxu0 %v10598_v60  ;;  %3480 = vmatprep.mubr.bf16.mxu0 %v12396_v40  ;;  %v10672_v60 = vld [vmem:[%s14527_s3 + $0x684] ss:$16 sps:$4 sm:$0xff]  }
 0x1a4   : > { %2337 = vmatpush1.bf16.msra.mxu1 %v10601_v62  ;;  %3450 = vmatprep.subr.bf16.mxu0 %v10606_v43  ;;  %v10670_v62 = vld [vmem:[%s14527_s3 + $0x680] ss:$16 sps:$4 sm:$0xff]   ;;  %v10678_v43 = vld [vmem:[%s14527_s3 + $0x6a4] ss:$16 sps:$4 sm:$0xff]  }
 0x1a5   : > { %2861 = vmatprep.subr.bf16.mxu1 %v10609_v3  ;;  %v10676_v3 = vld [vmem:[%s14527_s3 + $0x6a0] ss:$16 sps:$4 sm:$0xff]  }
 0x1a7   : > { %8796 = vmatmul.mubr.msk.bf16.vlgmr.msra.gmra.mrb[8].mxu1 %vm2197_vm6, %v12122_v53  ;;  %3451 = vmatpush1.bf16.msra.mxu0 %v10604_v0  ;;  %v10621_v53 = vld [vmem:[%s14527_s3 + $0x4c] ss:$16 sps:$4 sm:$0xff]  }
 0x1a8   : > { %2862 = vmatpush1.bf16.msra.mxu1 %v10607_v4  ;;  %2893 = vmatprep.mubr.bf16.mxu1 %v12098_v18  ;;  %v10681_v0 = vld [vmem:[%s14527_s3 + $0x18c] ss:$16 sps:$4 sm:$0xff]   ;;  %v10679_v4 = vld [vmem:[%s14527_s3 + $0x188] ss:$16 sps:$4 sm:$0xff]  }
 0x1a9   : > { %3452 = vmatprep.subr.bf16.mxu0 %v10612_v5  ;;  %2863 = vmatprep.subr.bf16.mxu1 %v10615_v6  ;;  %v10684_v5 = vld [vmem:[%s14527_s3 + $0x6c4] ss:$16 sps:$4 sm:$0xff]   ;;  %v10687_v6 = vld [vmem:[%s14527_s3 + $0x1ac] ss:$16 sps:$4 sm:$0xff]  }
 0x1ab   : > { %3453 = vmatpush1.bf16.msra.mxu0 %v10610_v7  ;;  %v10682_v7 = vld [vmem:[%s14527_s3 + $0x6c0] ss:$16 sps:$4 sm:$0xff]  }
 0x1ac   : > { %2864 = vmatpush1.bf16.msra.mxu1 %v10613_v8  ;;  %3454 = vmatprep.subr.bf16.mxu0 %v10618_v10  ;;  %v10685_v8 = vld [vmem:[%s14527_s3 + $0x1a8] ss:$16 sps:$4 sm:$0xff]   ;;  %v10690_v10 = vld [vmem:[%s14527_s3 + $0x6e4] ss:$16 sps:$4 sm:$0xff]  }
 0x1ad   : > { %2865 = vmatprep.subr.bf16.mxu1 %v10621_v53  ;;  %v10693_v53 = vld [vmem:[%s14527_s3 + $0x1cc] ss:$16 sps:$4 sm:$0xff]  }
 0x1af   : > { %3455 = vmatpush1.bf16.msra.mxu0 %v10616_v11  ;;  %v10688_v11 = vld [vmem:[%s14527_s3 + $0x6e0] ss:$16 sps:$4 sm:$0xff]  }
 0x1b0   : > { %2866 = vmatpush1.bf16.msra.mxu1 %v10619_v12  ;;  %3456 = vmatprep.subr.bf16.mxu0 %v10624_v13  ;;  %v10691_v12 = vld [vmem:[%s14527_s3 + $0x1c8] ss:$16 sps:$4 sm:$0xff]   ;;  %v10696_v13 = vld [vmem:[%s14527_s3 + $0x704] ss:$16 sps:$4 sm:$0xff]  }
 0x1b1   : > { %2867 = vmatprep.subr.bf16.mxu1 %v10627_v14  ;;  %v3035_v14 = vrot.slane %v12108_v36, 1 }
 0x1b3   : > { %3457 = vmatpush1.bf16.msra.mxu0 %v10622_v17  ;;  %v10699_v17 = vld [vmem:[%s14527_s3 + $0x1ec] ss:$16 sps:$4 sm:$0xff]  }
 0x1b4   : > { %2868 = vmatpush1.bf16.msra.mxu1 %v10625_v16  ;;  %3458 = vmatprep.subr.bf16.mxu0 %v10630_v20  ;;  %v3034_v16 = vrot.slane %v12096_v15, 1  ;;  %v10694_v20 = vld [vmem:[%s14527_s3 + $0x700] ss:$16 sps:$4 sm:$0xff]  }
 0x1b5   : > { %2869 = vmatprep.subr.bf16.mxu1 %v10633_v21  ;;  %v10697_v21 = vld [vmem:[%s14527_s3 + $0x1e8] ss:$16 sps:$4 sm:$0xff]  }
 0x1b7   : > { %3459 = vmatpush1.bf16.msra.mxu0 %v10628_v23  ;;  %v10702_v23 = vld [vmem:[%s14527_s3 + $0x724] ss:$16 sps:$4 sm:$0xff]  }
 0x1b8   : > { %2870 = vmatpush1.bf16.msra.mxu1 %v10631_v24  ;;  %3460 = vmatprep.subr.bf16.mxu0 %v10636_v25  ;;  %v12591_v24 = vsel %vm891_vm4, %v3034_v16, %v3035_v14  ;;  %v10705_v25 = vld [vmem:[%s14527_s3 + $0x20c] ss:$16 sps:$4 sm:$0xff]   ;;  %v10762_v14 = vld [vmem:[%s14527_s3 + $0x864] ss:$16 sps:$4 sm:$0xff]   ;;  %v10760_v16 = vld [vmem:[%s14527_s3 + $0x860] ss:$16 sps:$4 sm:$0xff]  }
 0x1b9   : > { %2871 = vmatprep.subr.bf16.mxu1 %v10639_v22  ;;  %v10700_v22 = vld [vmem:[%s14527_s3 + $0x720] ss:$16 sps:$4 sm:$0xff]  }
 0x1bb   : > { %3461 = vmatpush1.bf16.msra.mxu0 %v10634_v26  ;;  %v10703_v26 = vld [vmem:[%s14527_s3 + $0x208] ss:$16 sps:$4 sm:$0xff]  }
 0x1bc   : > { %2872 = vmatpush1.bf16.msra.mxu1 %v10637_v28  ;;  %3462 = vmatprep.subr.bf16.mxu0 %v10642_v31  ;;  %v10708_v28 = vld [vmem:[%s14527_s3 + $0x744] ss:$16 sps:$4 sm:$0xff]   ;;  %v10711_v31 = vld [vmem:[%s14527_s3 + $0x22c] ss:$16 sps:$4 sm:$0xff]  }
 0x1bd   : > { %2873 = vmatprep.subr.bf16.mxu1 %v10645_v32  ;;  %v10706_v32 = vld [vmem:[%s14527_s3 + $0x740] ss:$16 sps:$4 sm:$0xff]  }
 0x1bf   : > { %3463 = vmatpush1.bf16.msra.mxu0 %v10640_v33  ;;  %v10709_v33 = vld [vmem:[%s14527_s3 + $0x228] ss:$16 sps:$4 sm:$0xff]  }
 0x1c0   : > { %2874 = vmatpush1.bf16.msra.mxu1 %v10643_v39  ;;  %3464 = vmatprep.subr.bf16.mxu0 %v10648_v42  ;;  %v10714_v39 = vld [vmem:[%s14527_s3 + $0x764] ss:$16 sps:$4 sm:$0xff]   ;;  %v10717_v42 = vld [vmem:[%s14527_s3 + $0x24c] ss:$16 sps:$4 sm:$0xff]  }
 0x1c1   : > { %2875 = vmatprep.subr.bf16.mxu1 %v10651_v44  ;;  %v10712_v44 = vld [vmem:[%s14527_s3 + $0x760] ss:$16 sps:$4 sm:$0xff]  }
 0x1c3   : > { %3465 = vmatpush1.bf16.msra.mxu0 %v10646_v46  ;;  %v10715_v46 = vld [vmem:[%s14527_s3 + $0x248] ss:$16 sps:$4 sm:$0xff]  }
 0x1c4   : > { %2876 = vmatpush1.bf16.msra.mxu1 %v10649_v47  ;;  %3466 = vmatprep.subr.bf16.mxu0 %v10654_v48  ;;  %v10720_v47 = vld [vmem:[%s14527_s3 + $0x784] ss:$16 sps:$4 sm:$0xff]   ;;  %v3040_v48 = vrot.slane %v12100_v19, 1 }
 0x1c5   : > { %2877 = vmatprep.subr.bf16.mxu1 %v10657_v49  ;;  %v3041_v49 = vrot.slane %v12094_v9, 1 }
 0x1c7   : > { %3467 = vmatpush1.bf16.msra.mxu0 %v10652_v50  ;;  %v10723_v50 = vld [vmem:[%s14527_s3 + $0x26c] ss:$16 sps:$4 sm:$0xff]  }
 0x1c8   : > { %2878 = vmatpush1.bf16.msra.mxu1 %v10655_v51  ;;  %3468 = vmatprep.subr.bf16.mxu0 %v10660_v52  ;;  %v10718_v51 = vld [vmem:[%s14527_s3 + $0x780] ss:$16 sps:$4 sm:$0xff]   ;;  %v10721_v52 = vld [vmem:[%s14527_s3 + $0x268] ss:$16 sps:$4 sm:$0xff]  }
 0x1c9   : > { %2879 = vmatprep.subr.bf16.mxu1 %v10663_v54  ;;  %v10726_v54 = vld [vmem:[%s14527_s3 + $0x7a4] ss:$16 sps:$4 sm:$0xff]  }
 0x1cb   : > { %3469 = vmatpush1.bf16.msra.mxu0 %v10658_v55  ;;  %v12648_v55 = vsel %vm891_vm4, %v3040_v48, %v3041_v49  ;;  %v10784_v48 = vld [vmem:[%s14527_s3 + $0x8e0] ss:$16 sps:$4 sm:$0xff]   ;;  %v10787_v49 = vld [vmem:[%s14527_s3 + $0x648] ss:$16 sps:$4 sm:$0xff]  }
 0x1cc   : > { %2880 = vmatpush1.bf16.msra.mxu1 %v10661_v56  ;;  %3470 = vmatprep.subr.bf16.mxu0 %v10666_v1  ;;  %v10729_v56 = vld [vmem:[%s14527_s3 + $0x50c] ss:$16 sps:$4 sm:$0xff]   ;;  %v10724_v1 = vld [vmem:[%s14527_s3 + $0x7a0] ss:$16 sps:$4 sm:$0xff]  }
 0x1cd   : > { %2881 = vmatprep.subr.bf16.mxu1 %v10669_v57  ;;  %v10727_v57 = vld [vmem:[%s14527_s3 + $0x508] ss:$16 sps:$4 sm:$0xff]  }
 0x1cf   : > { %3471 = vmatpush1.bf16.msra.mxu0 %v10664_v58  ;;  %v10732_v58 = vld [vmem:[%s14527_s3 + $0x7c4] ss:$16 sps:$4 sm:$0xff]  }
 0x1d0   : > { %2882 = vmatpush1.bf16.msra.mxu1 %v10667_v59  ;;  %3472 = vmatprep.subr.bf16.mxu0 %v10672_v60  ;;  %v10735_v59 = vld [vmem:[%s14527_s3 + $0x52c] ss:$16 sps:$4 sm:$0xff]   ;;  %v10730_v60 = vld [vmem:[%s14527_s3 + $0x7c0] ss:$16 sps:$4 sm:$0xff]  }
 0x1d1   : > { %2883 = vmatprep.subr.bf16.mxu1 %v10675_v61  ;;  %v10733_v61 = vld [vmem:[%s14527_s3 + $0x528] ss:$16 sps:$4 sm:$0xff]  }
 0x1d3   : > { %3473 = vmatpush1.bf16.msra.mxu0 %v10670_v62  ;;  %v10738_v62 = vld [vmem:[%s14527_s3 + $0x7e4] ss:$16 sps:$4 sm:$0xff]  }
 0x1d4   : > { %2884 = vmatpush1.bf16.msra.mxu1 %v10673_v63  ;;  %3474 = vmatprep.subr.bf16.mxu0 %v10678_v43  ;;  %v10741_v63 = vld [vmem:[%s14527_s3 + $0x54c] ss:$16 sps:$4 sm:$0xff]   ;;  %v10736_v43 = vld [vmem:[%s14527_s3 + $0x7e0] ss:$16 sps:$4 sm:$0xff]  }
 0x1d5   : > { %2885 = vmatprep.subr.bf16.mxu1 %v10681_v0  ;;  %v10744_v0 = vld [vmem:[%s14527_s3 + $0x804] ss:$16 sps:$4 sm:$0xff]  }
 0x1d7   : > { %3475 = vmatpush1.bf16.msra.mxu0 %v10676_v3  ;;  %v10747_v3 = vld [vmem:[%s14527_s3 + $0x56c] ss:$16 sps:$4 sm:$0xff]  }
 0x1d8   : > { %2886 = vmatpush1.bf16.msra.mxu1 %v10679_v4  ;;  %3476 = vmatprep.subr.bf16.mxu0 %v10684_v5  ;;  %v10742_v4 = vld [vmem:[%s14527_s3 + $0x800] ss:$16 sps:$4 sm:$0xff]   ;;  %v10745_v5 = vld [vmem:[%s14527_s3 + $0x568] ss:$16 sps:$4 sm:$0xff]  }
 0x1d9   : > { %2887 = vmatprep.subr.bf16.mxu1 %v10687_v6  ;;  %v10750_v6 = vld [vmem:[%s14527_s3 + $0x824] ss:$16 sps:$4 sm:$0xff]  }
 0x1db   : > { %3477 = vmatpush1.bf16.msra.mxu0 %v10682_v7  ;;  %v10753_v7 = vld [vmem:[%s14527_s3 + $0x58c] ss:$16 sps:$4 sm:$0xff]  }
 0x1dc   : > { %2888 = vmatpush1.bf16.msra.mxu1 %v10685_v8  ;;  %3478 = vmatprep.subr.bf16.mxu0 %v10690_v10  ;;  %v10748_v8 = vld [vmem:[%s14527_s3 + $0x820] ss:$16 sps:$4 sm:$0xff]   ;;  %v10751_v10 = vld [vmem:[%s14527_s3 + $0x588] ss:$16 sps:$4 sm:$0xff]  }
 0x1dd   : > { %2889 = vmatprep.subr.bf16.mxu1 %v10693_v53  ;;  %v10756_v53 = vld [vmem:[%s14527_s3 + $0x844] ss:$16 sps:$4 sm:$0xff]  }
 0x1df   : > { %3479 = vmatpush1.bf16.msra.mxu0 %v10688_v11  ;;  %v10759_v11 = vld [vmem:[%s14527_s3 + $0x5ac] ss:$16 sps:$4 sm:$0xff]  }
 0x1e0   : > { %2890 = vmatpush1.bf16.msra.mxu1 %v10691_v12  ;;  %3491 = vmatprep.subr.bf16.mxu0 %v10696_v13  ;;  %v10754_v12 = vld [vmem:[%s14527_s3 + $0x840] ss:$16 sps:$4 sm:$0xff]   ;;  %v10757_v13 = vld [vmem:[%s14527_s3 + $0x5a8] ss:$16 sps:$4 sm:$0xff]  }
 0x1e1   : > { %2891 = vmatprep.subr.bf16.mxu1 %v10699_v17  ;;  %v10765_v17 = vld [vmem:[%s14527_s3 + $0x5cc] ss:$16 sps:$4 sm:$0xff]  }
 0x1e2   : > { %3481 = vmatmul.mubr.bf16.vlgmr.msra.gmra.mrb[8].mxu0 %v12591_v24 }
 0x1e3   : > { %3492 = vmatpush1.bf16.msra.mxu0 %v10694_v20  ;;  %3523 = vmatprep.mubr.bf16.mxu0 %v11539_v2  ;;  %v10763_v20 = vld [vmem:[%s14527_s3 + $0x5c8] ss:$16 sps:$4 sm:$0xff]  }
 0x1e4   : > { %2892 = vmatpush1.bf16.msra.mxu1 %v10697_v21  ;;  %3493 = vmatprep.subr.bf16.mxu0 %v10702_v23  ;;  %v10768_v21 = vld [vmem:[%s14527_s3 + $0x884] ss:$16 sps:$4 sm:$0xff]   ;;  %v10771_v23 = vld [vmem:[%s14527_s3 + $0x5ec] ss:$16 sps:$4 sm:$0xff]  }
 0x1e5   : > { %2904 = vmatprep.subr.bf16.mxu1 %v10705_v25  ;;  %v10766_v25 = vld [vmem:[%s14527_s3 + $0x880] ss:$16 sps:$4 sm:$0xff]  }
 0x1e7   : > { %2894 = vmatmul.mubr.bf16.vlgmr.msra.gmra.mrb[8].mxu1 %v12096_v15  ;;  %3494 = vmatpush1.bf16.msra.mxu0 %v10700_v22  ;;  %v10769_v22 = vld [vmem:[%s14527_s3 + $0x5e8] ss:$16 sps:$4 sm:$0xff]  }
 0x1e8   : > { %2905 = vmatpush1.bf16.msra.mxu1 %v10703_v26  ;;  %3495 = vmatprep.subr.bf16.mxu0 %v10708_v28  ;;  %v10774_v26 = vld [vmem:[%s14527_s3 + $0x8a4] ss:$16 sps:$4 sm:$0xff]   ;;  %v10777_v28 = vld [vmem:[%s14527_s3 + $0x60c] ss:$16 sps:$4 sm:$0xff]  }
 0x1e9   : > { %2906 = vmatprep.subr.bf16.mxu1 %v10711_v31  ;;  %2936 = vmatprep.mubr.bf16.mxu1 %v11539_v2  ;;  %v10772_v31 = vld [vmem:[%s14527_s3 + $0x8a0] ss:$16 sps:$4 sm:$0xff]  }
 0x1eb   : > { %3496 = vmatpush1.bf16.msra.mxu0 %v10706_v32  ;;  %v10775_v32 = vld [vmem:[%s14527_s3 + $0x608] ss:$16 sps:$4 sm:$0xff]  }
 0x1ec   : > { %2907 = vmatpush1.bf16.msra.mxu1 %v10709_v33  ;;  %3497 = vmatprep.subr.bf16.mxu0 %v10714_v39  ;;  %v10780_v33 = vld [vmem:[%s14527_s3 + $0x8c4] ss:$16 sps:$4 sm:$0xff]   ;;  %v10783_v39 = vld [vmem:[%s14527_s3 + $0x62c] ss:$16 sps:$4 sm:$0xff]  }
 0x1ed   : > { %2908 = vmatprep.subr.bf16.mxu1 %v10717_v42  ;;  %v10778_v42 = vld [vmem:[%s14527_s3 + $0x8c0] ss:$16 sps:$4 sm:$0xff]  }
 0x1ef   : > { %3498 = vmatpush1.bf16.msra.mxu0 %v10712_v44  ;;  %v10781_v44 = vld [vmem:[%s14527_s3 + $0x628] ss:$16 sps:$4 sm:$0xff]  }
 0x1f0   : > { %2909 = vmatpush1.bf16.msra.mxu1 %v10715_v46  ;;  %4141 = vmatprep.subr.bf16.mxu0 %v10720_v47  ;;  %v10786_v46 = vld [vmem:[%s14527_s3 + $0x8e4] ss:$16 sps:$4 sm:$0xff]   ;;  %v10789_v47 = vld [vmem:[%s14527_s3 + $0x64c] ss:$16 sps:$4 sm:$0xff]  }
 0x1f1   : > { %2910 = vmatprep.subr.bf16.mxu1 %v10723_v50  ;;  %v10792_v50 = vld [vmem:[%s14527_s3 + $0x904] ss:$16 sps:$4 sm:$0xff]  }
 0x1f2   : > { %9039 = vmatmul.mubr.msk.bf16.vlgmr.msra.gmra.mrb[8].mxu0 %vm2197_vm6, %v12648_v55 }
 0x1f3   : > { %4142 = vmatpush1.bf16.msra.mxu0 %v10718_v51  ;;  %4173 = vmatprep.mubr.bf16.mxu0 %v12163_v27  ;;  %v10795_v51 = vld [vmem:[%s14527_s3 + $0x66c] ss:$16 sps:$4 sm:$0xff]  }
 0x1f4   : > { %2911 = vmatpush1.bf16.msra.mxu1 %v10721_v52  ;;  %4143 = vmatprep.subr.bf16.mxu0 %v10726_v54  ;;  %v10790_v52 = vld [vmem:[%s14527_s3 + $0x900] ss:$16 sps:$4 sm:$0xff]   ;;  %v10793_v54 = vld [vmem:[%s14527_s3 + $0x668] ss:$16 sps:$4 sm:$0xff]  }
 0x1f5   : > { %3534 = vmatprep.subr.bf16.mxu1 %v10729_v56  ;;  %v10798_v56 = vld [vmem:[%s14527_s3 + $0x924] ss:$16 sps:$4 sm:$0xff]  }
 0x1f7   : > { %8878 = vmatmul.mubr.msk.bf16.vlgmr.msra.gmra.mrb[8].mxu1 %vm2197_vm6, %v12100_v19  ;;  %4144 = vmatpush1.bf16.msra.mxu0 %v10724_v1  ;;  %v10801_v1 = vld [vmem:[%s14527_s3 + $0x68c] ss:$16 sps:$4 sm:$0xff]  }
 0x1f8   : > { %3535 = vmatpush1.bf16.msra.mxu1 %v10727_v57  ;;  %3566 = vmatprep.mubr.bf16.mxu1 %v12396_v40  ;;  %v10739_v40 = vld [vmem:[%s14527_s3 + $0x548] ss:$16 sps:$4 sm:$0xff]   ;;  %v10796_v57 = vld [vmem:[%s14527_s3 + $0x920] ss:$16 sps:$4 sm:$0xff]  }
 0x1f9   : > { %4145 = vmatprep.subr.bf16.mxu0 %v10732_v58  ;;  %3536 = vmatprep.subr.bf16.mxu1 %v10735_v59  ;;  %v10799_v58 = vld [vmem:[%s14527_s3 + $0x688] ss:$16 sps:$4 sm:$0xff]   ;;  %v10804_v59 = vld [vmem:[%s14527_s3 + $0x944] ss:$16 sps:$4 sm:$0xff]  }
 0x1fb   : > { %4146 = vmatpush1.bf16.msra.mxu0 %v10730_v60  ;;  %v10807_v60 = vld [vmem:[%s14527_s3 + $0x6ac] ss:$16 sps:$4 sm:$0xff]  }
 0x1fc   : > { %3537 = vmatpush1.bf16.msra.mxu1 %v10733_v61  ;;  %4147 = vmatprep.subr.bf16.mxu0 %v10738_v62  ;;  %v10802_v61 = vld [vmem:[%s14527_s3 + $0x940] ss:$16 sps:$4 sm:$0xff]   ;;  %v10805_v62 = vld [vmem:[%s14527_s3 + $0x6a8] ss:$16 sps:$4 sm:$0xff]  }
 0x1fd   : > { %3538 = vmatprep.subr.bf16.mxu1 %v10741_v63  ;;  %v10810_v63 = vld [vmem:[%s14527_s3 + $0x964] ss:$16 sps:$4 sm:$0xff]  }
 0x1ff   : > { %4148 = vmatpush1.bf16.msra.mxu0 %v10736_v43  ;;  %v10813_v43 = vld [vmem:[%s14527_s3 + $0x6cc] ss:$16 sps:$4 sm:$0xff]  }
 0x200   : > { %3539 = vmatpush1.bf16.msra.mxu1 %v10739_v40  ;;  %4149 = vmatprep.subr.bf16.mxu0 %v10744_v0 }
 0x201   : > { %3540 = vmatprep.subr.bf16.mxu1 %v10747_v3  ;;  %v10808_v3 = vld [vmem:[%s14527_s3 + $0x960] ss:$16 sps:$4 sm:$0xff]  }
 0x203   : > { %4150 = vmatpush1.bf16.msra.mxu0 %v10742_v4 }
 0x204   : > { %3541 = vmatpush1.bf16.msra.mxu1 %v10745_v5  ;;  %4151 = vmatprep.subr.bf16.mxu0 %v10750_v6  ;;  %v10811_v5 = vld [vmem:[%s14527_s3 + $0x6c8] ss:$16 sps:$4 sm:$0xff]   ;;  %v10816_v6 = vld [vmem:[%s14527_s3 + $0x984] ss:$16 sps:$4 sm:$0xff]  }
 0x205   : > { %3542 = vmatprep.subr.bf16.mxu1 %v10753_v7 }
 0x207   : > { %4152 = vmatpush1.bf16.msra.mxu0 %v10748_v8  ;;  %v10819_v8 = vld [vmem:[%s14527_s3 + $0x6ec] ss:$16 sps:$4 sm:$0xff]  }
 0x208   : > { %3543 = vmatpush1.bf16.msra.mxu1 %v10751_v10  ;;  %4153 = vmatprep.subr.bf16.mxu0 %v10756_v53  ;;  %v10814_v10 = vld [vmem:[%s14527_s3 + $0x980] ss:$16 sps:$4 sm:$0xff]   ;;  %v10817_v53 = vld [vmem:[%s14527_s3 + $0x6e8] ss:$16 sps:$4 sm:$0xff]  }
 0x209   : > { %3544 = vmatprep.subr.bf16.mxu1 %v10759_v11  ;;  %v10822_v11 = vld [vmem:[%s14527_s3 + $0x9a4] ss:$16 sps:$4 sm:$0xff]  }
 0x20b   : > { %4154 = vmatpush1.bf16.msra.mxu0 %v10754_v12  ;;  %v10825_v12 = vld [vmem:[%s14527_s3 + $0x70c] ss:$16 sps:$4 sm:$0xff]  }
 0x20c   : > { %3545 = vmatpush1.bf16.msra.mxu1 %v10757_v13  ;;  %4155 = vmatprep.subr.bf16.mxu0 %v10762_v14  ;;  %v10820_v13 = vld [vmem:[%s14527_s3 + $0x9a0] ss:$16 sps:$4 sm:$0xff]   ;;  %v10823_v14 = vld [vmem:[%s14527_s3 + $0x708] ss:$16 sps:$4 sm:$0xff]  }
 0x20d   : > { %3546 = vmatprep.subr.bf16.mxu1 %v10765_v17  ;;  %v10828_v17 = vld [vmem:[%s14527_s3 + $0x9c4] ss:$16 sps:$4 sm:$0xff]  }
 0x20f   : > { %4156 = vmatpush1.bf16.msra.mxu0 %v10760_v16  ;;  %v10831_v16 = vld [vmem:[%s14527_s3 + $0x72c] ss:$16 sps:$4 sm:$0xff]  }
 0x210   : > { %3547 = vmatpush1.bf16.msra.mxu1 %v10763_v20  ;;  %4157 = vmatprep.subr.bf16.mxu0 %v10768_v21  ;;  %v10826_v20 = vld [vmem:[%s14527_s3 + $0x9c0] ss:$16 sps:$4 sm:$0xff]   ;;  %v10829_v21 = vld [vmem:[%s14527_s3 + $0x728] ss:$16 sps:$4 sm:$0xff]  }
 0x211   : > { %3548 = vmatprep.subr.bf16.mxu1 %v10771_v23  ;;  %v10834_v23 = vld [vmem:[%s14527_s3 + $0x9e4] ss:$16 sps:$4 sm:$0xff]  }
 0x213   : > { %4158 = vmatpush1.bf16.msra.mxu0 %v10766_v25  ;;  %v10832_v25 = vld [vmem:[%s14527_s3 + $0x9e0] ss:$16 sps:$4 sm:$0xff]  }
 0x214   : > { %3549 = vmatpush1.bf16.msra.mxu1 %v10769_v22  ;;  %4159 = vmatprep.subr.bf16.mxu0 %v10774_v26  ;;  %v10835_v22 = vld [vmem:[%s14527_s3 + $0x748] ss:$16 sps:$4 sm:$0xff]   ;;  %v10840_v26 = vld [vmem:[%s14527_s3 + $0xa04] ss:$16 sps:$4 sm:$0xff]  }
 0x215   : > { %3550 = vmatprep.subr.bf16.mxu1 %v10777_v28  ;;  %v10843_v28 = vld [vmem:[%s14527_s3 + $0x76c] ss:$16 sps:$4 sm:$0xff]  }
 0x217   : > { %4160 = vmatpush1.bf16.msra.mxu0 %v10772_v31  ;;  %v4406_v31 = vrot.slane %v12113_v45, 2  ;;  %v10849_v45 = vld [vmem:[%s14527_s3 + $0x78c] ss:$16 sps:$4 sm:$0xff]  }
 0x218   : > { %3551 = vmatpush1.bf16.msra.mxu1 %v10775_v32  ;;  %4161 = vmatprep.subr.bf16.mxu0 %v10780_v33  ;;  %v10838_v32 = vld [vmem:[%s14527_s3 + $0xa00] ss:$16 sps:$4 sm:$0xff]   ;;  %v10841_v33 = vld [vmem:[%s14527_s3 + $0x768] ss:$16 sps:$4 sm:$0xff]  }
 0x219   : > { %3552 = vmatprep.subr.bf16.mxu1 %v10783_v39  ;;  %v4405_v39 = vrot.slane %v12098_v18, 2  ;;  %v10844_v18 = vld [vmem:[%s14527_s3 + $0xa20] ss:$16 sps:$4 sm:$0xff]  }
 0x21b   : > { %4162 = vmatpush1.bf16.msra.mxu0 %v10778_v42  ;;  %v10846_v42 = vld [vmem:[%s14527_s3 + $0xa24] ss:$16 sps:$4 sm:$0xff]  }
 0x21c   : > { %3553 = vmatpush1.bf16.msra.mxu1 %v10781_v44  ;;  %4163 = vmatprep.subr.bf16.mxu0 %v10786_v46  ;;  %v12916_v44 = vsel %vm1331_vm3, %v4405_v39, %v4406_v31  ;;  %v10847_v46 = vld [vmem:[%s14527_s3 + $0x788] ss:$16 sps:$4 sm:$0xff]   ;;  %v10910_v39 = vld [vmem:[%s14527_s3 + $0xb80] ss:$16 sps:$4 sm:$0xff]  }
 0x21d   : > { %3554 = vmatprep.subr.bf16.mxu1 %v10789_v47  ;;  %v10852_v47 = vld [vmem:[%s14527_s3 + $0xa44] ss:$16 sps:$4 sm:$0xff]   ;;  %v10907_v31 = vld [vmem:[%s14527_s3 + $0x8c8] ss:$16 sps:$4 sm:$0xff]  }
 0x21f   : > { %4164 = vmatpush1.bf16.msra.mxu0 %v10784_v48  ;;  %v10855_v48 = vld [vmem:[%s14527_s3 + $0x7ac] ss:$16 sps:$4 sm:$0xff]  }
 0x220   : > { %3555 = vmatpush1.bf16.msra.mxu1 %v10787_v49  ;;  %4165 = vmatprep.subr.bf16.mxu0 %v10792_v50  ;;  %v10850_v49 = vld [vmem:[%s14527_s3 + $0xa40] ss:$16 sps:$4 sm:$0xff]   ;;  %v10853_v50 = vld [vmem:[%s14527_s3 + $0x7a8] ss:$16 sps:$4 sm:$0xff]  }
 0x221   : > { %3556 = vmatprep.subr.bf16.mxu1 %v10795_v51  ;;  %v10858_v51 = vld [vmem:[%s14527_s3 + $0xa64] ss:$16 sps:$4 sm:$0xff]  }
 0x223   : > { %4166 = vmatpush1.bf16.msra.mxu0 %v10790_v52  ;;  %v10856_v52 = vld [vmem:[%s14527_s3 + $0xa60] ss:$16 sps:$4 sm:$0xff]  }
 0x224   : > { %3557 = vmatpush1.bf16.msra.mxu1 %v10793_v54  ;;  %4167 = vmatprep.subr.bf16.mxu0 %v10798_v56  ;;  %v10864_v54 = vld [vmem:[%s14527_s3 + $0xa84] ss:$16 sps:$4 sm:$0xff]   ;;  %v10867_v56 = vld [vmem:[%s14527_s3 + $0x7ec] ss:$16 sps:$4 sm:$0xff]  }
 0x225   : > { %3558 = vmatprep.subr.bf16.mxu1 %v10801_v1  ;;  %v10862_v1 = vld [vmem:[%s14527_s3 + $0xa80] ss:$16 sps:$4 sm:$0xff]  }
 0x227   : > { %4168 = vmatpush1.bf16.msra.mxu0 %v10796_v57  ;;  %v10865_v57 = vld [vmem:[%s14527_s3 + $0x7e8] ss:$16 sps:$4 sm:$0xff]  }
 0x228   : > { %3559 = vmatpush1.bf16.msra.mxu1 %v10799_v58  ;;  %4169 = vmatprep.subr.bf16.mxu0 %v10804_v59  ;;  %v10870_v58 = vld [vmem:[%s14527_s3 + $0xaa4] ss:$16 sps:$4 sm:$0xff]   ;;  %v10873_v59 = vld [vmem:[%s14527_s3 + $0x80c] ss:$16 sps:$4 sm:$0xff]  }
 0x229   : > { %3560 = vmatprep.subr.bf16.mxu1 %v10807_v60  ;;  %v12827_v40 = vpop.f32.mrb[4].mxu1  ;;  %v10868_v60 = vld [vmem:[%s14527_s3 + $0xaa0] ss:$16 sps:$4 sm:$0xff]  }
 0x22a   : > { %v12829_v0 = vpop.f32.mrb[5].mxu1 }
 0x22b   : > { %4170 = vmatpush1.bf16.msra.mxu0 %v10802_v61  ;;  %v12834_v4 = vpop.f32.mrb[6].mxu1  ;;  %v10871_v61 = vld [vmem:[%s14527_s3 + $0x808] ss:$16 sps:$4 sm:$0xff]  }
 0x22c   : > { %3561 = vmatpush1.bf16.msra.mxu1 %v10805_v62  ;;  %4171 = vmatprep.subr.bf16.mxu0 %v10810_v63  ;;  %v12842_v7 = vpop.f32.mrb[7].mxu1  ;;  %v10876_v62 = vld [vmem:[%s14527_s3 + $0xac4] ss:$16 sps:$4 sm:$0xff]   ;;  %v10879_v63 = vld [vmem:[%s14527_s3 + $0x82c] ss:$16 sps:$4 sm:$0xff]  }
 0x22d   : > { %3562 = vmatprep.subr.bf16.mxu1 %v10813_v43  ;;  %v10874_v43 = vld [vmem:[%s14527_s3 + $0xac0] ss:$16 sps:$4 sm:$0xff]  }
 0x22f   : > { %4172 = vmatpush1.bf16.msra.mxu0 %v10808_v3  ;;  %v10877_v3 = vld [vmem:[%s14527_s3 + $0x828] ss:$16 sps:$4 sm:$0xff]  }
 0x230   : > { %3563 = vmatpush1.bf16.msra.mxu1 %v10811_v5  ;;  %4184 = vmatprep.subr.bf16.mxu0 %v10816_v6  ;;  %v10882_v5 = vld [vmem:[%s14527_s3 + $0xae4] ss:$16 sps:$4 sm:$0xff]   ;;  %v10885_v6 = vld [vmem:[%s14527_s3 + $0x84c] ss:$16 sps:$4 sm:$0xff]  }
 0x231   : > { %3564 = vmatprep.subr.bf16.mxu1 %v10819_v8  ;;  %v10880_v8 = vld [vmem:[%s14527_s3 + $0xae0] ss:$16 sps:$4 sm:$0xff]  }
 0x232   : > { %4174 = vmatmul.mubr.bf16.vlgmr.msra.gmra.mrb[8].mxu0 %v12169_v30 }
 0x233   : > { %4185 = vmatpush1.bf16.msra.mxu0 %v10814_v10  ;;  %4216 = vmatprep.mubr.bf16.mxu0 %v11539_v2  ;;  %v10883_v10 = vld [vmem:[%s14527_s3 + $0x848] ss:$16 sps:$4 sm:$0xff]  }
 0x234   : > { %3565 = vmatpush1.bf16.msra.mxu1 %v10817_v53  ;;  %4186 = vmatprep.subr.bf16.mxu0 %v10822_v11  ;;  %v10888_v53 = vld [vmem:[%s14527_s3 + $0xb04] ss:$16 sps:$4 sm:$0xff]   ;;  %v10891_v11 = vld [vmem:[%s14527_s3 + $0x86c] ss:$16 sps:$4 sm:$0xff]  }
 0x235   : > { %3577 = vmatprep.subr.bf16.mxu1 %v10825_v12  ;;  %v10886_v12 = vld [vmem:[%s14527_s3 + $0xb00] ss:$16 sps:$4 sm:$0xff]  }
 0x237   : > { %3567 = vmatmul.mubr.bf16.vlgmr.msra.gmra.mrb[8].mxu1 %v12591_v24  ;;  %4187 = vmatpush1.bf16.msra.mxu0 %v10820_v13  ;;  %v10837_v24 = vld [vmem:[%s14527_s3 + $0x74c] ss:$16 sps:$4 sm:$0xff]   ;;  %v10889_v13 = vld [vmem:[%s14527_s3 + $0x868] ss:$16 sps:$4 sm:$0xff]  }
 0x238   : > { %3578 = vmatpush1.bf16.msra.mxu1 %v10823_v14  ;;  %4188 = vmatprep.subr.bf16.mxu0 %v10828_v17  ;;  %v10894_v14 = vld [vmem:[%s14527_s3 + $0xb24] ss:$16 sps:$4 sm:$0xff]   ;;  %v10897_v17 = vld [vmem:[%s14527_s3 + $0x88c] ss:$16 sps:$4 sm:$0xff]  }
 0x239   : > { %3579 = vmatprep.subr.bf16.mxu1 %v10831_v16  ;;  %3609 = vmatprep.mubr.bf16.mxu1 %v11539_v2  ;;  %v10892_v16 = vld [vmem:[%s14527_s3 + $0xb20] ss:$16 sps:$4 sm:$0xff]  }
 0x23b   : > { %4189 = vmatpush1.bf16.msra.mxu0 %v10826_v20  ;;  %v10895_v20 = vld [vmem:[%s14527_s3 + $0x888] ss:$16 sps:$4 sm:$0xff]  }
 0x23c   : > { %3580 = vmatpush1.bf16.msra.mxu1 %v10829_v21  ;;  %4190 = vmatprep.subr.bf16.mxu0 %v10834_v23  ;;  %v10900_v21 = vld [vmem:[%s14527_s3 + $0xb44] ss:$16 sps:$4 sm:$0xff]   ;;  %v10903_v23 = vld [vmem:[%s14527_s3 + $0x8ac] ss:$16 sps:$4 sm:$0xff]  }
 0x23d   : > { %3581 = vmatprep.subr.bf16.mxu1 %v10837_v24  ;;  %v10898_v24 = vld [vmem:[%s14527_s3 + $0xb40] ss:$16 sps:$4 sm:$0xff]  }
 0x23f   : > { %4191 = vmatpush1.bf16.msra.mxu0 %v10832_v25  ;;  %v10901_v25 = vld [vmem:[%s14527_s3 + $0x8a8] ss:$16 sps:$4 sm:$0xff]  }
 0x240   : > { %3582 = vmatpush1.bf16.msra.mxu1 %v10835_v22  ;;  %4816 = vmatprep.subr.bf16.mxu0 %v10840_v26  ;;  %v10906_v22 = vld [vmem:[%s14527_s3 + $0xb64] ss:$16 sps:$4 sm:$0xff]   ;;  %v10909_v26 = vld [vmem:[%s14527_s3 + $0x8cc] ss:$16 sps:$4 sm:$0xff]  }
 0x241   : > { %3583 = vmatprep.subr.bf16.mxu1 %v10843_v28  ;;  %v10904_v28 = vld [vmem:[%s14527_s3 + $0xb60] ss:$16 sps:$4 sm:$0xff]  }
 0x242   : > { %9201 = vmatmul.mubr.msk.bf16.vlgmr.msra.gmra.mrb[8].mxu0 %vm2197_vm6, %v12166_v29 }
 0x243   : > { %4817 = vmatpush1.bf16.msra.mxu0 %v10838_v32  ;;  %4848 = vmatprep.mubr.bf16.mxu0 %v12916_v44  ;;  %v10912_v32 = vld [vmem:[%s14527_s3 + $0xb84] ss:$16 sps:$4 sm:$0xff]  }
 0x244   : > { %3584 = vmatpush1.bf16.msra.mxu1 %v10841_v33  ;;  %4818 = vmatprep.subr.bf16.mxu0 %v10846_v42  ;;  %v10915_v33 = vld [vmem:[%s14527_s3 + $0x8ec] ss:$16 sps:$4 sm:$0xff]   ;;  %v10913_v42 = vld [vmem:[%s14527_s3 + $0x8e8] ss:$16 sps:$4 sm:$0xff]  }
 0x245   : > { %4227 = vmatprep.subr.bf16.mxu1 %v10849_v45  ;;  %v10918_v45 = vld [vmem:[%s14527_s3 + $0xba4] ss:$16 sps:$4 sm:$0xff]  }
 0x247   : > { %9040 = vmatmul.mubr.msk.bf16.vlgmr.msra.gmra.mrb[8].mxu1 %vm2197_vm6, %v12648_v55  ;;  %4819 = vmatpush1.bf16.msra.mxu0 %v10844_v18  ;;  %v10861_v55 = vld [vmem:[%s14527_s3 + $0x7cc] ss:$16 sps:$4 sm:$0xff]  }
 0x248   : > { %4228 = vmatpush1.bf16.msra.mxu1 %v10847_v46  ;;  %4259 = vmatprep.mubr.bf16.mxu1 %v12163_v27  ;;  %v10859_v27 = vld [vmem:[%s14527_s3 + $0x7c8] ss:$16 sps:$4 sm:$0xff]   ;;  %v10921_v18 = vld [vmem:[%s14527_s3 + $0x90c] ss:$16 sps:$4 sm:$0xff]   ;;  %v10916_v46 = vld [vmem:[%s14527_s3 + $0xba0] ss:$16 sps:$4 sm:$0xff]  }
 0x249   : > { %4820 = vmatprep.subr.bf16.mxu0 %v10852_v47  ;;  %4229 = vmatprep.subr.bf16.mxu1 %v10855_v48  ;;  %v10919_v47 = vld [vmem:[%s14527_s3 + $0x908] ss:$16 sps:$4 sm:$0xff]   ;;  %v10924_v48 = vld [vmem:[%s14527_s3 + $0xbc4] ss:$16 sps:$4 sm:$0xff]  }
 0x24b   : > { %4821 = vmatpush1.bf16.msra.mxu0 %v10850_v49  ;;  %v10927_v49 = vld [vmem:[%s14527_s3 + $0x92c] ss:$16 sps:$4 sm:$0xff]  }
 0x24c   : > { %4230 = vmatpush1.bf16.msra.mxu1 %v10853_v50  ;;  %4822 = vmatprep.subr.bf16.mxu0 %v10858_v51  ;;  %v10922_v50 = vld [vmem:[%s14527_s3 + $0xbc0] ss:$16 sps:$4 sm:$0xff]   ;;  %v10925_v51 = vld [vmem:[%s14527_s3 + $0x928] ss:$16 sps:$4 sm:$0xff]  }
 0x24d   : > { %4231 = vmatprep.subr.bf16.mxu1 %v10861_v55  ;;  %v10930_v55 = vld [vmem:[%s14527_s3 + $0xbe4] ss:$16 sps:$4 sm:$0xff]  }
 0x24f   : > { %4823 = vmatpush1.bf16.msra.mxu0 %v10856_v52  ;;  %v10933_v52 = vld [vmem:[%s14527_s3 + $0x94c] ss:$16 sps:$4 sm:$0xff]  }
 0x250   : > { %4232 = vmatpush1.bf16.msra.mxu1 %v10859_v27  ;;  %4824 = vmatprep.subr.bf16.mxu0 %v10864_v54  ;;  %v10928_v27 = vld [vmem:[%s14527_s3 + $0xbe0] ss:$16 sps:$4 sm:$0xff]   ;;  %v10931_v54 = vld [vmem:[%s14527_s3 + $0x948] ss:$16 sps:$4 sm:$0xff]  }
 0x251   : > { %4233 = vmatprep.subr.bf16.mxu1 %v10867_v56  ;;  %v10936_v56 = vld [vmem:[%s14527_s3 + $0xc04] ss:$16 sps:$4 sm:$0xff]  }
 0x253   : > { %4825 = vmatpush1.bf16.msra.mxu0 %v10862_v1  ;;  %v4403_v1 = vrot.slane %v12108_v36, 2  ;;  %v10942_v36 = vld [vmem:[%s14527_s3 + $0xc24] ss:$16 sps:$4 sm:$0xff]  }
 0x254   : > { %4234 = vmatpush1.bf16.msra.mxu1 %v10865_v57  ;;  %4826 = vmatprep.subr.bf16.mxu0 %v10870_v58  ;;  %v10939_v57 = vld [vmem:[%s14527_s3 + $0x96c] ss:$16 sps:$4 sm:$0xff]   ;;  %v4402_v58 = vrot.slane %v12096_v15, 2 }
 0x255   : > { %4235 = vmatprep.subr.bf16.mxu1 %v10873_v59  ;;  %v10934_v59 = vld [vmem:[%s14527_s3 + $0xc00] ss:$16 sps:$4 sm:$0xff]   ;;  %v10945_v15 = vld [vmem:[%s14527_s3 + $0x98c] ss:$16 sps:$4 sm:$0xff]  }
 0x257   : > { %4827 = vmatpush1.bf16.msra.mxu0 %v10868_v60  ;;  %v10937_v60 = vld [vmem:[%s14527_s3 + $0x968] ss:$16 sps:$4 sm:$0xff]  }
 0x258   : > { %4236 = vmatpush1.bf16.msra.mxu1 %v10871_v61  ;;  %4828 = vmatprep.subr.bf16.mxu0 %v10876_v62  ;;  %v13114_v61 = vsel %vm1331_vm3, %v4402_v58, %v4403_v1  ;;  %v10940_v62 = vld [vmem:[%s14527_s3 + $0xc20] ss:$16 sps:$4 sm:$0xff]   ;;  %v11006_v1 = vld [vmem:[%s14527_s3 + $0xbe8] ss:$16 sps:$4 sm:$0xff]  }
 0x259   : > { %4237 = vmatprep.subr.bf16.mxu1 %v10879_v63  ;;  %v10943_v63 = vld [vmem:[%s14527_s3 + $0x988] ss:$16 sps:$4 sm:$0xff]  }
 0x25a   : > { %v11009_v58 = vld [vmem:[%s14527_s3 + $0xc08] ss:$16 sps:$4 sm:$0xff]  }
 0x25b   : > { %4829 = vmatpush1.bf16.msra.mxu0 %v10874_v43  ;;  %v10948_v43 = vld [vmem:[%s14527_s3 + $0xc44] ss:$16 sps:$4 sm:$0xff]  }
 0x25c   : > { %4238 = vmatpush1.bf16.msra.mxu1 %v10877_v3  ;;  %4830 = vmatprep.subr.bf16.mxu0 %v10882_v5  ;;  %v10951_v3 = vld [vmem:[%s14527_s3 + $0x9ac] ss:$16 sps:$4 sm:$0xff]   ;;  %v10946_v5 = vld [vmem:[%s14527_s3 + $0xc40] ss:$16 sps:$4 sm:$0xff]  }
 0x25d   : > { %4239 = vmatprep.subr.bf16.mxu1 %v10885_v6  ;;  %v10949_v6 = vld [vmem:[%s14527_s3 + $0x9a8] ss:$16 sps:$4 sm:$0xff]  }
 0x25f   : > { %4831 = vmatpush1.bf16.msra.mxu0 %v10880_v8  ;;  %v10954_v8 = vld [vmem:[%s14527_s3 + $0xc64] ss:$16 sps:$4 sm:$0xff]  }
 0x260   : > { %4240 = vmatpush1.bf16.msra.mxu1 %v10883_v10  ;;  %4832 = vmatprep.subr.bf16.mxu0 %v10888_v53  ;;  %v10952_v10 = vld [vmem:[%s14527_s3 + $0xc60] ss:$16 sps:$4 sm:$0xff]   ;;  %v10955_v53 = vld [vmem:[%s14527_s3 + $0x9c8] ss:$16 sps:$4 sm:$0xff]  }
 0x261   : > { %4241 = vmatprep.subr.bf16.mxu1 %v10891_v11  ;;  %v4408_v11 = vrot.slane %v12100_v19, 2  ;;  %v10963_v19 = vld [vmem:[%s14527_s3 + $0xa0c] ss:$16 sps:$4 sm:$0xff]  }
 0x263   : > { %4833 = vmatpush1.bf16.msra.mxu0 %v10886_v12  ;;  %v4409_v12 = vrot.slane %v12094_v9, 2  ;;  %v10961_v9 = vld [vmem:[%s14527_s3 + $0xa08] ss:$16 sps:$4 sm:$0xff]  }
 0x264   : > { %4242 = vmatpush1.bf16.msra.mxu1 %v10889_v13  ;;  %4834 = vmatprep.subr.bf16.mxu0 %v10894_v14  ;;  %v10960_v13 = vld [vmem:[%s14527_s3 + $0x9ec] ss:$16 sps:$4 sm:$0xff]   ;;  %v10958_v14 = vld [vmem:[%s14527_s3 + $0x9e8] ss:$16 sps:$4 sm:$0xff]  }
 0x265   : > { %4243 = vmatprep.subr.bf16.mxu1 %v10897_v17  ;;  %v13162_v17 = vsel %vm1331_vm3, %v4408_v11, %v4409_v12 }
 0x267   : > { %4835 = vmatpush1.bf16.msra.mxu0 %v10892_v16  ;;  %v10966_v16 = vld [vmem:[%s14527_s3 + $0xa2c] ss:$16 sps:$4 sm:$0xff]  }
 0x268   : > { %4244 = vmatpush1.bf16.msra.mxu1 %v10895_v20  ;;  %4836 = vmatprep.subr.bf16.mxu0 %v10900_v21  ;;  %v10964_v20 = vld [vmem:[%s14527_s3 + $0xa28] ss:$16 sps:$4 sm:$0xff]   ;;  %v10969_v21 = vld [vmem:[%s14527_s3 + $0xa4c] ss:$16 sps:$4 sm:$0xff]  }
 0x269   : > { %4245 = vmatprep.subr.bf16.mxu1 %v10903_v23  ;;  %v10967_v23 = vld [vmem:[%s14527_s3 + $0xa48] ss:$16 sps:$4 sm:$0xff]  }
 0x26b   : > { %4837 = vmatpush1.bf16.msra.mxu0 %v10898_v24  ;;  %v10975_v24 = vld [vmem:[%s14527_s3 + $0xa8c] ss:$16 sps:$4 sm:$0xff]  }
 0x26c   : > { %4246 = vmatpush1.bf16.msra.mxu1 %v10901_v25  ;;  %4838 = vmatprep.subr.bf16.mxu0 %v10906_v22  ;;  %v10973_v25 = vld [vmem:[%s14527_s3 + $0xa88] ss:$16 sps:$4 sm:$0xff]   ;;  %v10978_v22 = vld [vmem:[%s14527_s3 + $0xaac] ss:$16 sps:$4 sm:$0xff]  }
 0x26d   : > { %4247 = vmatprep.subr.bf16.mxu1 %v10909_v26  ;;  %v10976_v26 = vld [vmem:[%s14527_s3 + $0xaa8] ss:$16 sps:$4 sm:$0xff]  }
 0x26f   : > { %4839 = vmatpush1.bf16.msra.mxu0 %v10904_v28  ;;  %v10981_v28 = vld [vmem:[%s14527_s3 + $0xacc] ss:$16 sps:$4 sm:$0xff]  }
 0x270   : > { %4248 = vmatpush1.bf16.msra.mxu1 %v10907_v31  ;;  %4840 = vmatprep.subr.bf16.mxu0 %v10912_v32  ;;  %v10979_v31 = vld [vmem:[%s14527_s3 + $0xac8] ss:$16 sps:$4 sm:$0xff]   ;;  %v10984_v32 = vld [vmem:[%s14527_s3 + $0xaec] ss:$16 sps:$4 sm:$0xff]  }
 0x271   : > { %4249 = vmatprep.subr.bf16.mxu1 %v10915_v33  ;;  %v10982_v33 = vld [vmem:[%s14527_s3 + $0xae8] ss:$16 sps:$4 sm:$0xff]  }
 0x273   : > { %4841 = vmatpush1.bf16.msra.mxu0 %v10910_v39  ;;  %v10987_v39 = vld [vmem:[%s14527_s3 + $0xb0c] ss:$16 sps:$4 sm:$0xff]  }
 0x274   : > { %4250 = vmatpush1.bf16.msra.mxu1 %v10913_v42  ;;  %4842 = vmatprep.subr.bf16.mxu0 %v10918_v45  ;;  %v10985_v42 = vld [vmem:[%s14527_s3 + $0xb08] ss:$16 sps:$4 sm:$0xff]   ;;  %v10990_v45 = vld [vmem:[%s14527_s3 + $0xb2c] ss:$16 sps:$4 sm:$0xff]  }
 0x275   : > { %4251 = vmatprep.subr.bf16.mxu1 %v10921_v18  ;;  %v10988_v18 = vld [vmem:[%s14527_s3 + $0xb28] ss:$16 sps:$4 sm:$0xff]  }
 0x277   : > { %4843 = vmatpush1.bf16.msra.mxu0 %v10916_v46  ;;  %v10993_v46 = vld [vmem:[%s14527_s3 + $0xb4c] ss:$16 sps:$4 sm:$0xff]  }
 0x278   : > { %4252 = vmatpush1.bf16.msra.mxu1 %v10919_v47  ;;  %4844 = vmatprep.subr.bf16.mxu0 %v10924_v48  ;;  %v10991_v47 = vld [vmem:[%s14527_s3 + $0xb48] ss:$16 sps:$4 sm:$0xff]   ;;  %v10996_v48 = vld [vmem:[%s14527_s3 + $0xb6c] ss:$16 sps:$4 sm:$0xff]  }
 0x279   : > { %4253 = vmatprep.subr.bf16.mxu1 %v10927_v49  ;;  %v10994_v49 = vld [vmem:[%s14527_s3 + $0xb68] ss:$16 sps:$4 sm:$0xff]  }
 0x27b   : > { %4845 = vmatpush1.bf16.msra.mxu0 %v10922_v50  ;;  %v10999_v50 = vld [vmem:[%s14527_s3 + $0xb8c] ss:$16 sps:$4 sm:$0xff]  }
 0x27c   : > { %4254 = vmatpush1.bf16.msra.mxu1 %v10925_v51  ;;  %4846 = vmatprep.subr.bf16.mxu0 %v10930_v55  ;;  %v10997_v51 = vld [vmem:[%s14527_s3 + $0xb88] ss:$16 sps:$4 sm:$0xff]   ;;  %v11002_v55 = vld [vmem:[%s14527_s3 + $0xbac] ss:$16 sps:$4 sm:$0xff]  }
 0x27d   : > { %4255 = vmatprep.subr.bf16.mxu1 %v10933_v52  ;;  %v11000_v52 = vld [vmem:[%s14527_s3 + $0xba8] ss:$16 sps:$4 sm:$0xff]  }
 0x27f   : > { %4847 = vmatpush1.bf16.msra.mxu0 %v10928_v27  ;;  %v11005_v27 = vld [vmem:[%s14527_s3 + $0xbcc] ss:$16 sps:$4 sm:$0xff]  }
 0x280   : > { %4256 = vmatpush1.bf16.msra.mxu1 %v10931_v54  ;;  %4859 = vmatprep.subr.bf16.mxu0 %v10936_v56  ;;  %v11003_v54 = vld [vmem:[%s14527_s3 + $0xbc8] ss:$16 sps:$4 sm:$0xff]   ;;  %v11008_v56 = vld [vmem:[%s14527_s3 + $0xbec] ss:$16 sps:$4 sm:$0xff]  }
 0x281   : > { %4257 = vmatprep.subr.bf16.mxu1 %v10939_v57  ;;  %v11011_v57 = vld [vmem:[%s14527_s3 + $0xc0c] ss:$16 sps:$4 sm:$0xff]  }
 0x282   : > { %4849 = vmatmul.mubr.bf16.vlgmr.msra.gmra.mrb[8].mxu0 %v13114_v61 }
 0x283   : > { %4860 = vmatpush1.bf16.msra.mxu0 %v10934_v59  ;;  %4891 = vmatprep.mubr.bf16.mxu0 %v11539_v2  ;;  %v11014_v59 = vld [vmem:[%s14527_s3 + $0xc2c] ss:$16 sps:$4 sm:$0xff]  }
 0x284   : > { %4258 = vmatpush1.bf16.msra.mxu1 %v10937_v60  ;;  %4861 = vmatprep.subr.bf16.mxu0 %v10942_v36  ;;  %v11012_v60 = vld [vmem:[%s14527_s3 + $0xc28] ss:$16 sps:$4 sm:$0xff]   ;;  %v11017_v36 = vld [vmem:[%s14527_s3 + $0xc4c] ss:$16 sps:$4 sm:$0xff]  }
 0x285   : > { %4270 = vmatprep.subr.bf16.mxu1 %v10945_v15  ;;  %v11015_v15 = vld [vmem:[%s14527_s3 + $0xc48] ss:$16 sps:$4 sm:$0xff]  }
 0x287   : > { %4260 = vmatmul.mubr.bf16.vlgmr.msra.gmra.mrb[8].mxu1 %v12169_v30  ;;  %4862 = vmatpush1.bf16.msra.mxu0 %v10940_v62  ;;  %v10957_v30 = vld [vmem:[%s14527_s3 + $0x9cc] ss:$16 sps:$4 sm:$0xff]   ;;  %v11018_v62 = vld [vmem:[%s14527_s3 + $0xc68] ss:$16 sps:$4 sm:$0xff]  }
 0x288   : > { %4271 = vmatpush1.bf16.msra.mxu1 %v10943_v63  ;;  %4863 = vmatprep.subr.bf16.mxu0 %v10948_v43  ;;  %v4996_v63 = vld [vmem:[%s14528_s4] ss:$2 sm:$0xf]  ;;  %v9365_v43 = vld [vmem:[%s14528_s4 + $0x1] ss:$2 sm:$0xf] }
 0x289   : > { %4272 = vmatprep.subr.bf16.mxu1 %v10951_v3  ;;  %4302 = vmatprep.mubr.bf16.mxu1 %v11539_v2  ;;  %v5001_v3 = vrot.slane %v4996_v63, %v12077_v37  ;;  %v5036_v11 = vrot.slane %v9365_v43, %v12086_v41 }
 0x28b   : > { %4864 = vmatpush1.bf16.msra.mxu0 %v10946_v5 }
 0x28c   : > { %4273 = vmatpush1.bf16.msra.mxu1 %v10949_v6  ;;  %4865 = vmatprep.subr.bf16.mxu0 %v10954_v8  ;;  %v5005_v6 = vrot.slane %v4996_v63, %v12086_v41 }
 0x28d   : > { %4274 = vmatprep.subr.bf16.mxu1 %v10957_v30  ;;  %v5032_v30 = vrot.slane %v9365_v43, %v12077_v37 }
 0x28f   : > { %4866 = vmatpush1.bf16.msra.mxu0 %v10952_v10 }
 0x290   : > { %4275 = vmatpush1.bf16.msra.mxu1 %v10955_v53 }
 0x291   : > { %4276 = vmatprep.subr.bf16.mxu1 %v10960_v13 }
 0x292   : > { %9363 = vmatmul.mubr.msk.bf16.vlgmr.msra.gmra.mrb[8].mxu0 %vm2197_vm6, %v13162_v17 }
 0x293   : > { %5205 = vmatprep.mubr.bf16.mxu0 %v11539_v2 }
 0x294   : > { %4277 = vmatpush1.bf16.msra.mxu1 %v10958_v14 }
 0x295   : > { %4902 = vmatprep.subr.bf16.mxu1 %v10963_v19 }
 0x297   : > { %9202 = vmatmul.mubr.msk.bf16.vlgmr.msra.gmra.mrb[8].mxu1 %vm2197_vm6, %v12166_v29  ;;  %v10972_v29 = vld [vmem:[%s14527_s3 + $0xa6c] ss:$16 sps:$4 sm:$0xff]  }
 0x298   : > { %4903 = vmatpush1.bf16.msra.mxu1 %v10961_v9  ;;  %4934 = vmatprep.mubr.bf16.mxu1 %v12916_v44  ;;  %v10970_v44 = vld [vmem:[%s14527_s3 + $0xa68] ss:$16 sps:$4 sm:$0xff]  }
 0x299   : > { %4904 = vmatprep.subr.bf16.mxu1 %v10966_v16 }
 0x29c   : > { %4905 = vmatpush1.bf16.msra.mxu1 %v10964_v20 }
 0x29d   : > { %4906 = vmatprep.subr.bf16.mxu1 %v10969_v21 }
 0x2a0   : > { %4907 = vmatpush1.bf16.msra.mxu1 %v10967_v23 }
 0x2a1   : > { %4908 = vmatprep.subr.bf16.mxu1 %v10972_v29 }
 0x2a4   : > { %4909 = vmatpush1.bf16.msra.mxu1 %v10970_v44 }
 0x2a5   : > { %4910 = vmatprep.subr.bf16.mxu1 %v10975_v24 }
 0x2a8   : > { %4911 = vmatpush1.bf16.msra.mxu1 %v10973_v25 }
 0x2a9   : > { %4912 = vmatprep.subr.bf16.mxu1 %v10978_v22 }
 0x2ac   : > { %4913 = vmatpush1.bf16.msra.mxu1 %v10976_v26 }
 0x2ad   : > { %4914 = vmatprep.subr.bf16.mxu1 %v10981_v28 }
 0x2b0   : > { %4915 = vmatpush1.bf16.msra.mxu1 %v10979_v31 }
 0x2b1   : > { %4916 = vmatprep.subr.bf16.mxu1 %v10984_v32 }
 0x2b4   : > { %4917 = vmatpush1.bf16.msra.mxu1 %v10982_v33 }
 0x2b5   : > { %4918 = vmatprep.subr.bf16.mxu1 %v10987_v39 }
 0x2b8   : > { %4919 = vmatpush1.bf16.msra.mxu1 %v10985_v42 }
 0x2b9   : > { %4920 = vmatprep.subr.bf16.mxu1 %v10990_v45  ;;  %v5012_v45 = vsub.s32 3, %v12071_v35 }
 0x2bc   : > { %4921 = vmatpush1.bf16.msra.mxu1 %v10988_v18  ;;  %v5009_v18 = vrot.slane %v4996_v63, %v12080_v38 }
 0x2bd   : > { %4922 = vmatprep.subr.bf16.mxu1 %v10993_v46  ;;  %v5013_v46 = vrot.slane %v4996_v63, %v5012_v45 }
 0x2c0   : > { %4923 = vmatpush1.bf16.msra.mxu1 %v10991_v47  ;;  %v5040_v47 = vrot.slane %v9365_v43, %v12080_v38 }
 0x2c1   : > { %4924 = vmatprep.subr.bf16.mxu1 %v10996_v48 }
 0x2c4   : > { %4925 = vmatpush1.bf16.msra.mxu1 %v10994_v49  ;;  %v5044_v49 = vrot.slane %v9365_v43, %v5012_v45 }
 0x2c5   : > { %4926 = vmatprep.subr.bf16.mxu1 %v10999_v50 }
 0x2c8   : > { %4927 = vmatpush1.bf16.msra.mxu1 %v10997_v51 }
 0x2c9   : > { %4928 = vmatprep.subr.bf16.mxu1 %v11002_v55 }
 0x2cc   : > { %4929 = vmatpush1.bf16.msra.mxu1 %v11000_v52 }
 0x2cd   : > { %4930 = vmatprep.subr.bf16.mxu1 %v11005_v27 }
 0x2d0   : > { %4931 = vmatpush1.bf16.msra.mxu1 %v11003_v54 }
 0x2d1   : > { %4932 = vmatprep.subr.bf16.mxu1 %v11008_v56 }
 0x2d4   : > { %4933 = vmatpush1.bf16.msra.mxu1 %v11006_v1 }
 0x2d5   : > { %4945 = vmatprep.subr.bf16.mxu1 %v11011_v57 }
 0x2d7   : > { %4935 = vmatmul.mubr.bf16.vlgmr.msra.gmra.mrb[8].mxu1 %v13114_v61  ;;  %v11020_v61 = vld [vmem:[%s14527_s3 + $0xc6c] ss:$16 sps:$4 sm:$0xff]  }
 0x2d8   : > { %4946 = vmatpush1.bf16.msra.mxu1 %v11009_v58  ;;  %4977 = vmatprep.mubr.bf16.mxu1 %v11539_v2 }
 0x2d9   : > { %4947 = vmatprep.subr.bf16.mxu1 %v11014_v59 }
 0x2dc   : > { %4948 = vmatpush1.bf16.msra.mxu1 %v11012_v60 }
 0x2dd   : > { %4949 = vmatprep.subr.bf16.mxu1 %v11017_v36 }
 0x2e0   : > { %4950 = vmatpush1.bf16.msra.mxu1 %v11015_v15 }
 0x2e1   : > { %4951 = vmatprep.subr.bf16.mxu1 %v11020_v61 }
 0x2e4   : > { %4952 = vmatpush1.bf16.msra.mxu1 %v11018_v62 }
 0x2e7   : > { %9364 = vmatmul.mubr.msk.bf16.vlgmr.msra.gmra.mrb[8].mxu1 %vm2197_vm6, %v13162_v17 }
 0x2e8   : > { %5246 = vmatprep.mubr.bf16.mxu1 %v11539_v2 }
 0x365   : > { %v4893_v5 = vpop.f32.mrb[8].mxu0 }
 0x366   : > { %v10130_v8 = vadd.f32 %v4893_v5, %v12827_v40  ;;  %v4895_v10 = vpop.f32.mrb[9].mxu0 }
 0x367   : > { %v10131_v53 = vadd.f32 %v4895_v10, %v12829_v0  ;;  %v4897_v12 = vpop.f32.mrb[10].mxu0 }
 0x368   : > { %v5018_v13 = vmul.f32 %v10130_v8, %v5001_v3  ;;  %v10132_v14 = vadd.f32 %v4897_v12, %v12834_v4  ;;  %v4899_v17 = vpop.f32.mrb[11].mxu0 }
 0x369   : > { %v5019_v19 = vmul.f32 %v10131_v53, %v5005_v6  ;;  %v10133_v9 = vadd.f32 %v4899_v17, %v12842_v7 }
 0x36a   : > { %v5049_v16 = vadd.f32 %v5032_v30, %v5018_v13  ;;  %v5022_v20 = vmul.f32 %v10132_v14, %v5001_v3 }
 0x36b   : > { %v5050_v21 = vadd.f32 %v5036_v11, %v5019_v19  ;;  %v5023_v23 = vmul.f32 %v10133_v9, %v5005_v6 }
 0x36c   : > { %v5057_v40 = vmax.f32 %v5049_v16, 0.0  ;;  %v5053_v29 = vadd.f32 %v5032_v30, %v5022_v20 }
 0x36d   : > { %v5058_v44 = vmax.f32 %v5050_v21, 0.0  ;;  %v5054_v24 = vadd.f32 %v5036_v11, %v5023_v23 }
 0x36e   : > { %v5061_v25 = vmax.f32 %v5053_v29, 0.0  ;;  %v5074_v22 = vrot.slane %v5057_v40, 1 }
 0x36f   : > { %v5062_v0 = vmax.f32 %v5054_v24, 0.0  ;;  %v5077_v28 = vrot.slane %v5058_v44, 1  ;;  %v11541_v24 = vmov 65535  }
 0x370   : > { %v5075_v26 = vrot.slane %v5061_v25, 1 }
 0x371   : > { %v5078_v31 = vrot.slane %v5062_v0, 1 }
 0x372   : > { %v5076_v4 = vsel %vm891_vm4, %v5074_v22, %v5075_v26  ;;  %v13310_v32 = vmax.f32 %v5061_v25, %v5075_v26  ;;  %v5159_v25 = vsel %vm891_vm4, 4294967295, %v11541_v24 }
 0x373   : > { %v13312_v33 = vmax.f32 %v5057_v40, %v5076_v4  ;;  %v5079_v7 = vsel %vm891_vm4, %v5077_v28, %v5078_v31  ;;  %v5099_v13 = vmax.f32 %v5062_v0, %v5078_v31 }
 0x374   : > { %v13315_v39 = vmax.f32 %v5058_v44, %v5079_v7 }
 0x375   : > { %v10311_v42 = vpack.i.bf16 %v13310_v32, %v13312_v33 }
 0x377   : > { %10312 = vrot.lane.b32.xlu1 %v10311_v42, %s11540_s17 }
 0x3ba   : > { %v4979_v48 = vpop.f32.mrb[8].mxu1 }
 0x3bb   : > { %v5020_v50 = vmul.f32 %v5009_v18, %v4979_v48  ;;  %v4981_v51 = vpop.f32.mrb[9].mxu1 }
 0x3bc   : > { %v5021_v55 = vmul.f32 %v5013_v46, %v4981_v51  ;;  %v4983_v52 = vpop.f32.mrb[10].mxu1 }
 0x3bd   : > { %v5051_v27 = vadd.f32 %v5040_v47, %v5020_v50  ;;  %v5024_v54 = vmul.f32 %v5009_v18, %v4983_v52  ;;  %v4985_v56 = vpop.f32.mrb[11].mxu1  ;;  %v5160_v18 = vsel %vm5158_vm8, %v5159_v25, 0  ;;  %v11066_v25 = vld [vmem:[%s14530_s6 + $0xf0] ss:$8 sps:$4 sm:$0xff]  }
 0x3be   : > { %v5052_v1 = vadd.f32 %v5044_v49, %v5021_v55  ;;  %v5025_v57 = vmul.f32 %v5013_v46, %v4985_v56 }
 0x3bf   : > { %v5059_v58 = vmax.f32 %v5051_v27, 0.0  ;;  %v5055_v59 = vadd.f32 %v5040_v47, %v5024_v54 }
 0x3c0   : > { %v5060_v60 = vmax.f32 %v5052_v1, 0.0  ;;  %v5056_v36 = vadd.f32 %v5044_v49, %v5025_v57 }
 0x3c1   : > { %v5063_v15 = vmax.f32 %v5055_v59, 0.0  ;;  %v5080_v62 = vrot.slane %v5059_v58, 1  ;;  %v11021_v59 = vld [vmem:[%s14530_s6] ss:$8 sps:$4 sm:$0xff]  }
 0x3c2   : > { %v5064_v61 = vmax.f32 %v5056_v36, 0.0  ;;  %v5083_v3 = vrot.slane %v5060_v60, 1  ;;  %v11024_v36 = vld [vmem:[%s14530_s6 + $0x10] ss:$8 sps:$4 sm:$0xff]  }
 0x3c3   : > { %v5081_v63 = vrot.slane %v5063_v15, 1 }
 0x3c4   : > { %v5084_v5 = vrot.slane %v5064_v61, 1 }
 0x3c5   : > { %v5082_v43 = vsel %vm891_vm4, %v5080_v62, %v5081_v63  ;;  %v5100_v53 = vmax.f32 %v5063_v15, %v5081_v63  ;;  %v11029_v15 = vld [vmem:[%s14530_s6 + $0x24] ss:$8 sps:$4 sm:$0xff]   ;;  %v11032_v62 = vld [vmem:[%s14530_s6 + $0x34] ss:$8 sps:$4 sm:$0xff]   ;;  %v11030_v63 = vld [vmem:[%s14530_s6 + $0x30] ss:$8 sps:$4 sm:$0xff]  }
 0x3c6   : > { %v5101_v6 = vmax.f32 %v5064_v61, %v5084_v5  ;;  %v5096_v8 = vmax.f32 %v5059_v58, %v5082_v43  ;;  %v5085_v30 = vsel %vm891_vm4, %v5083_v3, %v5084_v5  ;;  %v11023_v58 = vld [vmem:[%s14530_s6 + $0x4] ss:$8 sps:$4 sm:$0xff]   ;;  %v11027_v61 = vld [vmem:[%s14530_s6 + $0x20] ss:$8 sps:$4 sm:$0xff]   ;;  %v11038_v43 = vld [vmem:[%s14530_s6 + $0x54] ss:$8 sps:$4 sm:$0xff]  }
 0x3c7   : > { %v5097_v10 = vmax.f32 %v5060_v60, %v5085_v30  ;;  %v10306_v14 = vpack.i.bf16 %v5100_v53, %v5099_v13  ;;  %v11026_v60 = vld [vmem:[%s14530_s6 + $0x14] ss:$8 sps:$4 sm:$0xff]   ;;  %v11035_v3 = vld [vmem:[%s14530_s6 + $0x44] ss:$8 sps:$4 sm:$0xff]   ;;  %v11033_v5 = vld [vmem:[%s14530_s6 + $0x40] ss:$8 sps:$4 sm:$0xff]  }
 0x3c8   : > { %v10301_v11 = vpack.i.bf16 %v5096_v8, %v13315_v39  ;;  %v11039_v30 = vld [vmem:[%s14530_s6 + $0x60] ss:$8 sps:$4 sm:$0xff]  }
 0x3c9   : > { %v10316_v12 = vpack.i.bf16 %v5101_v6, %v5097_v10 }
 0x3ca   : > { %10302 = vrot.lane.b32.xlu0 %v10301_v11, %s11540_s17  ;;  %v11047_v11 = vld [vmem:[%s14530_s6 + $0x84] ss:$8 sps:$4 sm:$0xff]  }
 0x3cb   : > { %10317 = vrot.lane.b32.xlu1 %v10316_v12, %s11540_s17  ;;  %v11045_v12 = vld [vmem:[%s14530_s6 + $0x80] ss:$8 sps:$4 sm:$0xff]  }
 0x3ce   : > { %10307 = vrot.lane.b32.xlu0 %v10306_v14, %s11540_s17  ;;  %v11048_v14 = vld [vmem:[%s14530_s6 + $0x90] ss:$8 sps:$4 sm:$0xff]  }
 0x3e9   : > { %v10313_v17 = vpop.permute.xlu1 %10312 }
 0x3ea   : > { %v10314_v9 = vunpack.i.l.bf16 %v10313_v17  ;;  %v10315_v0 = vunpack.i.h.bf16 %v10313_v17  ;;  %v11053_v17 = vld [vmem:[%s14530_s6 + $0xa4] ss:$8 sps:$4 sm:$0xff]  }
 0x43c   : > { %v10303_v19 = vpop.permute.xlu0 %10302 }
 0x43d   : > { %v10305_v16 = vunpack.i.h.bf16 %v10303_v19  ;;  %v10304_v20 = vunpack.i.l.bf16 %v10303_v19  ;;  %v10318_v21 = vpop.permute.xlu1 %10317  ;;  %v11051_v19 = vld [vmem:[%s14530_s6 + $0xa0] ss:$8 sps:$4 sm:$0xff]  }
 0x43e   : > { %v10320_v23 = vunpack.i.h.bf16 %v10318_v21  ;;  %v10319_v40 = vunpack.i.l.bf16 %v10318_v21  ;;  %v11057_v21 = vld [vmem:[%s14530_s6 + $0xc0] ss:$8 sps:$4 sm:$0xff]  }
 0x43f   : > { %v5127_v29 = vsel %vm5126_vm7, %v10314_v9, %v10304_v20  ;;  %v5128_v44 = vsel %vm5126_vm7, %v10304_v20, %v10305_v16  ;;  %v11056_v9 = vld [vmem:[%s14530_s6 + $0xb4] ss:$8 sps:$4 sm:$0xff]   ;;  %v11059_v20 = vld [vmem:[%s14530_s6 + $0xc4] ss:$8 sps:$4 sm:$0xff]  }
 0x440   : > { %v5148_v22 = vmax.f32 %v5101_v6, %v10320_v23  ;;  %v10308_v26 = vpop.permute.xlu0 %10307  ;;  %v5129_v28 = vsel %vm5126_vm7, %v10305_v16, %v10319_v40  ;;  %v5144_v31 = vmax.f32 %v5097_v10, %v10319_v40  ;;  %v5141_v42 = vmax.f32 %v13312_v33, %v5127_v29  ;;  %v11036_v6 = vld [vmem:[%s14530_s6 + $0x50] ss:$8 sps:$4 sm:$0xff]   ;;  %v11044_v10 = vld [vmem:[%s14530_s6 + $0x74] ss:$8 sps:$4 sm:$0xff]   ;;  %v11065_v29 = vld [vmem:[%s14530_s6 + $0xe4] ss:$8 sps:$4 sm:$0xff]  }
 0x441   : > { %v10310_v4 = vunpack.i.h.bf16 %v10308_v26  ;;  %v10309_v7 = vunpack.i.l.bf16 %v10308_v26  ;;  %v5142_v45 = vmax.f32 %v13315_v39, %v5128_v44  ;;  %v5143_v50 = vmax.f32 %v5096_v8, %v5129_v28  ;;  %v11041_v8 = vld [vmem:[%s14530_s6 + $0x64] ss:$8 sps:$4 sm:$0xff]   ;;  %v11054_v16 = vld [vmem:[%s14530_s6 + $0xb0] ss:$8 sps:$4 sm:$0xff]   ;;  %v11063_v44 = vld [vmem:[%s14530_s6 + $0xe0] ss:$8 sps:$4 sm:$0xff]  }
 0x442   : > { %v5153_v46 = vpack.c.bf16 %v5148_v22, %v5144_v31  ;;  %v11060_v40 = vld [vmem:[%s14530_s6 + $0xd0] ss:$8 sps:$4 sm:$0xff]   ;;  %v11071_v22 = vld [vmem:[%s14530_s6 + $0x104] ss:$8 sps:$4 sm:$0xff]   ;;  %v11116_v31 = vld [vmem:[%s14531_s7 + $0x19c] ss:$12 sps:$4 sm:$0xff]  }
 0x443   : > { %v5132_v47 = vsel %vm5126_vm7, %v10310_v4, %v10320_v23  ;;  %v5130_v48 = vsel %vm5126_vm7, %v10315_v0, %v10309_v7  ;;  %v5131_v49 = vsel %vm5126_vm7, %v10309_v7, %v10310_v4  ;;  %v11062_v23 = vld [vmem:[%s14530_s6 + $0xd4] ss:$8 sps:$4 sm:$0xff]   ;;  %v11111_v26 = vld [vmem:[%s14531_s7 + $0x180] ss:$12 sps:$4 sm:$0xff]   ;;  %v11113_v28 = vld [vmem:[%s14531_s7 + $0x184] ss:$12 sps:$4 sm:$0xff]  }
 0x444   : > { %v5147_v51 = vmax.f32 %v5100_v53, %v5132_v47  ;;  %v5145_v55 = vmax.f32 %v13310_v32, %v5130_v48  ;;  %v5146_v52 = vmax.f32 %v5099_v13, %v5131_v49  ;;  %v5171_v27 = vand.u32 %v5160_v18, %v5153_v46  ;;  %v5149_v32 = vld [vmem:[%s14529_s5] sm:$0xf]  ;;  %v11042_v53 = vld [vmem:[%s14530_s6 + $0x70] ss:$8 sps:$4 sm:$0xff]   ;;  %v11050_v13 = vld [vmem:[%s14530_s6 + $0x94] ss:$8 sps:$4 sm:$0xff]  }
 0x445   : > { %v11068_v0 = vld [vmem:[%s14530_s6 + $0xf4] ss:$8 sps:$4 sm:$0xff]   ;;  %v11114_v4 = vld [vmem:[%s14531_s7 + $0x198] ss:$12 sps:$4 sm:$0xff]   ;;  %v11123_v47 = vld [vmem:[%s14531_s7 + $0x1e0] ss:$12 sps:$4 sm:$0xff]  }
 0x446   : > { %v5150_v54 = vpack.c.bf16 %v5145_v55, %v5141_v42  ;;  %v5152_v56 = vpack.c.bf16 %v5147_v51, %v5143_v50  ;;  %v5151_v1 = vpack.c.bf16 %v5146_v52, %v5142_v45  ;;  %5214 = vmatprep.subr.bf16.mxu1 %v5171_v27  ;;  %v11119_v7 = vld [vmem:[%s14531_s7 + $0x1b4] ss:$12 sps:$4 sm:$0xff]   ;;  %v11117_v42 = vld [vmem:[%s14531_s7 + $0x1b0] ss:$12 sps:$4 sm:$0xff]   ;;  %v11122_v45 = vld [vmem:[%s14531_s7 + $0x1cc] ss:$12 sps:$4 sm:$0xff]  }
 0x447   : > { %v11125_v46 = vld [vmem:[%s14531_s7 + $0x1e4] ss:$12 sps:$4 sm:$0xff]   ;;  %v11128_v48 = vld [vmem:[%s14531_s7 + $0x1fc] ss:$12 sps:$4 sm:$0xff]   ;;  %v11131_v50 = vld [vmem:[%s14531_s7 + $0x214] ss:$12 sps:$4 sm:$0xff]  }
 0x448   : > { %v5165_v33 = vand.u32 %v5160_v18, %v5151_v1  ;;  %v5168_v39 = vand.u32 %v5160_v18, %v5152_v56  ;;  %v5162_v57 = vand.u32 %v5160_v18, %v5150_v54  ;;  %v11120_v18 = vld [vmem:[%s14531_s7 + $0x1c8] ss:$12 sps:$4 sm:$0xff]   ;;  %v11126_v49 = vld [vmem:[%s14531_s7 + $0x1f8] ss:$12 sps:$4 sm:$0xff]   ;;  %v11129_v51 = vld [vmem:[%s14531_s7 + $0x210] ss:$12 sps:$4 sm:$0xff]  }
 0x449   : > { %v11134_v55 = vld [vmem:[%s14531_s7 + $0x22c] ss:$12 sps:$4 sm:$0xff]   ;;  %v11132_v52 = vld [vmem:[%s14531_s7 + $0x228] ss:$12 sps:$4 sm:$0xff]   ;;  %v11139_v27 = vld [vmem:[%s14531_s7 + $0x244] ss:$12 sps:$4 sm:$0xff]  }
 0x44a   : > { %5173 = vmatprep.subr.bf16.mxu0 %v5165_v33  ;;  %5215 = vmatpush1.bf16.msra.mxu1 %v5168_v39  ;;  %v11137_v54 = vld [vmem:[%s14531_s7 + $0x240] ss:$12 sps:$4 sm:$0xff]   ;;  %v11144_v56 = vld [vmem:[%s14531_s7 + $0x25c] ss:$12 sps:$4 sm:$0xff]   ;;  %v11142_v1 = vld [vmem:[%s14531_s7 + $0x258] ss:$12 sps:$4 sm:$0xff]  }
 0x44b   : > { %5174 = vmatpush1.bf16.msra.mxu0 %v5162_v57  ;;  %6107 = vmatprep.subr.bf16.mxu1 %v11113_v28  ;;  %v11149_v33 = vld [vmem:[%s14531_s7 + $0x274] ss:$12 sps:$4 sm:$0xff]   ;;  %v11147_v39 = vld [vmem:[%s14531_s7 + $0x270] ss:$12 sps:$4 sm:$0xff]   ;;  %v11154_v57 = vld [vmem:[%s14531_s7 + $0x28c] ss:$12 sps:$4 sm:$0xff]  }
 0x44c   : > { %5622 = vmatprep.subr.bf16.mxu0 %v11023_v58  ;;  %v11152_v58 = vld [vmem:[%s14531_s7 + $0x288] ss:$12 sps:$4 sm:$0xff]   ;;  %v11101_v28 = vld [vmem:[%s14530_s6 + $0x1a4] ss:$8 sps:$4 sm:$0xff]  }
 0x44d   : > { %9367 = vmatmul.mubr.msk.bf16.vlgmr.msra.gmra.mrb[12].mxu1 %vm5154_vm9, %v5149_v32 }
 0x44e   : > { %9366 = vmatmul.mubr.msk.bf16.vlgmr.msra.gmra.mrb[12].mxu0 %vm5154_vm9, %v5149_v32  ;;  %6108 = vmatpush1.bf16.msra.mxu1 %v11111_v26  ;;  %v11159_v32 = vld [vmem:[%s14531_s7 + $0x2a4] ss:$12 sps:$4 sm:$0xff]  }
 0x44f   : > { %5623 = vmatpush1.bf16.msra.mxu0 %v11021_v59  ;;  %6109 = vmatprep.subr.bf16.mxu1 %v11116_v31  ;;  %v11157_v59 = vld [vmem:[%s14531_s7 + $0x2a0] ss:$12 sps:$4 sm:$0xff]   ;;  %v11096_v26 = vld [vmem:[%s14530_s6 + $0x190] ss:$8 sps:$4 sm:$0xff]  }
 0x450   : > { %5624 = vmatprep.subr.bf16.mxu0 %v11026_v60  ;;  %v11164_v60 = vld [vmem:[%s14531_s7 + $0x2bc] ss:$12 sps:$4 sm:$0xff]  }
 0x451   : > { %v11099_v31 = vld [vmem:[%s14530_s6 + $0x1a0] ss:$8 sps:$4 sm:$0xff]  }
 0x452   : > { %6110 = vmatpush1.bf16.msra.mxu1 %v11114_v4  ;;  %v11104_v4 = vld [vmem:[%s14530_s6 + $0x1b4] ss:$8 sps:$4 sm:$0xff]  }
 0x453   : > { %5625 = vmatpush1.bf16.msra.mxu0 %v11024_v36  ;;  %6111 = vmatprep.subr.bf16.mxu1 %v11119_v7  ;;  %v11162_v36 = vld [vmem:[%s14531_s7 + $0x2b8] ss:$12 sps:$4 sm:$0xff]  }
 0x454   : > { %5626 = vmatprep.subr.bf16.mxu0 %v11029_v15  ;;  %v11102_v7 = vld [vmem:[%s14530_s6 + $0x1b0] ss:$8 sps:$4 sm:$0xff]  }
 0x456   : > { %6112 = vmatpush1.bf16.msra.mxu1 %v11117_v42  ;;  %v11107_v42 = vld [vmem:[%s14530_s6 + $0x1c4] ss:$8 sps:$4 sm:$0xff]  }
 0x457   : > { %5627 = vmatpush1.bf16.msra.mxu0 %v11027_v61  ;;  %6113 = vmatprep.subr.bf16.mxu1 %v11122_v45  ;;  %v11105_v45 = vld [vmem:[%s14530_s6 + $0x1c0] ss:$8 sps:$4 sm:$0xff]  }
 0x458   : > { %5628 = vmatprep.subr.bf16.mxu0 %v11032_v62 }
 0x45a   : > { %6114 = vmatpush1.bf16.msra.mxu1 %v11120_v18  ;;  %v11110_v18 = vld [vmem:[%s14530_s6 + $0x1d4] ss:$8 sps:$4 sm:$0xff]  }
 0x45b   : > { %5629 = vmatpush1.bf16.msra.mxu0 %v11030_v63  ;;  %6115 = vmatprep.subr.bf16.mxu1 %v11125_v46  ;;  %v11108_v46 = vld [vmem:[%s14530_s6 + $0x1d0] ss:$8 sps:$4 sm:$0xff]  }
 0x45c   : > { %5630 = vmatprep.subr.bf16.mxu0 %v11035_v3 }
 0x45e   : > { %6116 = vmatpush1.bf16.msra.mxu1 %v11123_v47  ;;  %v11135_v47 = vld [vmem:[%s14531_s7 + $0x3c8] ss:$12 sps:$4 sm:$0xff]  }
 0x45f   : > { %5631 = vmatpush1.bf16.msra.mxu0 %v11033_v5  ;;  %6117 = vmatprep.subr.bf16.mxu1 %v11128_v48  ;;  %v11136_v48 = vld [vmem:[%s14531_s7 + $0x308] ss:$12 sps:$4 sm:$0xff]  }
 0x460   : > { %5632 = vmatprep.subr.bf16.mxu0 %v11038_v43 }
 0x462   : > { %6118 = vmatpush1.bf16.msra.mxu1 %v11126_v49 }
 0x463   : > { %5633 = vmatpush1.bf16.msra.mxu0 %v11036_v6  ;;  %6119 = vmatprep.subr.bf16.mxu1 %v11131_v50  ;;  %v11069_v6 = vld [vmem:[%s14530_s6 + $0x100] ss:$8 sps:$4 sm:$0xff]  }
 0x464   : > { %5634 = vmatprep.subr.bf16.mxu0 %v11041_v8  ;;  %v11140_v50 = vld [vmem:[%s14531_s7 + $0x3e0] ss:$12 sps:$4 sm:$0xff]  }
 0x466   : > { %6120 = vmatpush1.bf16.msra.mxu1 %v11129_v51  ;;  %v11141_v51 = vld [vmem:[%s14531_s7 + $0x320] ss:$12 sps:$4 sm:$0xff]  }
 0x467   : > { %5635 = vmatpush1.bf16.msra.mxu0 %v11039_v30  ;;  %6121 = vmatprep.subr.bf16.mxu1 %v11134_v55  ;;  %v11145_v55 = vld [vmem:[%s14531_s7 + $0x3f8] ss:$12 sps:$4 sm:$0xff]  }
 0x468   : > { %5636 = vmatprep.subr.bf16.mxu0 %v11044_v10 }
 0x46a   : > { %6122 = vmatpush1.bf16.msra.mxu1 %v11132_v52  ;;  %v11146_v52 = vld [vmem:[%s14531_s7 + $0x338] ss:$12 sps:$4 sm:$0xff]  }
 0x46b   : > { %5637 = vmatpush1.bf16.msra.mxu0 %v11042_v53  ;;  %6123 = vmatprep.subr.bf16.mxu1 %v11139_v27  ;;  %v11150_v27 = vld [vmem:[%s14531_s7 + $0x410] ss:$12 sps:$4 sm:$0xff]  }
 0x46c   : > { %5638 = vmatprep.subr.bf16.mxu0 %v11047_v11  ;;  %v11074_v11 = vld [vmem:[%s14530_s6 + $0x114] ss:$8 sps:$4 sm:$0xff]  }
 0x46e   : > { %6124 = vmatpush1.bf16.msra.mxu1 %v11137_v54  ;;  %v11151_v54 = vld [vmem:[%s14531_s7 + $0x350] ss:$12 sps:$4 sm:$0xff]  }
 0x46f   : > { %5639 = vmatpush1.bf16.msra.mxu0 %v11045_v12  ;;  %6125 = vmatprep.subr.bf16.mxu1 %v11144_v56  ;;  %v11072_v12 = vld [vmem:[%s14530_s6 + $0x110] ss:$8 sps:$4 sm:$0xff]   ;;  %v11155_v56 = vld [vmem:[%s14531_s7 + $0x428] ss:$12 sps:$4 sm:$0xff]  }
 0x470   : > { %5640 = vmatprep.subr.bf16.mxu0 %v11050_v13  ;;  %v11077_v13 = vld [vmem:[%s14530_s6 + $0x124] ss:$8 sps:$4 sm:$0xff]  }
 0x472   : > { %6126 = vmatpush1.bf16.msra.mxu1 %v11142_v1  ;;  %v11156_v1 = vld [vmem:[%s14531_s7 + $0x368] ss:$12 sps:$4 sm:$0xff]  }
 0x473   : > { %5641 = vmatpush1.bf16.msra.mxu0 %v11048_v14  ;;  %6127 = vmatprep.subr.bf16.mxu1 %v11149_v33  ;;  %v11075_v14 = vld [vmem:[%s14530_s6 + $0x120] ss:$8 sps:$4 sm:$0xff]  }
 0x474   : > { %5642 = vmatprep.subr.bf16.mxu0 %v11053_v17  ;;  %v11080_v17 = vld [vmem:[%s14530_s6 + $0x134] ss:$8 sps:$4 sm:$0xff]   ;;  %v11160_v33 = vld [vmem:[%s14531_s7 + $0x440] ss:$12 sps:$4 sm:$0xff]  }
 0x476   : > { %6128 = vmatpush1.bf16.msra.mxu1 %v11147_v39  ;;  %v11161_v39 = vld [vmem:[%s14531_s7 + $0x380] ss:$12 sps:$4 sm:$0xff]  }
 0x477   : > { %5643 = vmatpush1.bf16.msra.mxu0 %v11051_v19  ;;  %6129 = vmatprep.subr.bf16.mxu1 %v11154_v57  ;;  %v11078_v19 = vld [vmem:[%s14530_s6 + $0x130] ss:$8 sps:$4 sm:$0xff]  }
 0x478   : > { %5644 = vmatprep.subr.bf16.mxu0 %v11056_v9  ;;  %v11083_v9 = vld [vmem:[%s14530_s6 + $0x144] ss:$8 sps:$4 sm:$0xff]  }
 0x479   : > { %v11165_v57 = vld [vmem:[%s14531_s7 + $0x458] ss:$12 sps:$4 sm:$0xff]  }
 0x47a   : > { %6130 = vmatpush1.bf16.msra.mxu1 %v11152_v58  ;;  %v11166_v58 = vld [vmem:[%s14531_s7 + $0x398] ss:$12 sps:$4 sm:$0xff]  }
 0x47b   : > { %5645 = vmatpush1.bf16.msra.mxu0 %v11054_v16  ;;  %6131 = vmatprep.subr.bf16.mxu1 %v11159_v32  ;;  %v11081_v16 = vld [vmem:[%s14530_s6 + $0x140] ss:$8 sps:$4 sm:$0xff]   ;;  %v11167_v32 = vld [vmem:[%s14531_s7 + $0x2d0] ss:$12 sps:$4 sm:$0xff]  }
 0x47c   : > { %5646 = vmatprep.subr.bf16.mxu0 %v11059_v20  ;;  %v11086_v20 = vld [vmem:[%s14530_s6 + $0x154] ss:$8 sps:$4 sm:$0xff]  }
 0x47e   : > { %6132 = vmatpush1.bf16.msra.mxu1 %v11157_v59  ;;  %v11169_v59 = vld [vmem:[%s14531_s7 + $0x2d4] ss:$12 sps:$4 sm:$0xff]  }
 0x47f   : > { %5647 = vmatpush1.bf16.msra.mxu0 %v11057_v21  ;;  %6133 = vmatprep.subr.bf16.mxu1 %v11164_v60  ;;  %v11084_v21 = vld [vmem:[%s14530_s6 + $0x150] ss:$8 sps:$4 sm:$0xff]  }
 0x480   : > { %5648 = vmatprep.subr.bf16.mxu0 %v11062_v23  ;;  %v11089_v23 = vld [vmem:[%s14530_s6 + $0x164] ss:$8 sps:$4 sm:$0xff]   ;;  %v11170_v60 = vld [vmem:[%s14531_s7 + $0x470] ss:$12 sps:$4 sm:$0xff]  }
 0x482   : > { %6134 = vmatpush1.bf16.msra.mxu1 %v11162_v36  ;;  %v11171_v36 = vld [vmem:[%s14531_s7 + $0x3b0] ss:$12 sps:$4 sm:$0xff]  }
 0x483   : > { %5649 = vmatpush1.bf16.msra.mxu0 %v11060_v40  ;;  %v11087_v40 = vld [vmem:[%s14530_s6 + $0x160] ss:$8 sps:$4 sm:$0xff]   ;;  %6135 = vmatprep.subr.bf16.mxu1 %v11169_v59 }
 0x484   : > { %5650 = vmatprep.subr.bf16.mxu0 %v11065_v29  ;;  %v11092_v29 = vld [vmem:[%s14530_s6 + $0x174] ss:$8 sps:$4 sm:$0xff]  }
 0x485   : > { %v11223_v59 = vld [vmem:[%s14531_s7 + $0xf4] ss:$12 sps:$4 sm:$0xff]  }
 0x486   : > { %6136 = vmatpush1.bf16.msra.mxu1 %v11167_v32  ;;  %v11218_v32 = vld [vmem:[%s14531_s7 + $0xd8] ss:$12 sps:$4 sm:$0xff]  }
 0x487   : > { %5651 = vmatpush1.bf16.msra.mxu0 %v11063_v44  ;;  %v11090_v44 = vld [vmem:[%s14530_s6 + $0x170] ss:$8 sps:$4 sm:$0xff]  }
 0x488   : > { %5652 = vmatprep.subr.bf16.mxu0 %v11068_v0  ;;  %v11093_v0 = vld [vmem:[%s14530_s6 + $0x180] ss:$8 sps:$4 sm:$0xff]  }
 0x48b   : > { %5653 = vmatpush1.bf16.msra.mxu0 %v11066_v25  ;;  %v11095_v25 = vld [vmem:[%s14530_s6 + $0x184] ss:$8 sps:$4 sm:$0xff]  }
 0x48c   : > { %5663 = vmatprep.subr.bf16.mxu0 %v11071_v22  ;;  %v11098_v22 = vld [vmem:[%s14530_s6 + $0x194] ss:$8 sps:$4 sm:$0xff]  }
 0x520   : > { %v13526_v15 = vpop.f32.mrb[12].mxu1 }
 0x521   : > { %v5207_v61 = vpop.f32.mrb[12].mxu0  ;;  %v5250_v62 = vpop.f32.mrb[13].mxu1  ;;  %v5257_v49 = vpack.c.bf16 %v13526_v15, %v13526_v15  ;;  %v11174_v15 = vld [vmem:[%s14531_s7 + $0x2ec] ss:$12 sps:$4 sm:$0xff]  }
 0x522   : > { %v5209_v63 = vpop.f32.mrb[13].mxu0  ;;  %v5252_v3 = vpop.f32.mrb[14].mxu1  ;;  %v5258_v8 = vpack.c.bf16 %v5250_v62, %v5250_v62  ;;  %v5255_v10 = vpack.c.bf16 %v5207_v61, %v5207_v61  ;;  %v11172_v61 = vld [vmem:[%s14531_s7 + $0x2e8] ss:$12 sps:$4 sm:$0xff]   ;;  %6137 = vmatprep.subr.bf16.mxu1 %v11174_v15 }
 0x523   : > { %v5256_v5 = vpack.c.bf16 %v5209_v63, %v5209_v63  ;;  %v5211_v43 = vpop.f32.mrb[14].mxu0  ;;  %v5253_v30 = vpop.f32.mrb[15].mxu1  ;;  %6138 = vmatpush1.bf16.msra.mxu1 %v11172_v61  ;;  %v11175_v62 = vld [vmem:[%s14531_s7 + $0x248] ss:$12 sps:$4 sm:$0xff]   ;;  %v11229_v61 = vld [vmem:[%s14531_s7 + $0x124] ss:$12 sps:$4 sm:$0xff]  }
 0x524   : > { %v5212_v53 = vpop.f32.mrb[15].mxu0  ;;  %9994 = vmatprep.subr.bf16.mxu1 %v11175_v62  ;;  %v11224_v15 = vld [vmem:[%s14531_s7 + $0x108] ss:$12 sps:$4 sm:$0xff]   ;;  %v11227_v62 = vld [vmem:[%s14531_s7 + $0x120] ss:$12 sps:$4 sm:$0xff]  }
 0x525   : > { %5654 = vmatprep.mubr.bf16.mxu0 %v5256_v5 }
 0x526   : > { %5655 = vmatmul.mubr.bf16.vlgmr.msra.gmra.mrb[16].mxu0 %v5255_v10 }
 0x527   : > { %5664 = vmatpush1.bf16.msra.mxu0 %v11069_v6  ;;  %9428 = vmatprep.mubr.msk.bf16.mxu0 %vm5126_vm7, %v5258_v8 }
 0x528   : > { %5665 = vmatprep.subr.bf16.mxu0 %v11074_v11 }
 0x52b   : > { %5666 = vmatpush1.bf16.msra.mxu0 %v11072_v12 }
 0x52c   : > { %5667 = vmatprep.subr.bf16.mxu0 %v11077_v13 }
 0x52f   : > { %5668 = vmatpush1.bf16.msra.mxu0 %v11075_v14 }
 0x530   : > { %5669 = vmatprep.subr.bf16.mxu0 %v11080_v17 }
 0x533   : > { %5670 = vmatpush1.bf16.msra.mxu0 %v11078_v19 }
 0x534   : > { %5671 = vmatprep.subr.bf16.mxu0 %v11083_v9  ;;  %v11176_v9 = vld [vmem:[%s14531_s7 + $0x188] ss:$12 sps:$4 sm:$0xff]  }
 0x537   : > { %5672 = vmatpush1.bf16.msra.mxu0 %v11081_v16 }
 0x538   : > { %5673 = vmatprep.subr.bf16.mxu0 %v11086_v20  ;;  %v11177_v20 = vld [vmem:[%s14531_s7 + $0x260] ss:$12 sps:$4 sm:$0xff]  }
 0x53b   : > { %5674 = vmatpush1.bf16.msra.mxu0 %v11084_v21  ;;  %v11178_v21 = vld [vmem:[%s14531_s7 + $0x1a0] ss:$12 sps:$4 sm:$0xff]  }
 0x53c   : > { %5675 = vmatprep.subr.bf16.mxu0 %v11089_v23  ;;  %v11179_v23 = vld [vmem:[%s14531_s7 + $0x278] ss:$12 sps:$4 sm:$0xff]  }
 0x53f   : > { %5676 = vmatpush1.bf16.msra.mxu0 %v11087_v40  ;;  %v11180_v40 = vld [vmem:[%s14531_s7 + $0x1b8] ss:$12 sps:$4 sm:$0xff]  }
 0x540   : > { %5677 = vmatprep.subr.bf16.mxu0 %v11092_v29  ;;  %v11181_v29 = vld [vmem:[%s14531_s7 + $0x290] ss:$12 sps:$4 sm:$0xff]  }
 0x543   : > { %5678 = vmatpush1.bf16.msra.mxu0 %v11090_v44  ;;  %v11182_v44 = vld [vmem:[%s14531_s7 + $0x1d0] ss:$12 sps:$4 sm:$0xff]  }
 0x544   : > { %5679 = vmatprep.subr.bf16.mxu0 %v11095_v25  ;;  %v11183_v25 = vld [vmem:[%s14531_s7 + $0x2a8] ss:$12 sps:$4 sm:$0xff]  }
 0x547   : > { %5680 = vmatpush1.bf16.msra.mxu0 %v11093_v0  ;;  %v11184_v0 = vld [vmem:[%s14531_s7 + $0x1e8] ss:$12 sps:$4 sm:$0xff]  }
 0x548   : > { %5681 = vmatprep.subr.bf16.mxu0 %v11098_v22  ;;  %v11185_v22 = vld [vmem:[%s14531_s7 + $0x2c0] ss:$12 sps:$4 sm:$0xff]  }
 0x54b   : > { %5682 = vmatpush1.bf16.msra.mxu0 %v11096_v26  ;;  %v11186_v26 = vld [vmem:[%s14531_s7 + $0x200] ss:$12 sps:$4 sm:$0xff]  }
 0x54c   : > { %5683 = vmatprep.subr.bf16.mxu0 %v11101_v28  ;;  %v11187_v28 = vld [vmem:[%s14531_s7 + $0x2d8] ss:$12 sps:$4 sm:$0xff]  }
 0x54f   : > { %5684 = vmatpush1.bf16.msra.mxu0 %v11099_v31  ;;  %v11188_v31 = vld [vmem:[%s14531_s7 + $0x218] ss:$12 sps:$4 sm:$0xff]  }
 0x550   : > { %5685 = vmatprep.subr.bf16.mxu0 %v11104_v4  ;;  %v11189_v4 = vld [vmem:[%s14531_s7 + $0x2f0] ss:$12 sps:$4 sm:$0xff]  }
 0x553   : > { %5686 = vmatpush1.bf16.msra.mxu0 %v11102_v7  ;;  %v11190_v7 = vld [vmem:[%s14531_s7 + $0x230] ss:$12 sps:$4 sm:$0xff]  }
 0x554   : > { %5687 = vmatprep.subr.bf16.mxu0 %v11107_v42  ;;  %v11193_v42 = vld [vmem:[%s14531_s7 + $0x4] ss:$12 sps:$4 sm:$0xff]  }
 0x557   : > { %5688 = vmatpush1.bf16.msra.mxu0 %v11105_v45  ;;  %v11191_v45 = vld [vmem:[%s14531_s7] ss:$12 sps:$4 sm:$0xff]  }
 0x558   : > { %5689 = vmatprep.subr.bf16.mxu0 %v11110_v18  ;;  %v11196_v18 = vld [vmem:[%s14531_s7 + $0x1c] ss:$12 sps:$4 sm:$0xff]  }
 0x55b   : > { %5690 = vmatpush1.bf16.msra.mxu0 %v11108_v46  ;;  %v11194_v46 = vld [vmem:[%s14531_s7 + $0x18] ss:$12 sps:$4 sm:$0xff]  }
 0x55c   : > { %10038 = vmatprep.subr.bf16.mxu0 %v11135_v47  ;;  %v11199_v47 = vld [vmem:[%s14531_s7 + $0x34] ss:$12 sps:$4 sm:$0xff]  }
 0x55e   : > { %5696 = vmatmul.mubr.bf16.vlgmr.msra.gmra.mrb[16].mxu0 %v5257_v49  ;;  %v11202_v49 = vld [vmem:[%s14531_s7 + $0x4c] ss:$12 sps:$4 sm:$0xff]  }
 0x55f   : > { %10039 = vmatpush3.bf16.msra.mxu0 %v11136_v48  ;;  %v11197_v48 = vld [vmem:[%s14531_s7 + $0x30] ss:$12 sps:$4 sm:$0xff]  }
 0x560   : > { %10040 = vmatprep.subr.bf16.mxu0 %v11140_v50  ;;  %v11200_v50 = vld [vmem:[%s14531_s7 + $0x48] ss:$12 sps:$4 sm:$0xff]  }
 0x563   : > { %10041 = vmatpush3.bf16.msra.mxu0 %v11141_v51  ;;  %v11205_v51 = vld [vmem:[%s14531_s7 + $0x64] ss:$12 sps:$4 sm:$0xff]  }
 0x564   : > { %10042 = vmatprep.subr.bf16.mxu0 %v11145_v55  ;;  %v11203_v55 = vld [vmem:[%s14531_s7 + $0x60] ss:$12 sps:$4 sm:$0xff]  }
 0x567   : > { %10043 = vmatpush3.bf16.msra.mxu0 %v11146_v52  ;;  %v11208_v52 = vld [vmem:[%s14531_s7 + $0x7c] ss:$12 sps:$4 sm:$0xff]  }
 0x568   : > { %10044 = vmatprep.subr.bf16.mxu0 %v11150_v27  ;;  %v11206_v27 = vld [vmem:[%s14531_s7 + $0x78] ss:$12 sps:$4 sm:$0xff]  }
 0x56b   : > { %10045 = vmatpush3.bf16.msra.mxu0 %v11151_v54  ;;  %v11211_v54 = vld [vmem:[%s14531_s7 + $0x94] ss:$12 sps:$4 sm:$0xff]  }
 0x56c   : > { %10046 = vmatprep.subr.bf16.mxu0 %v11155_v56  ;;  %v11209_v56 = vld [vmem:[%s14531_s7 + $0x90] ss:$12 sps:$4 sm:$0xff]  }
 0x56f   : > { %10047 = vmatpush3.bf16.msra.mxu0 %v11156_v1  ;;  %v11214_v1 = vld [vmem:[%s14531_s7 + $0xac] ss:$12 sps:$4 sm:$0xff]  }
 0x570   : > { %10048 = vmatprep.subr.bf16.mxu0 %v11160_v33  ;;  %v11212_v33 = vld [vmem:[%s14531_s7 + $0xa8] ss:$12 sps:$4 sm:$0xff]  }
 0x573   : > { %10049 = vmatpush3.bf16.msra.mxu0 %v11161_v39  ;;  %v11217_v39 = vld [vmem:[%s14531_s7 + $0xc4] ss:$12 sps:$4 sm:$0xff]  }
 0x574   : > { %10050 = vmatprep.subr.bf16.mxu0 %v11165_v57  ;;  %v11215_v57 = vld [vmem:[%s14531_s7 + $0xc0] ss:$12 sps:$4 sm:$0xff]  }
 0x577   : > { %10051 = vmatpush3.bf16.msra.mxu0 %v11166_v58  ;;  %v11220_v58 = vld [vmem:[%s14531_s7 + $0xdc] ss:$12 sps:$4 sm:$0xff]  }
 0x578   : > { %10052 = vmatprep.subr.bf16.mxu0 %v11170_v60  ;;  %v11221_v60 = vld [vmem:[%s14531_s7 + $0xf0] ss:$12 sps:$4 sm:$0xff]  }
 0x57b   : > { %10053 = vmatpush3.bf16.msra.mxu0 %v11171_v36  ;;  %v11226_v36 = vld [vmem:[%s14531_s7 + $0x10c] ss:$12 sps:$4 sm:$0xff]  }
 0x631   : > { %v5697_v63 = vpop.f32.mrb[16].mxu0 }
 0x632   : > { %v13675_v3 = vpack.c.bf16 %v5697_v63, %v5697_v63  ;;  %v5699_v5 = vpop.f32.mrb[17].mxu0  ;;  %v11232_v63 = vld [vmem:[%s14531_s7 + $0x13c] ss:$12 sps:$4 sm:$0xff]  }
 0x633   : > { %v13677_v43 = vpack.c.bf16 %v5699_v5, %v5699_v5  ;;  %v5701_v6 = vpop.f32.mrb[18].mxu0  ;;  %v11230_v5 = vld [vmem:[%s14531_s7 + $0x138] ss:$12 sps:$4 sm:$0xff]  }
 0x634   : > { %v5702_v8 = vpop.f32.mrb[19].mxu0  ;;  %v5838_v30 = vshll.u32 %v13675_v3, 16  ;;  %v6592_v11 = vrot.slane %v13675_v3, 1  ;;  %v5836_v17 = vshrl.u32 %v13675_v3, 16  ;;  %v11235_v6 = vld [vmem:[%s14531_s7 + $0x154] ss:$12 sps:$4 sm:$0xff]  }
 0x635   : > { %v6593_v10 = vrot.slane %v13677_v43, 1  ;;  %v5845_v53 = vshll.u32 %v13677_v43, 16  ;;  %v5843_v13 = vshrl.u32 %v13677_v43, 16  ;;  %v11233_v8 = vld [vmem:[%s14531_s7 + $0x150] ss:$12 sps:$4 sm:$0xff]  }
 0x636   : > { %v5840_v12 = vrot.slane %v5838_v30, 1  ;;  %v11238_v30 = vld [vmem:[%s14531_s7 + $0x16c] ss:$12 sps:$4 sm:$0xff]  }
 0x637   : > { %6925 = vmatprep.mubr.bf16.mxu0 %v6593_v10  ;;  %v5847_v14 = vrot.slane %v5845_v53, 1  ;;  %v11236_v53 = vld [vmem:[%s14531_s7 + $0x168] ss:$12 sps:$4 sm:$0xff]  }
 0x638   : > { %6926 = vmatmul.mubr.bf16.vlgmr.msra.gmra.mrb[20].mxu0 %v6592_v11  ;;  %v5841_v16 = vor.u32 %v5840_v12, %v5836_v17  ;;  %v11239_v12 = vld [vmem:[%s14531_s7 + $0xc8] ss:$12 sps:$4 sm:$0xff]   ;;  %v11242_v17 = vld [vmem:[%s14531_s7 + $0x20] ss:$12 sps:$4 sm:$0xff]  }
 0x639   : > { %v5848_v19 = vor.u32 %v5847_v14, %v5843_v13  ;;  %v11240_v13 = vld [vmem:[%s14531_s7 + $0x8] ss:$12 sps:$4 sm:$0xff]   ;;  %v11241_v14 = vld [vmem:[%s14531_s7 + $0xe0] ss:$12 sps:$4 sm:$0xff]  }
 0x63b   : > { %6139 = vmatprep.mubr.bf16.mxu1 %v5848_v19 }
 0x63c   : > { %6140 = vmatmul.mubr.bf16.vlgmr.msra.gmra.mrb[16].mxu1 %v5841_v16 }
 0x63d   : > { %9995 = vmatpush3.bf16.msra.mxu1 %v11176_v9  ;;  %6180 = vmatprep.mubr.bf16.mxu1 %v5848_v19  ;;  %v11243_v19 = vld [vmem:[%s14531_s7 + $0xf8] ss:$12 sps:$4 sm:$0xff]  }
 0x63e   : > { %9996 = vmatprep.subr.bf16.mxu1 %v11177_v20  ;;  %v11244_v9 = vld [vmem:[%s14531_s7 + $0x38] ss:$12 sps:$4 sm:$0xff]   ;;  %v11246_v20 = vld [vmem:[%s14531_s7 + $0x50] ss:$12 sps:$4 sm:$0xff]  }
 0x641   : > { %9997 = vmatpush3.bf16.msra.mxu1 %v11178_v21  ;;  %v11247_v21 = vld [vmem:[%s14531_s7 + $0x128] ss:$12 sps:$4 sm:$0xff]  }
 0x642   : > { %9998 = vmatprep.subr.bf16.mxu1 %v11179_v23  ;;  %v11248_v23 = vld [vmem:[%s14531_s7 + $0x68] ss:$12 sps:$4 sm:$0xff]  }
 0x645   : > { %9999 = vmatpush3.bf16.msra.mxu1 %v11180_v40  ;;  %v11249_v40 = vld [vmem:[%s14531_s7 + $0x140] ss:$12 sps:$4 sm:$0xff]  }
 0x646   : > { %10000 = vmatprep.subr.bf16.mxu1 %v11181_v29  ;;  %v11250_v29 = vld [vmem:[%s14531_s7 + $0x80] ss:$12 sps:$4 sm:$0xff]  }
 0x649   : > { %10001 = vmatpush3.bf16.msra.mxu1 %v11182_v44  ;;  %v11251_v44 = vld [vmem:[%s14531_s7 + $0x158] ss:$12 sps:$4 sm:$0xff]  }
 0x64a   : > { %10002 = vmatprep.subr.bf16.mxu1 %v11183_v25  ;;  %v11252_v25 = vld [vmem:[%s14531_s7 + $0x98] ss:$12 sps:$4 sm:$0xff]  }
 0x64d   : > { %10003 = vmatpush3.bf16.msra.mxu1 %v11184_v0  ;;  %v11253_v0 = vld [vmem:[%s14531_s7 + $0x170] ss:$12 sps:$4 sm:$0xff]  }
 0x64e   : > { %10004 = vmatprep.subr.bf16.mxu1 %v11185_v22  ;;  %v11254_v22 = vld [vmem:[%s14531_s7 + $0xb0] ss:$12 sps:$4 sm:$0xff]  }
 0x651   : > { %10005 = vmatpush3.bf16.msra.mxu1 %v11186_v26  ;;  %v11257_v26 = vld [vmem:[%s14531_s7 + $0x304] ss:$12 sps:$4 sm:$0xff]  }
 0x652   : > { %10006 = vmatprep.subr.bf16.mxu1 %v11187_v28  ;;  %v11255_v28 = vld [vmem:[%s14531_s7 + $0x300] ss:$12 sps:$4 sm:$0xff]  }
 0x655   : > { %10007 = vmatpush3.bf16.msra.mxu1 %v11188_v31  ;;  %v11260_v31 = vld [vmem:[%s14531_s7 + $0x31c] ss:$12 sps:$4 sm:$0xff]  }
 0x656   : > { %10008 = vmatprep.subr.bf16.mxu1 %v11189_v4  ;;  %v11258_v4 = vld [vmem:[%s14531_s7 + $0x318] ss:$12 sps:$4 sm:$0xff]  }
 0x659   : > { %10009 = vmatpush3.bf16.msra.mxu1 %v11190_v7  ;;  %v11263_v7 = vld [vmem:[%s14531_s7 + $0x334] ss:$12 sps:$4 sm:$0xff]  }
 0x65a   : > { %6444 = vmatprep.subr.bf16.mxu1 %v11193_v42  ;;  %v11261_v42 = vld [vmem:[%s14531_s7 + $0x330] ss:$12 sps:$4 sm:$0xff]  }
 0x65c   : > { %6181 = vmatmul.mubr.bf16.vlgmr.msra.gmra.mrb[20].mxu1 %v5841_v16  ;;  %v11245_v16 = vld [vmem:[%s14531_s7 + $0x110] ss:$12 sps:$4 sm:$0xff]  }
 0x65d   : > { %6445 = vmatpush1.bf16.msra.mxu1 %v11191_v45  ;;  %6476 = vmatprep.mubr.bf16.mxu1 %v13677_v43  ;;  %v11269_v45 = vld [vmem:[%s14531_s7 + $0x364] ss:$12 sps:$4 sm:$0xff]  }
 0x65e   : > { %6446 = vmatprep.subr.bf16.mxu1 %v11196_v18  ;;  %v11267_v18 = vld [vmem:[%s14531_s7 + $0x360] ss:$12 sps:$4 sm:$0xff]  }
 0x661   : > { %6447 = vmatpush1.bf16.msra.mxu1 %v11194_v46  ;;  %v11272_v46 = vld [vmem:[%s14531_s7 + $0x37c] ss:$12 sps:$4 sm:$0xff]  }
 0x662   : > { %6448 = vmatprep.subr.bf16.mxu1 %v11199_v47  ;;  %v11270_v47 = vld [vmem:[%s14531_s7 + $0x378] ss:$12 sps:$4 sm:$0xff]  }
 0x665   : > { %6449 = vmatpush1.bf16.msra.mxu1 %v11197_v48  ;;  %v11275_v48 = vld [vmem:[%s14531_s7 + $0x394] ss:$12 sps:$4 sm:$0xff]  }
 0x666   : > { %6450 = vmatprep.subr.bf16.mxu1 %v11202_v49  ;;  %v11273_v49 = vld [vmem:[%s14531_s7 + $0x390] ss:$12 sps:$4 sm:$0xff]  }
 0x669   : > { %6451 = vmatpush1.bf16.msra.mxu1 %v11200_v50  ;;  %v11278_v50 = vld [vmem:[%s14531_s7 + $0x3ac] ss:$12 sps:$4 sm:$0xff]  }
 0x66a   : > { %6452 = vmatprep.subr.bf16.mxu1 %v11205_v51  ;;  %v11276_v51 = vld [vmem:[%s14531_s7 + $0x3a8] ss:$12 sps:$4 sm:$0xff]  }
 0x66d   : > { %6453 = vmatpush1.bf16.msra.mxu1 %v11203_v55  ;;  %v11281_v55 = vld [vmem:[%s14531_s7 + $0x3c4] ss:$12 sps:$4 sm:$0xff]  }
 0x66e   : > { %6454 = vmatprep.subr.bf16.mxu1 %v11208_v52  ;;  %v11279_v52 = vld [vmem:[%s14531_s7 + $0x3c0] ss:$12 sps:$4 sm:$0xff]  }
 0x671   : > { %6455 = vmatpush1.bf16.msra.mxu1 %v11206_v27  ;;  %v11284_v27 = vld [vmem:[%s14531_s7 + $0x3dc] ss:$12 sps:$4 sm:$0xff]  }
 0x672   : > { %6456 = vmatprep.subr.bf16.mxu1 %v11211_v54  ;;  %v11282_v54 = vld [vmem:[%s14531_s7 + $0x3d8] ss:$12 sps:$4 sm:$0xff]  }
 0x675   : > { %6457 = vmatpush1.bf16.msra.mxu1 %v11209_v56  ;;  %v11287_v56 = vld [vmem:[%s14531_s7 + $0x3f4] ss:$12 sps:$4 sm:$0xff]  }
 0x676   : > { %6458 = vmatprep.subr.bf16.mxu1 %v11214_v1  ;;  %v11285_v1 = vld [vmem:[%s14531_s7 + $0x3f0] ss:$12 sps:$4 sm:$0xff]  }
 0x679   : > { %6459 = vmatpush1.bf16.msra.mxu1 %v11212_v33  ;;  %v11290_v33 = vld [vmem:[%s14531_s7 + $0x40c] ss:$12 sps:$4 sm:$0xff]  }
 0x67a   : > { %6460 = vmatprep.subr.bf16.mxu1 %v11217_v39  ;;  %v11288_v39 = vld [vmem:[%s14531_s7 + $0x408] ss:$12 sps:$4 sm:$0xff]  }
 0x67d   : > { %6461 = vmatpush1.bf16.msra.mxu1 %v11215_v57  ;;  %v11293_v57 = vld [vmem:[%s14531_s7 + $0x424] ss:$12 sps:$4 sm:$0xff]  }
 0x67e   : > { %6462 = vmatprep.subr.bf16.mxu1 %v11220_v58  ;;  %v11291_v58 = vld [vmem:[%s14531_s7 + $0x420] ss:$12 sps:$4 sm:$0xff]  }
 0x681   : > { %6463 = vmatpush1.bf16.msra.mxu1 %v11218_v32  ;;  %v11296_v32 = vld [vmem:[%s14531_s7 + $0x43c] ss:$12 sps:$4 sm:$0xff]  }
 0x682   : > { %6464 = vmatprep.subr.bf16.mxu1 %v11223_v59  ;;  %v11294_v59 = vld [vmem:[%s14531_s7 + $0x438] ss:$12 sps:$4 sm:$0xff]  }
 0x685   : > { %6465 = vmatpush1.bf16.msra.mxu1 %v11221_v60  ;;  %v11299_v60 = vld [vmem:[%s14531_s7 + $0x454] ss:$12 sps:$4 sm:$0xff]  }
 0x686   : > { %6466 = vmatprep.subr.bf16.mxu1 %v11226_v36  ;;  %v11297_v36 = vld [vmem:[%s14531_s7 + $0x450] ss:$12 sps:$4 sm:$0xff]  }
 0x689   : > { %6467 = vmatpush1.bf16.msra.mxu1 %v11224_v15  ;;  %v11302_v15 = vld [vmem:[%s14531_s7 + $0x46c] ss:$12 sps:$4 sm:$0xff]  }
 0x68a   : > { %6468 = vmatprep.subr.bf16.mxu1 %v11229_v61  ;;  %v11300_v61 = vld [vmem:[%s14531_s7 + $0x468] ss:$12 sps:$4 sm:$0xff]  }
 0x68d   : > { %6469 = vmatpush1.bf16.msra.mxu1 %v11227_v62 }
 0x68e   : > { %6470 = vmatprep.subr.bf16.mxu1 %v11232_v63 }
 0x691   : > { %6471 = vmatpush1.bf16.msra.mxu1 %v11230_v5 }
 0x692   : > { %6472 = vmatprep.subr.bf16.mxu1 %v11235_v6 }
 0x695   : > { %6473 = vmatpush1.bf16.msra.mxu1 %v11233_v8 }
 0x696   : > { %6474 = vmatprep.subr.bf16.mxu1 %v11238_v30  ;;  %v11303_v30 = vld [vmem:[%s14533_s9 + $0x180] ss:$8 sps:$4 sm:$0xff]  }
 0x699   : > { %6475 = vmatpush1.bf16.msra.mxu1 %v11236_v53  ;;  %v11305_v53 = vld [vmem:[%s14533_s9 + $0x184] ss:$8 sps:$4 sm:$0xff]  }
 0x69a   : > { %10016 = vmatprep.subr.bf16.mxu1 %v11239_v12  ;;  %7344 = vmatprep.subr.bf16.mxu0 %v11305_v53  ;;  %v11311_v12 = vld [vmem:[%s14533_s9 + $0x1a4] ss:$8 sps:$4 sm:$0xff]  }
 0x69b   : > { %7345 = vmatpush1.bf16.msra.mxu0 %v11303_v30 }
 0x69c   : > { %6477 = vmatmul.mubr.bf16.vlgmr.msra.gmra.mrb[16].mxu1 %v13675_v3 }
 0x69d   : > { %10017 = vmatpush3.bf16.msra.mxu1 %v11240_v13  ;;  %6517 = vmatprep.mubr.bf16.mxu1 %v13677_v43  ;;  %v11266_v43 = vld [vmem:[%s14531_s7 + $0x34c] ss:$12 sps:$4 sm:$0xff]   ;;  %v11309_v13 = vld [vmem:[%s14533_s9 + $0x1a0] ss:$8 sps:$4 sm:$0xff]  }
 0x69e   : > { %10018 = vmatprep.subr.bf16.mxu1 %v11241_v14  ;;  %v11314_v14 = vld [vmem:[%s14533_s9 + $0x1b4] ss:$8 sps:$4 sm:$0xff]  }
 0x6a1   : > { %10019 = vmatpush3.bf16.msra.mxu1 %v11242_v17  ;;  %v11312_v17 = vld [vmem:[%s14533_s9 + $0x1b0] ss:$8 sps:$4 sm:$0xff]  }
 0x6a2   : > { %10020 = vmatprep.subr.bf16.mxu1 %v11243_v19  ;;  %v11317_v19 = vld [vmem:[%s14533_s9 + $0x1c4] ss:$8 sps:$4 sm:$0xff]  }
 0x6a5   : > { %10021 = vmatpush3.bf16.msra.mxu1 %v11244_v9  ;;  %v11315_v9 = vld [vmem:[%s14533_s9 + $0x1c0] ss:$8 sps:$4 sm:$0xff]  }
 0x6a6   : > { %10022 = vmatprep.subr.bf16.mxu1 %v11245_v16  ;;  %v11320_v16 = vld [vmem:[%s14533_s9 + $0x1d4] ss:$8 sps:$4 sm:$0xff]  }
 0x6a9   : > { %10023 = vmatpush3.bf16.msra.mxu1 %v11246_v20  ;;  %v11318_v20 = vld [vmem:[%s14533_s9 + $0x1d0] ss:$8 sps:$4 sm:$0xff]  }
 0x6aa   : > { %10024 = vmatprep.subr.bf16.mxu1 %v11247_v21  ;;  %v11323_v21 = vld [vmem:[%s14533_s9 + $0x1e4] ss:$8 sps:$4 sm:$0xff]  }
 0x6ad   : > { %10025 = vmatpush3.bf16.msra.mxu1 %v11248_v23  ;;  %v11321_v23 = vld [vmem:[%s14533_s9 + $0x1e0] ss:$8 sps:$4 sm:$0xff]  }
 0x6ae   : > { %10026 = vmatprep.subr.bf16.mxu1 %v11249_v40  ;;  %v11326_v40 = vld [vmem:[%s14533_s9 + $0x1f4] ss:$8 sps:$4 sm:$0xff]  }
 0x6b1   : > { %10027 = vmatpush3.bf16.msra.mxu1 %v11250_v29 }
 0x6b2   : > { %10028 = vmatprep.subr.bf16.mxu1 %v11251_v44 }
 0x6b5   : > { %10029 = vmatpush3.bf16.msra.mxu1 %v11252_v25  ;;  %v11324_v25 = vld [vmem:[%s14533_s9 + $0x1f0] ss:$8 sps:$4 sm:$0xff]  }
 0x6b6   : > { %10030 = vmatprep.subr.bf16.mxu1 %v11253_v0 }
 0x6b9   : > { %10031 = vmatpush3.bf16.msra.mxu1 %v11254_v22 }
 0x6ba   : > { %6852 = vmatprep.subr.bf16.mxu1 %v11257_v26  ;;  %v11329_v26 = vld [vmem:[%s14533_s9 + $0x204] ss:$8 sps:$4 sm:$0xff]  }
 0x6bc   : > { %6518 = vmatmul.mubr.bf16.vlgmr.msra.gmra.mrb[24].mxu1 %v13675_v3  ;;  %v11308_v3 = vld [vmem:[%s14533_s9 + $0x194] ss:$8 sps:$4 sm:$0xff]  }
 0x6bd   : > { %6853 = vmatpush1.bf16.msra.mxu1 %v11255_v28  ;;  %6884 = vmatprep.mubr.bf16.mxu1 %v6593_v10  ;;  %v11264_v10 = vld [vmem:[%s14531_s7 + $0x348] ss:$12 sps:$4 sm:$0xff]  }
 0x6be   : > { %6854 = vmatprep.subr.bf16.mxu1 %v11260_v31  ;;  %7346 = vmatprep.subr.bf16.mxu0 %v11308_v3  ;;  %v11327_v31 = vld [vmem:[%s14533_s9 + $0x200] ss:$8 sps:$4 sm:$0xff]  }
 0x6c1   : > { %6855 = vmatpush1.bf16.msra.mxu1 %v11258_v4  ;;  %v11332_v4 = vld [vmem:[%s14533_s9 + $0x214] ss:$8 sps:$4 sm:$0xff]  }
 0x6c2   : > { %6856 = vmatprep.subr.bf16.mxu1 %v11263_v7  ;;  %v11330_v7 = vld [vmem:[%s14533_s9 + $0x210] ss:$8 sps:$4 sm:$0xff]  }
 0x6c5   : > { %6857 = vmatpush1.bf16.msra.mxu1 %v11261_v42  ;;  %v11335_v42 = vld [vmem:[%s14533_s9 + $0x224] ss:$8 sps:$4 sm:$0xff]  }
 0x6c6   : > { %6858 = vmatprep.subr.bf16.mxu1 %v11266_v43  ;;  %v11333_v43 = vld [vmem:[%s14533_s9 + $0x220] ss:$8 sps:$4 sm:$0xff]  }
 0x6c9   : > { %6859 = vmatpush1.bf16.msra.mxu1 %v11264_v10  ;;  %v11338_v10 = vld [vmem:[%s14533_s9 + $0x234] ss:$8 sps:$4 sm:$0xff]  }
 0x6ca   : > { %6860 = vmatprep.subr.bf16.mxu1 %v11269_v45  ;;  %v11336_v45 = vld [vmem:[%s14533_s9 + $0x230] ss:$8 sps:$4 sm:$0xff]  }
 0x6cd   : > { %6861 = vmatpush1.bf16.msra.mxu1 %v11267_v18  ;;  %v11339_v18 = vld [vmem:[%s14533_s9 + $0x240] ss:$8 sps:$4 sm:$0xff]  }
 0x6ce   : > { %6862 = vmatprep.subr.bf16.mxu1 %v11272_v46  ;;  %v11341_v46 = vld [vmem:[%s14533_s9 + $0x244] ss:$8 sps:$4 sm:$0xff]  }
 0x6d1   : > { %6863 = vmatpush1.bf16.msra.mxu1 %v11270_v47  ;;  %v11344_v47 = vld [vmem:[%s14533_s9 + $0x254] ss:$8 sps:$4 sm:$0xff]  }
 0x6d2   : > { %6864 = vmatprep.subr.bf16.mxu1 %v11275_v48  ;;  %v11342_v48 = vld [vmem:[%s14533_s9 + $0x250] ss:$8 sps:$4 sm:$0xff]  }
 0x6d5   : > { %6865 = vmatpush1.bf16.msra.mxu1 %v11273_v49  ;;  %v11347_v49 = vld [vmem:[%s14533_s9 + $0x264] ss:$8 sps:$4 sm:$0xff]  }
 0x6d6   : > { %6866 = vmatprep.subr.bf16.mxu1 %v11278_v50  ;;  %v11345_v50 = vld [vmem:[%s14533_s9 + $0x260] ss:$8 sps:$4 sm:$0xff]  }
 0x6d9   : > { %6867 = vmatpush1.bf16.msra.mxu1 %v11276_v51  ;;  %v11350_v51 = vld [vmem:[%s14533_s9 + $0x274] ss:$8 sps:$4 sm:$0xff]  }
 0x6da   : > { %6868 = vmatprep.subr.bf16.mxu1 %v11281_v55  ;;  %v11348_v55 = vld [vmem:[%s14533_s9 + $0x270] ss:$8 sps:$4 sm:$0xff]  }
 0x6dd   : > { %6869 = vmatpush1.bf16.msra.mxu1 %v11279_v52  ;;  %v11353_v52 = vld [vmem:[%s14533_s9 + $0x284] ss:$8 sps:$4 sm:$0xff]  }
 0x6de   : > { %6870 = vmatprep.subr.bf16.mxu1 %v11284_v27 }
 0x6e1   : > { %6871 = vmatpush1.bf16.msra.mxu1 %v11282_v54 }
 0x6e2   : > { %6872 = vmatprep.subr.bf16.mxu1 %v11287_v56 }
 0x6e5   : > { %6873 = vmatpush1.bf16.msra.mxu1 %v11285_v1 }
 0x6e6   : > { %6874 = vmatprep.subr.bf16.mxu1 %v11290_v33 }
 0x6e9   : > { %6875 = vmatpush1.bf16.msra.mxu1 %v11288_v39 }
 0x6ea   : > { %6876 = vmatprep.subr.bf16.mxu1 %v11293_v57 }
 0x6ed   : > { %6877 = vmatpush1.bf16.msra.mxu1 %v11291_v58  ;;  %v6936_v58 = vld [vmem:[%s14532_s8] ss:$2 sm:$0x7] }
 0x6ee   : > { %6878 = vmatprep.subr.bf16.mxu1 %v11296_v32  ;;  %v6941_v32 = vrot.slane %v6936_v58, %v12077_v37 }
 0x6f1   : > { %6879 = vmatpush1.bf16.msra.mxu1 %v11294_v59  ;;  %v9701_v59 = vld [vmem:[%s14532_s8 + $0x1] ss:$2 sm:$0x7] }
 0x6f2   : > { %6880 = vmatprep.subr.bf16.mxu1 %v11299_v60  ;;  %v6945_v60 = vrot.slane %v6936_v58, %v12086_v41 }
 0x6f5   : > { %6881 = vmatpush1.bf16.msra.mxu1 %v11297_v36  ;;  %v6962_v36 = vrot.slane %v9701_v59, %v12077_v37 }
 0x6f6   : > { %6882 = vmatprep.subr.bf16.mxu1 %v11302_v15 }
 0x6f9   : > { %6883 = vmatpush1.bf16.msra.mxu1 %v11300_v61  ;;  %v6966_v61 = vrot.slane %v9701_v59, %v12086_v41 }
 0x6fc   : > { %6885 = vmatmul.mubr.bf16.vlgmr.msra.gmra.mrb[16].mxu1 %v6592_v11  ;;  %v11306_v11 = vld [vmem:[%s14533_s9 + $0x190] ss:$8 sps:$4 sm:$0xff]  }
 0x6fd   : > { %8229 = vmatprep.mubr.bf16.mxu1 %v11539_v2  ;;  %7347 = vmatpush1.bf16.msra.mxu0 %v11306_v11 }
 0x6fe   : > { %7348 = vmatprep.subr.bf16.mxu0 %v11311_v12 }
 0x701   : > { %7349 = vmatpush1.bf16.msra.mxu0 %v11309_v13 }
 0x702   : > { %7350 = vmatprep.subr.bf16.mxu0 %v11314_v14 }
 0x705   : > { %7351 = vmatpush1.bf16.msra.mxu0 %v11312_v17 }
 0x706   : > { %7352 = vmatprep.subr.bf16.mxu0 %v11317_v19 }
 0x709   : > { %7353 = vmatpush1.bf16.msra.mxu0 %v11315_v9 }
 0x70a   : > { %7354 = vmatprep.subr.bf16.mxu0 %v11320_v16 }
 0x70b   : > { %v10054_v62 = vpop.f32.mrb[20].mxu0 }
 0x70c   : > { %v10055_v63 = vpop.f32.mrb[21].mxu0 }
 0x70d   : > { %v13983_v5 = vadd.f32 %v10055_v63, %v10054_v62  ;;  %v10057_v6 = vpop.f32.mrb[22].mxu0  ;;  %7355 = vmatpush1.bf16.msra.mxu0 %v11318_v20 }
 0x70e   : > { %v10058_v8 = vpop.f32.mrb[23].mxu0  ;;  %7356 = vmatprep.subr.bf16.mxu0 %v11323_v21 }
 0x711   : > { %7357 = vmatpush1.bf16.msra.mxu0 %v11321_v23  ;;  %v11351_v23 = vld [vmem:[%s14533_s9 + $0x280] ss:$8 sps:$4 sm:$0xff]  }
 0x712   : > { %7358 = vmatprep.subr.bf16.mxu0 %v11326_v40 }
 0x715   : > { %7359 = vmatpush1.bf16.msra.mxu0 %v11324_v25  ;;  %v6949_v25 = vrot.slane %v6936_v58, %v12080_v38  ;;  %v11384_v58 = vld [vmem:[%s14533_s9 + $0x30] ss:$8 sps:$4 sm:$0xff]  }
 0x716   : > { %7360 = vmatprep.subr.bf16.mxu0 %v11329_v26 }
 0x719   : > { %7361 = vmatpush1.bf16.msra.mxu0 %v11327_v31  ;;  %v11362_v31 = vld [vmem:[%s14533_s9 + $0x2b4] ss:$8 sps:$4 sm:$0xff]  }
 0x71a   : > { %7362 = vmatprep.subr.bf16.mxu0 %v11332_v4  ;;  %v11360_v4 = vld [vmem:[%s14533_s9 + $0x2b0] ss:$8 sps:$4 sm:$0xff]  }
 0x71d   : > { %7363 = vmatpush1.bf16.msra.mxu0 %v11330_v7 }
 0x71e   : > { %7364 = vmatprep.subr.bf16.mxu0 %v11335_v42  ;;  %v11365_v42 = vld [vmem:[%s14533_s9 + $0x2c4] ss:$8 sps:$4 sm:$0xff]  }
 0x721   : > { %7365 = vmatpush1.bf16.msra.mxu0 %v11333_v43 }
 0x722   : > { %7366 = vmatprep.subr.bf16.mxu0 %v11338_v10  ;;  %v11368_v10 = vld [vmem:[%s14533_s9 + $0x2d4] ss:$8 sps:$4 sm:$0xff]  }
 0x725   : > { %7367 = vmatpush1.bf16.msra.mxu0 %v11336_v45  ;;  %v11366_v45 = vld [vmem:[%s14533_s9 + $0x2d0] ss:$8 sps:$4 sm:$0xff]  }
 0x726   : > { %7368 = vmatprep.subr.bf16.mxu0 %v11341_v46  ;;  %v11371_v46 = vld [vmem:[%s14533_s9 + $0x2e4] ss:$8 sps:$4 sm:$0xff]  }
 0x729   : > { %7369 = vmatpush1.bf16.msra.mxu0 %v11339_v18 }
 0x72a   : > { %7370 = vmatprep.subr.bf16.mxu0 %v11344_v47  ;;  %v11369_v47 = vld [vmem:[%s14533_s9 + $0x2e0] ss:$8 sps:$4 sm:$0xff]  }
 0x72d   : > { %7371 = vmatpush1.bf16.msra.mxu0 %v11342_v48  ;;  %v11374_v48 = vld [vmem:[%s14533_s9 + $0x2f4] ss:$8 sps:$4 sm:$0xff]  }
 0x72e   : > { %7372 = vmatprep.subr.bf16.mxu0 %v11347_v49 }
 0x72f   : > { %v10010_v29 = vpop.f32.mrb[20].mxu1 }
 0x730   : > { %v10011_v44 = vpop.f32.mrb[21].mxu1 }
 0x731   : > { %v10012_v0 = vadd.f32 %v10011_v44, %v10010_v29  ;;  %v10013_v22 = vpop.f32.mrb[22].mxu1  ;;  %7373 = vmatpush1.bf16.msra.mxu0 %v11345_v50  ;;  %v11356_v29 = vld [vmem:[%s14533_s9 + $0x294] ss:$8 sps:$4 sm:$0xff]   ;;  %v11354_v44 = vld [vmem:[%s14533_s9 + $0x290] ss:$8 sps:$4 sm:$0xff]  }
 0x732   : > { %v10014_v28 = vpop.f32.mrb[23].mxu1  ;;  %7374 = vmatprep.subr.bf16.mxu0 %v11350_v51  ;;  %v11357_v22 = vld [vmem:[%s14533_s9 + $0x2a0] ss:$8 sps:$4 sm:$0xff]   ;;  %v11372_v50 = vld [vmem:[%s14533_s9 + $0x2f0] ss:$8 sps:$4 sm:$0xff]  }
 0x733   : > { %v6970_v28 = vrot.slane %v9701_v59, %v12080_v38  ;;  %v11363_v38 = vld [vmem:[%s14533_s9 + $0x2c0] ss:$8 sps:$4 sm:$0xff]  }
 0x734   : > { %v11387_v59 = vld [vmem:[%s14533_s9 + $0x40] ss:$8 sps:$4 sm:$0xff]  }
 0x735   : > { %7375 = vmatpush1.bf16.msra.mxu0 %v11348_v55  ;;  %v11377_v55 = vld [vmem:[%s14533_s9 + $0x4] ss:$8 sps:$4 sm:$0xff]  }
 0x736   : > { %7385 = vmatprep.subr.bf16.mxu0 %v11353_v52 }
 0x78f   : > { %v10032_v27 = vpop.f32.mrb[24].mxu1 }
 0x790   : > { %v10033_v54 = vpop.f32.mrb[25].mxu1 }
 0x791   : > { %v10034_v56 = vadd.f32 %v10033_v54, %v10032_v27  ;;  %v10035_v1 = vpop.f32.mrb[26].mxu1  ;;  %v11375_v27 = vld [vmem:[%s14533_s9] ss:$8 sps:$4 sm:$0xff]  }
 0x792   : > { %v10036_v33 = vpop.f32.mrb[27].mxu1  ;;  %v11378_v1 = vld [vmem:[%s14533_s9 + $0x10] ss:$8 sps:$4 sm:$0xff]  }
 0x793   : > { %v6520_v39 = vadd.f32 %v10034_v56, %v10012_v0  ;;  %v11359_v0 = vld [vmem:[%s14533_s9 + $0x2a4] ss:$8 sps:$4 sm:$0xff]   ;;  %v11380_v56 = vld [vmem:[%s14533_s9 + $0x14] ss:$8 sps:$4 sm:$0xff]  }
 0x794   : > { %v11383_v33 = vld [vmem:[%s14533_s9 + $0x24] ss:$8 sps:$4 sm:$0xff]  }
 0x795   : > { %v6935_v57 = vadd.f32 %v13983_v5, %v6520_v39  ;;  %v11381_v39 = vld [vmem:[%s14533_s9 + $0x20] ss:$8 sps:$4 sm:$0xff]  }
 0x797   : > { %v6955_v26 = vmul.f32 %v6949_v25, %v6935_v57  ;;  %v11386_v57 = vld [vmem:[%s14533_s9 + $0x34] ss:$8 sps:$4 sm:$0xff]  }
 0x798   : > { %v11428_v25 = vld [vmem:[%s14533_s9 + $0x114] ss:$8 sps:$4 sm:$0xff]  }
 0x799   : > { %v6976_v7 = vadd.f32 %v6970_v28, %v6955_v26  ;;  %v11429_v26 = vld [vmem:[%s14533_s9 + $0x120] ss:$8 sps:$4 sm:$0xff]   ;;  %v11434_v28 = vld [vmem:[%s14533_s9 + $0x134] ss:$8 sps:$4 sm:$0xff]  }
 0x79b   : > { %v6979_v43 = vmax.f32 %v6976_v7, 0.0  ;;  %v11435_v7 = vld [vmem:[%s14533_s9 + $0x140] ss:$8 sps:$4 sm:$0xff]  }
 0x79d   : > { %v14139_v18 = vpack.c.bf16 %v6979_v43, %v6979_v43  ;;  %v11443_v43 = vld [vmem:[%s14533_s9 + $0x164] ss:$8 sps:$4 sm:$0xff]  }
 0x79f   : > { %v7097_v49 = vshll.u32 %v14139_v18, 16  ;;  %v7095_v52 = vshrl.u32 %v14139_v18, 16 }
 0x7a1   : > { %v7099_v51 = vrot.slane %v7097_v49, 1  ;;  %v11452_v49 = vld [vmem:[%s14533_s9 + $0x314] ss:$8 sps:$4 sm:$0xff]  }
 0x7a3   : > { %v7100_v54 = vor.u32 %v7099_v51, %v7095_v52  ;;  %v11450_v51 = vld [vmem:[%s14533_s9 + $0x310] ss:$8 sps:$4 sm:$0xff]   ;;  %v11453_v52 = vld [vmem:[%s14533_s9 + $0x320] ss:$8 sps:$4 sm:$0xff]  }
 0x7cf   : > { %v6886_v15 = vpop.f32.mrb[16].mxu1 }
 0x7d0   : > { %v6953_v62 = vmul.f32 %v6941_v32, %v6886_v15  ;;  %v6888_v63 = vpop.f32.mrb[17].mxu1  ;;  %v11389_v32 = vld [vmem:[%s14533_s9 + $0x44] ss:$8 sps:$4 sm:$0xff]  }
 0x7d1   : > { %v6954_v5 = vmul.f32 %v6945_v60, %v6888_v63  ;;  %v6890_v6 = vpop.f32.mrb[18].mxu1  ;;  %v11392_v60 = vld [vmem:[%s14533_s9 + $0x54] ss:$8 sps:$4 sm:$0xff]   ;;  %v11395_v15 = vld [vmem:[%s14533_s9 + $0x64] ss:$8 sps:$4 sm:$0xff]  }
 0x7d2   : > { %v6974_v8 = vadd.f32 %v6962_v36, %v6953_v62  ;;  %v6891_v30 = vpop.f32.mrb[19].mxu1  ;;  %v11390_v36 = vld [vmem:[%s14533_s9 + $0x50] ss:$8 sps:$4 sm:$0xff]   ;;  %v11398_v62 = vld [vmem:[%s14533_s9 + $0x74] ss:$8 sps:$4 sm:$0xff]  }
 0x7d3   : > { %v6975_v53 = vadd.f32 %v6966_v61, %v6954_v5  ;;  %v11393_v61 = vld [vmem:[%s14533_s9 + $0x60] ss:$8 sps:$4 sm:$0xff]   ;;  %v11396_v63 = vld [vmem:[%s14533_s9 + $0x70] ss:$8 sps:$4 sm:$0xff]   ;;  %v11401_v5 = vld [vmem:[%s14533_s9 + $0x84] ss:$8 sps:$4 sm:$0xff]  }
 0x7d4   : > { %v6977_v3 = vmax.f32 %v6974_v8, 0.0  ;;  %v11399_v6 = vld [vmem:[%s14533_s9 + $0x80] ss:$8 sps:$4 sm:$0xff]   ;;  %v11404_v8 = vld [vmem:[%s14533_s9 + $0x94] ss:$8 sps:$4 sm:$0xff]  }
 0x7d5   : > { %v6978_v11 = vmax.f32 %v6975_v53, 0.0  ;;  %v11402_v30 = vld [vmem:[%s14533_s9 + $0x90] ss:$8 sps:$4 sm:$0xff]   ;;  %v11407_v53 = vld [vmem:[%s14533_s9 + $0xa4] ss:$8 sps:$4 sm:$0xff]  }
 0x7d6   : > { %v14095_v12 = vpack.c.bf16 %v6977_v3, %v6977_v3  ;;  %v11405_v3 = vld [vmem:[%s14533_s9 + $0xa0] ss:$8 sps:$4 sm:$0xff]  }
 0x7d7   : > { %v14097_v13 = vpack.c.bf16 %v6978_v11, %v6978_v11  ;;  %v11410_v11 = vld [vmem:[%s14533_s9 + $0xb4] ss:$8 sps:$4 sm:$0xff]  }
 0x7d8   : > { %v7083_v14 = vshll.u32 %v14095_v12, 16  ;;  %v7081_v20 = vshrl.u32 %v14095_v12, 16 }
 0x7d9   : > { %v7090_v17 = vshll.u32 %v14097_v13, 16  ;;  %v7088_v9 = vshrl.u32 %v14097_v13, 16 }
 0x7da   : > { %v7085_v19 = vrot.slane %v7083_v14, 1  ;;  %v11408_v14 = vld [vmem:[%s14533_s9 + $0xb0] ss:$8 sps:$4 sm:$0xff]  }
 0x7db   : > { %v7092_v16 = vrot.slane %v7090_v17, 1  ;;  %v11413_v17 = vld [vmem:[%s14533_s9 + $0xc4] ss:$8 sps:$4 sm:$0xff]  }
 0x7dc   : > { %v7086_v40 = vor.u32 %v7085_v19, %v7081_v20  ;;  %v11411_v19 = vld [vmem:[%s14533_s9 + $0xc0] ss:$8 sps:$4 sm:$0xff]   ;;  %v11419_v20 = vld [vmem:[%s14533_s9 + $0xe4] ss:$8 sps:$4 sm:$0xff]  }
 0x7dd   : > { %v7093_v21 = vor.u32 %v7092_v16, %v7088_v9  ;;  %v11416_v9 = vld [vmem:[%s14533_s9 + $0xd4] ss:$8 sps:$4 sm:$0xff]   ;;  %v11414_v16 = vld [vmem:[%s14533_s9 + $0xd0] ss:$8 sps:$4 sm:$0xff]  }
 0x7df   : > { %7376 = vmatprep.mubr.bf16.mxu0 %v7093_v21  ;;  %v11417_v21 = vld [vmem:[%s14533_s9 + $0xe0] ss:$8 sps:$4 sm:$0xff]  }
 0x7e0   : > { %7377 = vmatmul.mubr.bf16.vlgmr.msra.gmra.mrb[24].mxu0 %v7086_v40  ;;  %v11420_v40 = vld [vmem:[%s14533_s9 + $0xf0] ss:$8 sps:$4 sm:$0xff]  }
 0x7e1   : > { %7386 = vmatpush1.bf16.msra.mxu0 %v11351_v23  ;;  %7417 = vmatprep.mubr.bf16.mxu0 %v11539_v2  ;;  %v11422_v23 = vld [vmem:[%s14533_s9 + $0xf4] ss:$8 sps:$4 sm:$0xff]  }
 0x7e2   : > { %7387 = vmatprep.subr.bf16.mxu0 %v11356_v29  ;;  %v11425_v29 = vld [vmem:[%s14533_s9 + $0x104] ss:$8 sps:$4 sm:$0xff]  }
 0x7e5   : > { %7388 = vmatpush1.bf16.msra.mxu0 %v11354_v44  ;;  %v11423_v44 = vld [vmem:[%s14533_s9 + $0x100] ss:$8 sps:$4 sm:$0xff]  }
 0x7e6   : > { %7389 = vmatprep.subr.bf16.mxu0 %v11359_v0  ;;  %v11426_v0 = vld [vmem:[%s14533_s9 + $0x110] ss:$8 sps:$4 sm:$0xff]  }
 0x7e9   : > { %7390 = vmatpush1.bf16.msra.mxu0 %v11357_v22  ;;  %v11431_v22 = vld [vmem:[%s14533_s9 + $0x124] ss:$8 sps:$4 sm:$0xff]  }
 0x7ea   : > { %7391 = vmatprep.subr.bf16.mxu0 %v11362_v31  ;;  %v11432_v31 = vld [vmem:[%s14533_s9 + $0x130] ss:$8 sps:$4 sm:$0xff]  }
 0x7ed   : > { %7392 = vmatpush1.bf16.msra.mxu0 %v11360_v4  ;;  %v11437_v4 = vld [vmem:[%s14533_s9 + $0x144] ss:$8 sps:$4 sm:$0xff]  }
 0x7ee   : > { %7393 = vmatprep.subr.bf16.mxu0 %v11365_v42  ;;  %v11440_v42 = vld [vmem:[%s14533_s9 + $0x154] ss:$8 sps:$4 sm:$0xff]  }
 0x7f1   : > { %7394 = vmatpush1.bf16.msra.mxu0 %v11363_v38  ;;  %v11438_v38 = vld [vmem:[%s14533_s9 + $0x150] ss:$8 sps:$4 sm:$0xff]  }
 0x7f2   : > { %7395 = vmatprep.subr.bf16.mxu0 %v11368_v10  ;;  %v11441_v10 = vld [vmem:[%s14533_s9 + $0x160] ss:$8 sps:$4 sm:$0xff]  }
 0x7f5   : > { %7396 = vmatpush1.bf16.msra.mxu0 %v11366_v45  ;;  %v11446_v45 = vld [vmem:[%s14533_s9 + $0x174] ss:$8 sps:$4 sm:$0xff]  }
 0x7f6   : > { %7397 = vmatprep.subr.bf16.mxu0 %v11371_v46  ;;  %v11444_v46 = vld [vmem:[%s14533_s9 + $0x170] ss:$8 sps:$4 sm:$0xff]  }
 0x7f9   : > { %7398 = vmatpush1.bf16.msra.mxu0 %v11369_v47  ;;  %v11449_v47 = vld [vmem:[%s14533_s9 + $0x304] ss:$8 sps:$4 sm:$0xff]  }
 0x7fa   : > { %7399 = vmatprep.subr.bf16.mxu0 %v11374_v48  ;;  %v11447_v48 = vld [vmem:[%s14533_s9 + $0x300] ss:$8 sps:$4 sm:$0xff]  }
 0x7fd   : > { %7400 = vmatpush1.bf16.msra.mxu0 %v11372_v50  ;;  %v7801_v50 = vrot.slane %v14097_v13, 1 }
 0x7fe   : > { %7666 = vmatprep.subr.bf16.mxu0 %v11377_v55  ;;  %v11455_v55 = vld [vmem:[%s14533_s9 + $0x324] ss:$8 sps:$4 sm:$0xff]  }
 0x800   : > { %7418 = vmatmul.mubr.bf16.vlgmr.msra.gmra.mrb[24].mxu0 %v7100_v54  ;;  %v11461_v54 = vld [vmem:[%s14533_s9 + $0x344] ss:$8 sps:$4 sm:$0xff]  }
 0x801   : > { %7667 = vmatpush1.bf16.msra.mxu0 %v11375_v27  ;;  %7698 = vmatprep.mubr.bf16.mxu0 %v14097_v13  ;;  %v11458_v13 = vld [vmem:[%s14533_s9 + $0x334] ss:$8 sps:$4 sm:$0xff]   ;;  %v11456_v27 = vld [vmem:[%s14533_s9 + $0x330] ss:$8 sps:$4 sm:$0xff]  }
 0x802   : > { %7668 = vmatprep.subr.bf16.mxu0 %v11380_v56  ;;  %v11459_v56 = vld [vmem:[%s14533_s9 + $0x340] ss:$8 sps:$4 sm:$0xff]  }
 0x805   : > { %7669 = vmatpush1.bf16.msra.mxu0 %v11378_v1  ;;  %v11464_v1 = vld [vmem:[%s14533_s9 + $0x354] ss:$8 sps:$4 sm:$0xff]  }
 0x806   : > { %7670 = vmatprep.subr.bf16.mxu0 %v11383_v33  ;;  %v11462_v33 = vld [vmem:[%s14533_s9 + $0x350] ss:$8 sps:$4 sm:$0xff]  }
 0x809   : > { %7671 = vmatpush1.bf16.msra.mxu0 %v11381_v39  ;;  %v11467_v39 = vld [vmem:[%s14533_s9 + $0x364] ss:$8 sps:$4 sm:$0xff]  }
 0x80a   : > { %7672 = vmatprep.subr.bf16.mxu0 %v11386_v57  ;;  %v11465_v57 = vld [vmem:[%s14533_s9 + $0x360] ss:$8 sps:$4 sm:$0xff]  }
 0x80d   : > { %7673 = vmatpush1.bf16.msra.mxu0 %v11384_v58  ;;  %v11470_v58 = vld [vmem:[%s14533_s9 + $0x374] ss:$8 sps:$4 sm:$0xff]  }
 0x80e   : > { %7674 = vmatprep.subr.bf16.mxu0 %v11389_v32  ;;  %v11468_v32 = vld [vmem:[%s14533_s9 + $0x370] ss:$8 sps:$4 sm:$0xff]  }
 0x811   : > { %7675 = vmatpush1.bf16.msra.mxu0 %v11387_v59  ;;  %v11473_v59 = vld [vmem:[%s14533_s9 + $0x384] ss:$8 sps:$4 sm:$0xff]  }
 0x812   : > { %7676 = vmatprep.subr.bf16.mxu0 %v11392_v60  ;;  %v11471_v60 = vld [vmem:[%s14533_s9 + $0x380] ss:$8 sps:$4 sm:$0xff]  }
 0x815   : > { %7677 = vmatpush1.bf16.msra.mxu0 %v11390_v36  ;;  %v11476_v36 = vld [vmem:[%s14533_s9 + $0x394] ss:$8 sps:$4 sm:$0xff]  }
 0x816   : > { %7678 = vmatprep.subr.bf16.mxu0 %v11395_v15  ;;  %v11474_v15 = vld [vmem:[%s14533_s9 + $0x390] ss:$8 sps:$4 sm:$0xff]  }
 0x819   : > { %7679 = vmatpush1.bf16.msra.mxu0 %v11393_v61  ;;  %v11479_v61 = vld [vmem:[%s14533_s9 + $0x3a4] ss:$8 sps:$4 sm:$0xff]  }
 0x81a   : > { %7680 = vmatprep.subr.bf16.mxu0 %v11398_v62  ;;  %v11477_v62 = vld [vmem:[%s14533_s9 + $0x3a0] ss:$8 sps:$4 sm:$0xff]  }
 0x81d   : > { %7681 = vmatpush1.bf16.msra.mxu0 %v11396_v63  ;;  %v11482_v63 = vld [vmem:[%s14533_s9 + $0x3b4] ss:$8 sps:$4 sm:$0xff]  }
 0x81e   : > { %7682 = vmatprep.subr.bf16.mxu0 %v11401_v5  ;;  %v11480_v5 = vld [vmem:[%s14533_s9 + $0x3b0] ss:$8 sps:$4 sm:$0xff]  }
 0x821   : > { %7683 = vmatpush1.bf16.msra.mxu0 %v11399_v6  ;;  %v11485_v6 = vld [vmem:[%s14533_s9 + $0x3c4] ss:$8 sps:$4 sm:$0xff]  }
 0x822   : > { %7684 = vmatprep.subr.bf16.mxu0 %v11404_v8  ;;  %v11483_v8 = vld [vmem:[%s14533_s9 + $0x3c0] ss:$8 sps:$4 sm:$0xff]  }
 0x825   : > { %7685 = vmatpush1.bf16.msra.mxu0 %v11402_v30  ;;  %v11488_v30 = vld [vmem:[%s14533_s9 + $0x3d4] ss:$8 sps:$4 sm:$0xff]  }
 0x826   : > { %7686 = vmatprep.subr.bf16.mxu0 %v11407_v53  ;;  %v11486_v53 = vld [vmem:[%s14533_s9 + $0x3d0] ss:$8 sps:$4 sm:$0xff]  }
 0x829   : > { %7687 = vmatpush1.bf16.msra.mxu0 %v11405_v3  ;;  %v11491_v3 = vld [vmem:[%s14533_s9 + $0x3e4] ss:$8 sps:$4 sm:$0xff]  }
 0x82a   : > { %7688 = vmatprep.subr.bf16.mxu0 %v11410_v11  ;;  %v11489_v11 = vld [vmem:[%s14533_s9 + $0x3e0] ss:$8 sps:$4 sm:$0xff]  }
 0x82d   : > { %7689 = vmatpush1.bf16.msra.mxu0 %v11408_v14  ;;  %v11494_v14 = vld [vmem:[%s14533_s9 + $0x3f4] ss:$8 sps:$4 sm:$0xff]  }
 0x82e   : > { %7690 = vmatprep.subr.bf16.mxu0 %v11413_v17  ;;  %v11492_v17 = vld [vmem:[%s14533_s9 + $0x3f0] ss:$8 sps:$4 sm:$0xff]  }
 0x831   : > { %7691 = vmatpush1.bf16.msra.mxu0 %v11411_v19  ;;  %v11497_v19 = vld [vmem:[%s14533_s9 + $0x404] ss:$8 sps:$4 sm:$0xff]  }
 0x832   : > { %7692 = vmatprep.subr.bf16.mxu0 %v11416_v9  ;;  %v11495_v9 = vld [vmem:[%s14533_s9 + $0x400] ss:$8 sps:$4 sm:$0xff]  }
 0x835   : > { %7693 = vmatpush1.bf16.msra.mxu0 %v11414_v16  ;;  %v7800_v16 = vrot.slane %v14095_v12, 1 }
 0x836   : > { %7694 = vmatprep.subr.bf16.mxu0 %v11419_v20  ;;  %v11500_v20 = vld [vmem:[%s14533_s9 + $0x414] ss:$8 sps:$4 sm:$0xff]  }
 0x839   : > { %7695 = vmatpush1.bf16.msra.mxu0 %v11417_v21  ;;  %v11498_v21 = vld [vmem:[%s14533_s9 + $0x410] ss:$8 sps:$4 sm:$0xff]  }
 0x83a   : > { %7696 = vmatprep.subr.bf16.mxu0 %v11422_v23  ;;  %v11503_v23 = vld [vmem:[%s14533_s9 + $0x424] ss:$8 sps:$4 sm:$0xff]  }
 0x83d   : > { %7697 = vmatpush1.bf16.msra.mxu0 %v11420_v40  ;;  %v11506_v40 = vld [vmem:[%s14533_s9 + $0x434] ss:$8 sps:$4 sm:$0xff]  }
 0x83e   : > { %7707 = vmatprep.subr.bf16.mxu0 %v11425_v29  ;;  %v11504_v29 = vld [vmem:[%s14533_s9 + $0x430] ss:$8 sps:$4 sm:$0xff]  }
 0x840   : > { %7699 = vmatmul.mubr.bf16.vlgmr.msra.gmra.mrb[24].mxu0 %v14095_v12  ;;  %v11501_v12 = vld [vmem:[%s14533_s9 + $0x420] ss:$8 sps:$4 sm:$0xff]  }
 0x841   : > { %7708 = vmatpush1.bf16.msra.mxu0 %v11423_v44  ;;  %7739 = vmatprep.mubr.bf16.mxu0 %v11539_v2  ;;  %v11509_v44 = vld [vmem:[%s14533_s9 + $0x444] ss:$8 sps:$4 sm:$0xff]  }
 0x842   : > { %7709 = vmatprep.subr.bf16.mxu0 %v11428_v25  ;;  %v11507_v25 = vld [vmem:[%s14533_s9 + $0x440] ss:$8 sps:$4 sm:$0xff]  }
 0x845   : > { %7710 = vmatpush1.bf16.msra.mxu0 %v11426_v0  ;;  %v11512_v0 = vld [vmem:[%s14533_s9 + $0x454] ss:$8 sps:$4 sm:$0xff]  }
 0x846   : > { %7711 = vmatprep.subr.bf16.mxu0 %v11431_v22  ;;  %v11510_v22 = vld [vmem:[%s14533_s9 + $0x450] ss:$8 sps:$4 sm:$0xff]  }
 0x849   : > { %7712 = vmatpush1.bf16.msra.mxu0 %v11429_v26  ;;  %v11515_v26 = vld [vmem:[%s14533_s9 + $0x464] ss:$8 sps:$4 sm:$0xff]  }
 0x84a   : > { %7713 = vmatprep.subr.bf16.mxu0 %v11434_v28  ;;  %v11513_v28 = vld [vmem:[%s14533_s9 + $0x460] ss:$8 sps:$4 sm:$0xff]  }
 0x84d   : > { %7714 = vmatpush1.bf16.msra.mxu0 %v11432_v31  ;;  %v11518_v31 = vld [vmem:[%s14533_s9 + $0x474] ss:$8 sps:$4 sm:$0xff]  }
 0x84e   : > { %7715 = vmatprep.subr.bf16.mxu0 %v11437_v4  ;;  %v11516_v4 = vld [vmem:[%s14533_s9 + $0x470] ss:$8 sps:$4 sm:$0xff]  }
 0x851   : > { %7716 = vmatpush1.bf16.msra.mxu0 %v11435_v7  ;;  %v7802_v7 = vrot.slane %v14139_v18, 1 }
 0x852   : > { %7717 = vmatprep.subr.bf16.mxu0 %v11440_v42  ;;  %v8130_v42 = vld [vmem:[%s14534_s10] ss:$2 sm:$0x3] }
 0x855   : > { %7718 = vmatpush1.bf16.msra.mxu0 %v11438_v38  ;;  %v9942_v38 = vld [vmem:[%s14534_s10 + $0x1] ss:$2 sm:$0x3] }
 0x856   : > { %7719 = vmatprep.subr.bf16.mxu0 %v11443_v43  ;;  %v8135_v43 = vrot.slane %v8130_v42, %v12077_v37 }
 0x859   : > { %7720 = vmatpush1.bf16.msra.mxu0 %v11441_v10  ;;  %v8139_v10 = vrot.slane %v8130_v42, %v12086_v41 }
 0x85a   : > { %7721 = vmatprep.subr.bf16.mxu0 %v11446_v45  ;;  %v8150_v45 = vrot.slane %v9942_v38, %v12077_v37 }
 0x85d   : > { %7722 = vmatpush1.bf16.msra.mxu0 %v11444_v46 }
 0x85e   : > { %8046 = vmatprep.subr.bf16.mxu0 %v11449_v47  ;;  %v8154_v47 = vrot.slane %v9942_v38, %v12086_v41 }
 0x860   : > { %7740 = vmatmul.mubr.bf16.vlgmr.msra.gmra.mrb[24].mxu0 %v14139_v18 }
 0x861   : > { %8047 = vmatpush1.bf16.msra.mxu0 %v11447_v48  ;;  %8078 = vmatprep.mubr.bf16.mxu0 %v7801_v50 }
 0x862   : > { %8048 = vmatprep.subr.bf16.mxu0 %v11452_v49 }
 0x865   : > { %8049 = vmatpush1.bf16.msra.mxu0 %v11450_v51 }
 0x866   : > { %8050 = vmatprep.subr.bf16.mxu0 %v11455_v55 }
 0x869   : > { %8051 = vmatpush1.bf16.msra.mxu0 %v11453_v52 }
 0x86a   : > { %8052 = vmatprep.subr.bf16.mxu0 %v11458_v13 }
 0x86d   : > { %8053 = vmatpush1.bf16.msra.mxu0 %v11456_v27 }
 0x86e   : > { %8054 = vmatprep.subr.bf16.mxu0 %v11461_v54 }
 0x871   : > { %8055 = vmatpush1.bf16.msra.mxu0 %v11459_v56 }
 0x872   : > { %8056 = vmatprep.subr.bf16.mxu0 %v11464_v1 }
 0x875   : > { %8057 = vmatpush1.bf16.msra.mxu0 %v11462_v33 }
 0x876   : > { %8058 = vmatprep.subr.bf16.mxu0 %v11467_v39 }
 0x879   : > { %8059 = vmatpush1.bf16.msra.mxu0 %v11465_v57 }
 0x87a   : > { %8060 = vmatprep.subr.bf16.mxu0 %v11470_v58  ;;  %v8189_v58 = vsel %vm8187_vm10, 4294967295, %v11541_v24  ;;  %v11519_v24 = vld [vmem:[%s14536_s12] sm:$0xff]  }
 0x87d   : > { %8061 = vmatpush1.bf16.msra.mxu0 %v11468_v32 }
 0x87e   : > { %8062 = vmatprep.subr.bf16.mxu0 %v11473_v59 }
 0x881   : > { %8063 = vmatpush1.bf16.msra.mxu0 %v11471_v60 }
 0x882   : > { %8064 = vmatprep.subr.bf16.mxu0 %v11476_v36  ;;  %v8190_v36 = vsel %vm8188_vm11, %v8189_v58, 0 }
 0x885   : > { %8065 = vmatpush1.bf16.msra.mxu0 %v11474_v15 }
 0x886   : > { %8066 = vmatprep.subr.bf16.mxu0 %v11479_v61 }
 0x889   : > { %8067 = vmatpush1.bf16.msra.mxu0 %v11477_v62 }
 0x88a   : > { %8068 = vmatprep.subr.bf16.mxu0 %v11482_v63 }
 0x88d   : > { %8069 = vmatpush1.bf16.msra.mxu0 %v11480_v5  ;;  %v8180_v5 = vld [vmem:[%s14535_s11] sm:$0x1] }
 0x88e   : > { %8070 = vmatprep.subr.bf16.mxu0 %v11485_v6  ;;  %v11520_v6 = vld [vmem:[%s14536_s12 + $0x8] sm:$0xff]  }
 0x891   : > { %8071 = vmatpush1.bf16.msra.mxu0 %v11483_v8  ;;  %v11521_v8 = vld [vmem:[%s14536_s12 + $0x10] sm:$0xff]  }
 0x892   : > { %8072 = vmatprep.subr.bf16.mxu0 %v11488_v30  ;;  %v11522_v30 = vld [vmem:[%s14536_s12 + $0x18] sm:$0xff]  }
 0x895   : > { %8073 = vmatpush1.bf16.msra.mxu0 %v11486_v53  ;;  %v11523_v53 = vld [vmem:[%s14536_s12 + $0x20] sm:$0xff]  }
 0x896   : > { %8074 = vmatprep.subr.bf16.mxu0 %v11491_v3  ;;  %v11524_v3 = vld [vmem:[%s14536_s12 + $0x28] sm:$0xff]  }
 0x899   : > { %8075 = vmatpush1.bf16.msra.mxu0 %v11489_v11  ;;  %v11525_v11 = vld [vmem:[%s14536_s12 + $0x30] sm:$0xff]  }
 0x89a   : > { %8076 = vmatprep.subr.bf16.mxu0 %v11494_v14  ;;  %v11526_v14 = vld [vmem:[%s14536_s12 + $0x38] sm:$0xff]  }
 0x89d   : > { %8077 = vmatpush1.bf16.msra.mxu0 %v11492_v17  ;;  %v11527_v17 = vld [vmem:[%s14536_s12 + $0x40] sm:$0xff]  }
 0x89e   : > { %8087 = vmatprep.subr.bf16.mxu0 %v11497_v19  ;;  %v11528_v19 = vld [vmem:[%s14536_s12 + $0x48] sm:$0xff]  }
 0x8a0   : > { %8079 = vmatmul.mubr.bf16.vlgmr.msra.gmra.mrb[24].mxu0 %v7800_v16  ;;  %v11530_v16 = vld [vmem:[%s14536_s12 + $0x58] sm:$0xff]  }
 0x8a1   : > { %8088 = vmatpush1.bf16.msra.mxu0 %v11495_v9  ;;  %8119 = vmatprep.mubr.bf16.mxu0 %v11539_v2  ;;  %v11529_v9 = vld [vmem:[%s14536_s12 + $0x50] sm:$0xff]  }
 0x8a2   : > { %8089 = vmatprep.subr.bf16.mxu0 %v11500_v20 }
 0x8a5   : > { %8090 = vmatpush1.bf16.msra.mxu0 %v11498_v21 }
 0x8a6   : > { %8091 = vmatprep.subr.bf16.mxu0 %v11503_v23 }
 0x8a9   : > { %8092 = vmatpush1.bf16.msra.mxu0 %v11501_v12 }
 0x8aa   : > { %8093 = vmatprep.subr.bf16.mxu0 %v11506_v40 }
 0x8ad   : > { %8094 = vmatpush1.bf16.msra.mxu0 %v11504_v29 }
 0x8ae   : > { %8095 = vmatprep.subr.bf16.mxu0 %v11509_v44  ;;  %v11543_v44 = vmov 1966171168  }
 0x8b1   : > { %8096 = vmatpush1.bf16.msra.mxu0 %v11507_v25  ;;  %v8383_v25 = vunpack.c.l.s4 %v11543_v44 }
 0x8b2   : > { %8097 = vmatprep.subr.bf16.mxu0 %v11512_v0 }
 0x8b3   : > { %v8384_v0 = vunpack.c.0.s8 %v8383_v25 }
 0x8b5   : > { %8098 = vmatpush1.bf16.msra.mxu0 %v11510_v22 }
 0x8b6   : > { %8099 = vmatprep.subr.bf16.mxu0 %v11515_v26  ;;  %v8387_v26 = vsub.s32 %v8384_v0, %v12071_v35 }
 0x8b9   : > { %8100 = vmatpush1.bf16.msra.mxu0 %v11513_v28 }
 0x8ba   : > { %8101 = vmatprep.subr.bf16.mxu0 %v11518_v31 }
 0x8bd   : > { %8102 = vmatpush1.bf16.msra.mxu0 %v11516_v4 }
 0x8c0   : > { %8120 = vmatmul.mubr.bf16.vlgmr.msra.gmra.mrb[24].mxu0 %v7802_v7 }
 0x993   : > { %v8121_v46 = vpop.f32.mrb[24].mxu0 }
 0x994   : > { %v8142_v48 = vmul.f32 %v8135_v43, %v8121_v46  ;;  %v8123_v18 = vpop.f32.mrb[25].mxu0 }
 0x995   : > { %v8143_v49 = vmul.f32 %v8139_v10, %v8123_v18  ;;  %v8125_v50 = vpop.f32.mrb[26].mxu0 }
 0x996   : > { %v8157_v51 = vadd.f32 %v8150_v45, %v8142_v48  ;;  %v8126_v55 = vpop.f32.mrb[27].mxu0 }
 0x997   : > { %v8158_v52 = vadd.f32 %v8154_v47, %v8143_v49 }
 0x998   : > { %v8159_v13 = vmax.f32 %v8157_v51, 0.0 }
 0x999   : > { %v8160_v27 = vmax.f32 %v8158_v52, 0.0 }
 0x99a   : > { %v8163_v54 = vrot.slane %v8159_v13, 1 }
 0x99b   : > { %v8164_v56 = vrot.slane %v8160_v27, 1 }
 0x99c   : > { %v8167_v1 = vmax.f32 %v8159_v13, %v8163_v54 }
 0x99d   : > { %v8168_v33 = vmax.f32 %v8160_v27, %v8164_v56 }
 0x99f   : > { %v10321_v39 = vpack.i.bf16 %v8168_v33, %v8167_v1 }
 0x9a1   : > { %10322 = vrot.lane.b32.xlu0 %v10321_v39, %s11542_s19  ;;  %s438_s19 = scalar_lea.vmem %s14537_s13, %s8461_s16 }
 0xa13   : > { %v10323_v37 = vpop.permute.xlu0 %10322 }
 0xa14   : > { %v10325_v57 = vunpack.i.h.bf16 %v10323_v37  ;;  %v10324_v41 = vunpack.i.l.bf16 %v10323_v37 }
 0xa16   : > { %v8179_v32 = vmax.f32 %v8168_v33, %v10325_v57  ;;  %v8175_v59 = vsel %vm2197_vm6, %v10324_v41, %v10325_v57 }
 0xa17   : > { %v8178_v60 = vmax.f32 %v8167_v1, %v8175_v59 }
 0xa18   : > { %v8182_v15 = vpack.c.bf16 %v8179_v32, %v8179_v32 }
 0xa19   : > { %v8181_v61 = vpack.c.bf16 %v8178_v60, %v8178_v60 }
 0xa1a   : > { %v8195_v62 = vand.u32 %v8190_v36, %v8182_v15 }
 0xa1b   : > { %v8192_v63 = vand.u32 %v8190_v36, %v8181_v61 }
 0xa1c   : > { %8197 = vmatprep.subr.bf16.mxu1 %v8195_v62 }
 0xa1d   : > { %8198 = vmatpush1.bf16.msra.mxu1 %v8192_v63 }
 0xa1e   : > { %8339 = vmatprep.subr.bf16.mxu1 %v11539_v2 }
 0xa20   : > { %9943 = vmatmul.mubr.msk.bf16.vlgmr.msra.gmra.mrb[28].mxu1 %vm8183_vm12, %v8180_v5 }
 0xa21   : > { %8340 = vmatpush1.bf16.msra.mxu1 %v11519_v24 }
 0xa22   : > { %8341 = vmatprep.subr.bf16.mxu1 %v11539_v2 }
 0xa25   : > { %8342 = vmatpush1.bf16.msra.mxu1 %v11520_v6 }
 0xa26   : > { %8343 = vmatprep.subr.bf16.mxu1 %v11539_v2 }
 0xa29   : > { %8344 = vmatpush1.bf16.msra.mxu1 %v11521_v8 }
 0xa2a   : > { %8345 = vmatprep.subr.bf16.mxu1 %v11539_v2 }
 0xa2d   : > { %8346 = vmatpush1.bf16.msra.mxu1 %v11522_v30 }
 0xa2e   : > { %8347 = vmatprep.subr.bf16.mxu1 %v11539_v2 }
 0xa31   : > { %8348 = vmatpush1.bf16.msra.mxu1 %v11523_v53 }
 0xa32   : > { %8349 = vmatprep.subr.bf16.mxu1 %v11539_v2 }
 0xa35   : > { %8350 = vmatpush1.bf16.msra.mxu1 %v11524_v3 }
 0xa36   : > { %8351 = vmatprep.subr.bf16.mxu1 %v11539_v2 }
 0xa39   : > { %8352 = vmatpush1.bf16.msra.mxu1 %v11525_v11 }
 0xa3a   : > { %8353 = vmatprep.subr.bf16.mxu1 %v11539_v2 }
 0xa3d   : > { %8354 = vmatpush1.bf16.msra.mxu1 %v11526_v14 }
 0xa3e   : > { %8355 = vmatprep.subr.bf16.mxu1 %v11539_v2 }
 0xa41   : > { %8356 = vmatpush1.bf16.msra.mxu1 %v11527_v17 }
 0xa42   : > { %8357 = vmatprep.subr.bf16.mxu1 %v11539_v2 }
 0xa45   : > { %8358 = vmatpush1.bf16.msra.mxu1 %v11528_v19 }
 0xa46   : > { %8359 = vmatprep.subr.bf16.mxu1 %v11539_v2 }
 0xa49   : > { %8360 = vmatpush1.bf16.msra.mxu1 %v11529_v9 }
 0xa4a   : > { %8361 = vmatprep.subr.bf16.mxu1 %v11539_v2 }
 0xa4d   : > { %8362 = vmatpush1.bf16.msra.mxu1 %v11530_v16 }
 0xaf3   : > { %v8231_v20 = vpop.f32.mrb[28].mxu1 }
 0xaf4   : > { %v8233_v21 = vpop.f32.mrb[29].mxu1  ;;  %v8238_v40 = vpack.c.bf16 %v8231_v20, %v8231_v20 }
 0xaf5   : > { %v8239_v23 = vpack.c.bf16 %v8233_v21, %v8233_v21  ;;  %v8235_v12 = vpop.f32.mrb[30].mxu1 }
 0xaf6   : > { %v8236_v29 = vpop.f32.mrb[31].mxu1 }
 0xaf7   : > { %9956 = vmatprep.mubr.msk.bf16.mxu1 %vm2197_vm6, %v8239_v23 }
 0xaf8   : > { %8372 = vmatmul.mubr.bf16.vlgmr.msra.gmra.mrb[32].mxu1 %v8238_v40 }
 0xbcb   : > { %v8373_v22 = vpop.f32.mrb[32].mxu1 }
 0xbcc   : > { %v8380_v2 = vrot.slane %v8373_v22, 1  ;;  %v8375_v28 = vpop.f32.mrb[33].mxu1 }
 0xbcd   : > { %v8376_v31 = vpop.f32.mrb[34].mxu1 }
 0xbce   : > { %v8381_v4 = vcombine.low %v8373_v22, %v8380_v2  ;;  %v8377_v7 = vpop.f32.mrb[35].mxu1 }
 0xbd0   : > { %v8388_v42 = vrot.slane %v8381_v4, %v8387_v26 }
 0xbd2   : > { %v8395_v38 = vrot.slane %v8388_v42, %v8387_v26 }
 0xbd4   : > { %8401 = vst.msk [vmem:[%s438_s19] sm:$0x3] %vm8399_vm13, %v8395_v38 }
 0xbd5 PF: > { %s23_s25 = sadd.s32 1, %s11537_s25  }
 0xbd6   : > { %p20_p4 = scmp.ge.s32.totalorder %s23_s25, 4  }
 0xbd8   :  { %22 = sbr.rel (!%p20_p4) target bundleno = 1 (0x1), region = 118 }

</bundles_post_ra>
